<compile_context>
chip_gen: v5e
topology: v5e:2x2
jax: 0.10.0
libtpu: 0.0.40
codegen_flags: <defaults>
</compile_context>

<pallas_src>
import numpy as np

import jax
import jax.numpy as jnp
from jax.experimental import pallas as pl
from jax.experimental.pallas import tpu as pltpu


# ----------------------------- fused Pallas kernel -------------------------- #

def _lenet_kernel(x_ref, t1e_ref, t1o_ref, b1_ref, s1e_ref, s1o_ref,
                  t2e_ref, t2o_ref, b2_ref, s2e_ref, s2o_ref,
                  wfc1_ref, bfc1_ref, wfc2_ref, bfc2_ref, out_ref):
    f32 = jnp.float32
    bf16 = jnp.bfloat16

    x = x_ref[0]                                   # (28, 28) f32, one image

    # ---- conv1 (1->20, 5x5) + bias + ReLU + 2x2 max-pool ------------------- #
    # 5 shifted GEMMs against Toeplitz weights; "even"/"odd" = even/odd conv
    # output columns, so max(even, odd) pools the width direction.
    acc1_e = jnp.zeros((24, 240), f32)             # cols: c*12 + pooled_w
    acc1_o = jnp.zeros((24, 240), f32)
    for kh in range(5):
        xs = x[kh:kh + 24, :].astype(bf16)         # (24, 28)
        acc1_e = acc1_e + jnp.dot(xs, t1e_ref[kh], preferred_element_type=f32)
        acc1_o = acc1_o + jnp.dot(xs, t1o_ref[kh], preferred_element_type=f32)
    m1 = jnp.maximum(jnp.maximum(acc1_e + b1_ref[...], 0.0),
                     jnp.maximum(acc1_o + b1_ref[...], 0.0))   # (24, 240)
    # height pooling via exact 0/1 row-selection matmuls (f32, exact)
    p1 = jnp.maximum(jnp.dot(s1e_ref[...], m1, preferred_element_type=f32),
                     jnp.dot(s1o_ref[...], m1, preferred_element_type=f32))
    # p1: (12, 240), layout [h, c*12 + w]  ==  maxpool2x2(relu(conv1))

    # ---- conv2 (20->50, 5x5) + bias + ReLU + 2x2 max-pool ------------------ #
    acc2_e = jnp.zeros((8, 200), f32)              # cols: d*4 + pooled_w
    acc2_o = jnp.zeros((8, 200), f32)
    for kh in range(5):
        ps = p1[kh:kh + 8, :].astype(bf16)         # (8, 240)
        acc2_e = acc2_e + jnp.dot(ps, t2e_ref[kh], preferred_element_type=f32)
        acc2_o = acc2_o + jnp.dot(ps, t2o_ref[kh], preferred_element_type=f32)
    m2 = jnp.maximum(jnp.maximum(acc2_e + b2_ref[...], 0.0),
                     jnp.maximum(acc2_o + b2_ref[...], 0.0))   # (8, 200)
    p2 = jnp.maximum(jnp.dot(s2e_ref[...], m2, preferred_element_type=f32),
                     jnp.dot(s2o_ref[...], m2, preferred_element_type=f32))
    # p2: (4, 200), layout [h, d*4 + w]  ==  maxpool2x2(relu(conv2))

    # ---- fc1 (800 -> 500) + ReLU ------------------------------------------- #
    # fc1 weight columns were pre-permuted so row h of p2 contracts against
    # wfc1[h]; this absorbs PyTorch's NCHW (d, h, w) flatten with no transpose.
    h_acc = jnp.zeros((1, 500), f32)
    for r in range(4):
        h_acc = h_acc + jnp.dot(p2[r:r + 1, :].astype(bf16), wfc1_ref[r],
                                preferred_element_type=f32)
    h1 = jnp.maximum(h_acc + bfc1_ref[...], 0.0)   # (1, 500)

    # ---- fc2 (500 -> 10) ---------------------------------------------------- #
    out = jnp.dot(h1.astype(bf16), wfc2_ref[...],
                  preferred_element_type=f32) + bfc2_ref[...]  # (1, 10)
    out_ref[0] = out


# --------------------------- parameter packing (one-time) ------------------- #

def _conv_toeplitz(w_pt, in_w, parity):
    """PyTorch conv weight (Cout, Cin, 5, 5) -> (KH, Cin*in_w, Cout*n_pw) blocks.

    Block kh, row (cin*in_w + w), column (cout*n_pw + pw) holds the weight that
    multiplies input column w when producing conv output column wo = 2*pw+parity.
    """
    w_np = np.asarray(w_pt, dtype=np.float32)
    c_out, c_in, k_h, k_w = w_np.shape
    out_w = in_w - k_w + 1
    n_pw = out_w // 2
    t = np.zeros((k_h, c_in, in_w, c_out, n_pw), dtype=np.float32)
    for kw in range(k_w):
        for pw in range(n_pw):
            w = 2 * pw + parity + kw
            t[:, :, w, :, pw] = np.transpose(w_np[:, :, :, kw], (2, 1, 0))
    return t.reshape(k_h, c_in * in_w, c_out * n_pw)


def _row_select(n_out, parity):
    s = np.zeros((n_out, 2 * n_out), dtype=np.float32)
    s[np.arange(n_out), 2 * np.arange(n_out) + parity] = 1.0
    return s


def pack_params(params):
    conv1_w = np.asarray(params["conv1_w"], np.float32)   # (20, 1, 5, 5)
    conv1_b = np.asarray(params["conv1_b"], np.float32)
    conv2_w = np.asarray(params["conv2_w"], np.float32)   # (50, 20, 5, 5)
    conv2_b = np.asarray(params["conv2_b"], np.float32)
    fc1_w = np.asarray(params["fc1_w"], np.float32)        # (500, 800)
    fc1_b = np.asarray(params["fc1_b"], np.float32)
    fc2_w = np.asarray(params["fc2_w"], np.float32)        # (10, 500)
    fc2_b = np.asarray(params["fc2_b"], np.float32)

    # fc1 input order in PyTorch is d*16 + h*4 + w (NCHW flatten).  Re-order the
    # columns to [h][d*4 + w] so it contracts directly with the kernel layout.
    wfc1 = fc1_w.reshape(500, 50, 4, 4)                    # (j, d, h, w)
    wfc1 = np.transpose(wfc1, (2, 1, 3, 0)).reshape(4, 200, 500)

    bf16 = jnp.bfloat16
    f32 = jnp.float32
    return {
        "t1e": jnp.asarray(_conv_toeplitz(conv1_w, 28, 0), bf16),   # (5, 28, 240)
        "t1o": jnp.asarray(_conv_toeplitz(conv1_w, 28, 1), bf16),
        "b1": jnp.asarray(np.repeat(conv1_b, 12)[None, :], f32),    # (1, 240)
        "s1e": jnp.asarray(_row_select(12, 0), f32),                # (12, 24)
        "s1o": jnp.asarray(_row_select(12, 1), f32),
        "t2e": jnp.asarray(_conv_toeplitz(conv2_w, 12, 0), bf16),   # (5, 240, 200)
        "t2o": jnp.asarray(_conv_toeplitz(conv2_w, 12, 1), bf16),
        "b2": jnp.asarray(np.repeat(conv2_b, 4)[None, :], f32),     # (1, 200)
        "s2e": jnp.asarray(_row_select(4, 0), f32),                 # (4, 8)
        "s2o": jnp.asarray(_row_select(4, 1), f32),
        "wfc1": jnp.asarray(wfc1, bf16),                            # (4, 200, 500)
        "bfc1": jnp.asarray(fc1_b[None, :], f32),                   # (1, 500)
        "wfc2": jnp.asarray(fc2_w.T, bf16),                         # (500, 10)
        "bfc2": jnp.asarray(fc2_b[None, :], f32),                   # (1, 10)
    }


# --------------------------------- forward ---------------------------------- #

def lenet5_caffe_forward(packed, x_nchw):
    assert x_nchw.shape[1:] == (1, 28, 28), x_nchw.shape
    n = x_nchw.shape[0]
    x = x_nchw.reshape(n, 28, 28)                 # C == 1, drop channel dim

    full = lambda shape: pl.BlockSpec(shape, lambda i: (0,) * len(shape))
    out = pl.pallas_call(
        _lenet_kernel,
        out_shape=jax.ShapeDtypeStruct((n, 1, 10), jnp.float32),
        grid=(n,),
        in_specs=[
            pl.BlockSpec((1, 28, 28), lambda i: (i, 0, 0)),
            full((5, 28, 240)), full((5, 28, 240)), full((1, 240)),
            full((12, 24)), full((12, 24)),
            full((5, 240, 200)), full((5, 240, 200)), full((1, 200)),
            full((4, 8)), full((4, 8)),
            full((4, 200, 500)), full((1, 500)),
            full((500, 10)), full((1, 10)),
        ],
        out_specs=pl.BlockSpec((1, 1, 10), lambda i: (i, 0, 0)),
        compiler_params=pltpu.CompilerParams(
            dimension_semantics=("parallel",),
        ),
    )(x, packed["t1e"], packed["t1o"], packed["b1"], packed["s1e"], packed["s1o"],
      packed["t2e"], packed["t2o"], packed["b2"], packed["s2e"], packed["s2o"],
      packed["wfc1"], packed["bfc1"], packed["wfc2"], packed["bfc2"])
    return out.reshape(n, 10)


# ------------------------------ reference & init ---------------------------- #

def init_params(key):
    ks = jax.random.split(key, 8)

    def rnd(shape, k, scale):
        return scale * jax.random.normal(k, shape, dtype=jnp.float32)

    return {
        "conv1_w": rnd((20, 1, 5, 5), ks[0], 0.10),   # (Cout, Cin, KH, KW)
        "conv1_b": rnd((20,), ks[1], 0.10),
        "conv2_w": rnd((50, 20, 5, 5), ks[2], 0.05),
        "conv2_b": rnd((50,), ks[3], 0.05),
        "fc1_w":   rnd((500, 800), ks[4], 0.02),      # (out_features, in_features)
        "fc1_b":   rnd((500,), ks[5], 0.02),
        "fc2_w":   rnd((10, 500), ks[6], 0.05),
        "fc2_b":   rnd((10,), ks[7], 0.05),
    }


def reference_forward(params, x_nchw):
    """Pure-JAX/XLA reference mirroring the PyTorch module (f32)."""
    x = jnp.transpose(x_nchw, (0, 2, 3, 1))       # NHWC

    def conv(y, w, b):
        w_hwio = jnp.transpose(w, (2, 3, 1, 0))
        out = jax.lax.conv_general_dilated(
            y, w_hwio, (1, 1), "VALID",
            dimension_numbers=("NHWC", "HWIO", "NHWC"))
        return out + b

    def pool(y):
        return jax.lax.reduce_window(y, -jnp.inf, jax.lax.max,
                                     (1, 2, 2, 1), (1, 2, 2, 1), "VALID")

    y = pool(jax.nn.relu(conv(x, params["conv1_w"], params["conv1_b"])))
    y = pool(jax.nn.relu(conv(y, params["conv2_w"], params["conv2_b"])))
    feats = jnp.transpose(y, (0, 3, 1, 2)).reshape(x.shape[0], -1)   # NCHW flatten
    h = jax.nn.relu(feats @ params["fc1_w"].T + params["fc1_b"])
    return h @ params["fc2_w"].T + params["fc2_b"]


# ----------------------------------- main ------------------------------------ #

if __name__ == "__main__":
    key = jax.random.PRNGKey(0)
    pkey, xkey = jax.random.split(key)
    params = init_params(pkey)
    packed = pack_params(params)

    # fc1 (4*4*50 inputs) fixes the input to (N, 1, 28, 28); use batch=2.
    x = jax.random.normal(xkey, (2, 1, 28, 28), dtype=jnp.float32)

    fwd = jax.jit(lenet5_caffe_forward)
    out = jax.block_until_ready(fwd(packed, x))

    assert out.shape == (2, 10), out.shape
    assert bool(jnp.all(jnp.isfinite(out)))

    # Numerical check against the f32 XLA reference (kernel uses bf16 MXU
    # operands with f32 accumulation, so allow a loose tolerance).
    ref = jax.block_until_ready(jax.jit(reference_forward)(params, x))
    err = float(jnp.max(jnp.abs(out - ref)))
    scale = float(jnp.max(jnp.abs(ref)))
    assert err <= 0.08 * scale + 0.05, (err, scale)

    print("KERNEL_OK")
</pallas_src>

<mosaic_0001>
module attributes {stable_mosaic.version = 11 : i64} {
  func.func @_lenet_kernel(%arg0: i32, %arg1: memref<1x28x28xf32, #tpu.memory_space<vmem>>, %arg2: memref<5x28x240xbf16, #tpu.memory_space<vmem>>, %arg3: memref<5x28x240xbf16, #tpu.memory_space<vmem>>, %arg4: memref<1x240xf32, #tpu.memory_space<vmem>>, %arg5: memref<12x24xf32, #tpu.memory_space<vmem>>, %arg6: memref<12x24xf32, #tpu.memory_space<vmem>>, %arg7: memref<5x240x200xbf16, #tpu.memory_space<vmem>>, %arg8: memref<5x240x200xbf16, #tpu.memory_space<vmem>>, %arg9: memref<1x200xf32, #tpu.memory_space<vmem>>, %arg10: memref<4x8xf32, #tpu.memory_space<vmem>>, %arg11: memref<4x8xf32, #tpu.memory_space<vmem>>, %arg12: memref<4x200x500xbf16, #tpu.memory_space<vmem>>, %arg13: memref<1x500xf32, #tpu.memory_space<vmem>>, %arg14: memref<500x10xbf16, #tpu.memory_space<vmem>>, %arg15: memref<1x10xf32, #tpu.memory_space<vmem>>, %arg16: memref<1x1x10xf32, #tpu.memory_space<vmem>>) attributes {dimension_semantics = [#tpu.dimension_semantics<parallel>], iteration_bounds = array<i64: 2>, scalar_prefetch = 0 : i64, scratch_operands = 0 : i64, tpu.core_type = #tpu.core_type<tc>, window_params = [{transform_indices = @transform_0, window_bounds = array<i64: 1, 28, 28>}, {pipeline_mode = #tpu.pipeline_mode<synchronous>, transform_indices = @transform_1, window_bounds = array<i64: 5, 28, 240>}, {pipeline_mode = #tpu.pipeline_mode<synchronous>, transform_indices = @transform_2, window_bounds = array<i64: 5, 28, 240>}, {pipeline_mode = #tpu.pipeline_mode<synchronous>, transform_indices = @transform_3, window_bounds = array<i64: 1, 240>}, {pipeline_mode = #tpu.pipeline_mode<synchronous>, transform_indices = @transform_4, window_bounds = array<i64: 12, 24>}, {pipeline_mode = #tpu.pipeline_mode<synchronous>, transform_indices = @transform_5, window_bounds = array<i64: 12, 24>}, {pipeline_mode = #tpu.pipeline_mode<synchronous>, transform_indices = @transform_6, window_bounds = array<i64: 5, 240, 200>}, {pipeline_mode = #tpu.pipeline_mode<synchronous>, transform_indices = @transform_7, window_bounds = array<i64: 5, 240, 200>}, {pipeline_mode = #tpu.pipeline_mode<synchronous>, transform_indices = @transform_8, window_bounds = array<i64: 1, 200>}, {pipeline_mode = #tpu.pipeline_mode<synchronous>, transform_indices = @transform_9, window_bounds = array<i64: 4, 8>}, {pipeline_mode = #tpu.pipeline_mode<synchronous>, transform_indices = @transform_10, window_bounds = array<i64: 4, 8>}, {pipeline_mode = #tpu.pipeline_mode<synchronous>, transform_indices = @transform_11, window_bounds = array<i64: 4, 200, 500>}, {pipeline_mode = #tpu.pipeline_mode<synchronous>, transform_indices = @transform_12, window_bounds = array<i64: 1, 500>}, {pipeline_mode = #tpu.pipeline_mode<synchronous>, transform_indices = @transform_13, window_bounds = array<i64: 500, 10>}, {pipeline_mode = #tpu.pipeline_mode<synchronous>, transform_indices = @transform_14, window_bounds = array<i64: 1, 10>}, {transform_indices = @transform_15, window_bounds = array<i64: 1, 1, 10>}]} {
    %c0 = arith.constant 0 : index
    %c0_0 = arith.constant 0 : index
    %c0_1 = arith.constant 0 : index
    %0 = vector.load %arg1[%c0, %c0_0, %c0_1] : memref<1x28x28xf32, #tpu.memory_space<vmem>>, vector<1x28x28xf32>
    %1 = vector.shape_cast %0 : vector<1x28x28xf32> to vector<28x28xf32>
    %cst = arith.constant 0.000000e+00 : f32
    %2 = vector.broadcast %cst : f32 to vector<24x240xf32>
    %cst_2 = arith.constant 0.000000e+00 : f32
    %3 = vector.broadcast %cst_2 : f32 to vector<24x240xf32>
    %4 = vector.extract_strided_slice %1 {offsets = [0, 0], sizes = [24, 28], strides = [1, 1]} : vector<28x28xf32> to vector<24x28xf32>
    %5 = arith.truncf %4 : vector<24x28xf32> to vector<24x28xbf16>
    %c0_3 = arith.constant 0 : index
    %c0_4 = arith.constant 0 : index
    %c0_5 = arith.constant 0 : index
    %6 = vector.load %arg2[%c0_3, %c0_4, %c0_5] : memref<5x28x240xbf16, #tpu.memory_space<vmem>>, vector<1x28x240xbf16>
    %7 = vector.shape_cast %6 : vector<1x28x240xbf16> to vector<28x240xbf16>
    %cst_6 = arith.constant dense<0.000000e+00> : vector<24x240xf32>
    %8 = tpu.matmul %5, %7, %cst_6 {dimension_numbers = #tpu.dot_dimension_numbers<[1], [0], [0], [1], [0, 0, 1, 1], [], []>} : vector<24x28xbf16>, vector<28x240xbf16>, vector<24x240xf32> -> vector<24x240xf32>
    %9 = arith.addf %2, %8 : vector<24x240xf32>
    %c0_7 = arith.constant 0 : index
    %c0_8 = arith.constant 0 : index
    %c0_9 = arith.constant 0 : index
    %10 = vector.load %arg3[%c0_7, %c0_8, %c0_9] : memref<5x28x240xbf16, #tpu.memory_space<vmem>>, vector<1x28x240xbf16>
    %11 = vector.shape_cast %10 : vector<1x28x240xbf16> to vector<28x240xbf16>
    %cst_10 = arith.constant dense<0.000000e+00> : vector<24x240xf32>
    %12 = tpu.matmul %5, %11, %cst_10 {dimension_numbers = #tpu.dot_dimension_numbers<[1], [0], [0], [1], [0, 0, 1, 1], [], []>} : vector<24x28xbf16>, vector<28x240xbf16>, vector<24x240xf32> -> vector<24x240xf32>
    %13 = arith.addf %3, %12 : vector<24x240xf32>
    %14 = vector.extract_strided_slice %1 {offsets = [1, 0], sizes = [24, 28], strides = [1, 1]} : vector<28x28xf32> to vector<24x28xf32>
    %15 = arith.truncf %14 : vector<24x28xf32> to vector<24x28xbf16>
    %c1 = arith.constant 1 : index
    %c0_11 = arith.constant 0 : index
    %c0_12 = arith.constant 0 : index
    %16 = vector.load %arg2[%c1, %c0_11, %c0_12] : memref<5x28x240xbf16, #tpu.memory_space<vmem>>, vector<1x28x240xbf16>
    %17 = vector.shape_cast %16 : vector<1x28x240xbf16> to vector<28x240xbf16>
    %cst_13 = arith.constant dense<0.000000e+00> : vector<24x240xf32>
    %18 = tpu.matmul %15, %17, %cst_13 {dimension_numbers = #tpu.dot_dimension_numbers<[1], [0], [0], [1], [0, 0, 1, 1], [], []>} : vector<24x28xbf16>, vector<28x240xbf16>, vector<24x240xf32> -> vector<24x240xf32>
    %19 = arith.addf %9, %18 : vector<24x240xf32>
    %c1_14 = arith.constant 1 : index
    %c0_15 = arith.constant 0 : index
    %c0_16 = arith.constant 0 : index
    %20 = vector.load %arg3[%c1_14, %c0_15, %c0_16] : memref<5x28x240xbf16, #tpu.memory_space<vmem>>, vector<1x28x240xbf16>
    %21 = vector.shape_cast %20 : vector<1x28x240xbf16> to vector<28x240xbf16>
    %cst_17 = arith.constant dense<0.000000e+00> : vector<24x240xf32>
    %22 = tpu.matmul %15, %21, %cst_17 {dimension_numbers = #tpu.dot_dimension_numbers<[1], [0], [0], [1], [0, 0, 1, 1], [], []>} : vector<24x28xbf16>, vector<28x240xbf16>, vector<24x240xf32> -> vector<24x240xf32>
    %23 = arith.addf %13, %22 : vector<24x240xf32>
    %24 = vector.extract_strided_slice %1 {offsets = [2, 0], sizes = [24, 28], strides = [1, 1]} : vector<28x28xf32> to vector<24x28xf32>
    %25 = arith.truncf %24 : vector<24x28xf32> to vector<24x28xbf16>
    %c2 = arith.constant 2 : index
    %c0_18 = arith.constant 0 : index
    %c0_19 = arith.constant 0 : index
    %26 = vector.load %arg2[%c2, %c0_18, %c0_19] : memref<5x28x240xbf16, #tpu.memory_space<vmem>>, vector<1x28x240xbf16>
    %27 = vector.shape_cast %26 : vector<1x28x240xbf16> to vector<28x240xbf16>
    %cst_20 = arith.constant dense<0.000000e+00> : vector<24x240xf32>
    %28 = tpu.matmul %25, %27, %cst_20 {dimension_numbers = #tpu.dot_dimension_numbers<[1], [0], [0], [1], [0, 0, 1, 1], [], []>} : vector<24x28xbf16>, vector<28x240xbf16>, vector<24x240xf32> -> vector<24x240xf32>
    %29 = arith.addf %19, %28 : vector<24x240xf32>
    %c2_21 = arith.constant 2 : index
    %c0_22 = arith.constant 0 : index
    %c0_23 = arith.constant 0 : index
    %30 = vector.load %arg3[%c2_21, %c0_22, %c0_23] : memref<5x28x240xbf16, #tpu.memory_space<vmem>>, vector<1x28x240xbf16>
    %31 = vector.shape_cast %30 : vector<1x28x240xbf16> to vector<28x240xbf16>
    %cst_24 = arith.constant dense<0.000000e+00> : vector<24x240xf32>
    %32 = tpu.matmul %25, %31, %cst_24 {dimension_numbers = #tpu.dot_dimension_numbers<[1], [0], [0], [1], [0, 0, 1, 1], [], []>} : vector<24x28xbf16>, vector<28x240xbf16>, vector<24x240xf32> -> vector<24x240xf32>
    %33 = arith.addf %23, %32 : vector<24x240xf32>
    %34 = vector.extract_strided_slice %1 {offsets = [3, 0], sizes = [24, 28], strides = [1, 1]} : vector<28x28xf32> to vector<24x28xf32>
    %35 = arith.truncf %34 : vector<24x28xf32> to vector<24x28xbf16>
    %c3 = arith.constant 3 : index
    %c0_25 = arith.constant 0 : index
    %c0_26 = arith.constant 0 : index
    %36 = vector.load %arg2[%c3, %c0_25, %c0_26] : memref<5x28x240xbf16, #tpu.memory_space<vmem>>, vector<1x28x240xbf16>
    %37 = vector.shape_cast %36 : vector<1x28x240xbf16> to vector<28x240xbf16>
    %cst_27 = arith.constant dense<0.000000e+00> : vector<24x240xf32>
    %38 = tpu.matmul %35, %37, %cst_27 {dimension_numbers = #tpu.dot_dimension_numbers<[1], [0], [0], [1], [0, 0, 1, 1], [], []>} : vector<24x28xbf16>, vector<28x240xbf16>, vector<24x240xf32> -> vector<24x240xf32>
    %39 = arith.addf %29, %38 : vector<24x240xf32>
    %c3_28 = arith.constant 3 : index
    %c0_29 = arith.constant 0 : index
    %c0_30 = arith.constant 0 : index
    %40 = vector.load %arg3[%c3_28, %c0_29, %c0_30] : memref<5x28x240xbf16, #tpu.memory_space<vmem>>, vector<1x28x240xbf16>
    %41 = vector.shape_cast %40 : vector<1x28x240xbf16> to vector<28x240xbf16>
    %cst_31 = arith.constant dense<0.000000e+00> : vector<24x240xf32>
    %42 = tpu.matmul %35, %41, %cst_31 {dimension_numbers = #tpu.dot_dimension_numbers<[1], [0], [0], [1], [0, 0, 1, 1], [], []>} : vector<24x28xbf16>, vector<28x240xbf16>, vector<24x240xf32> -> vector<24x240xf32>
    %43 = arith.addf %33, %42 : vector<24x240xf32>
    %44 = vector.extract_strided_slice %1 {offsets = [4, 0], sizes = [24, 28], strides = [1, 1]} : vector<28x28xf32> to vector<24x28xf32>
    %45 = arith.truncf %44 : vector<24x28xf32> to vector<24x28xbf16>
    %c4 = arith.constant 4 : index
    %c0_32 = arith.constant 0 : index
    %c0_33 = arith.constant 0 : index
    %46 = vector.load %arg2[%c4, %c0_32, %c0_33] : memref<5x28x240xbf16, #tpu.memory_space<vmem>>, vector<1x28x240xbf16>
    %47 = vector.shape_cast %46 : vector<1x28x240xbf16> to vector<28x240xbf16>
    %cst_34 = arith.constant dense<0.000000e+00> : vector<24x240xf32>
    %48 = tpu.matmul %45, %47, %cst_34 {dimension_numbers = #tpu.dot_dimension_numbers<[1], [0], [0], [1], [0, 0, 1, 1], [], []>} : vector<24x28xbf16>, vector<28x240xbf16>, vector<24x240xf32> -> vector<24x240xf32>
    %49 = arith.addf %39, %48 : vector<24x240xf32>
    %c4_35 = arith.constant 4 : index
    %c0_36 = arith.constant 0 : index
    %c0_37 = arith.constant 0 : index
    %50 = vector.load %arg3[%c4_35, %c0_36, %c0_37] : memref<5x28x240xbf16, #tpu.memory_space<vmem>>, vector<1x28x240xbf16>
    %51 = vector.shape_cast %50 : vector<1x28x240xbf16> to vector<28x240xbf16>
    %cst_38 = arith.constant dense<0.000000e+00> : vector<24x240xf32>
    %52 = tpu.matmul %45, %51, %cst_38 {dimension_numbers = #tpu.dot_dimension_numbers<[1], [0], [0], [1], [0, 0, 1, 1], [], []>} : vector<24x28xbf16>, vector<28x240xbf16>, vector<24x240xf32> -> vector<24x240xf32>
    %53 = arith.addf %43, %52 : vector<24x240xf32>
    %c0_39 = arith.constant 0 : index
    %c0_40 = arith.constant 0 : index
    %54 = vector.load %arg4[%c0_39, %c0_40] : memref<1x240xf32, #tpu.memory_space<vmem>>, vector<1x240xf32>
    %55 = vector.broadcast %54 : vector<1x240xf32> to vector<24x240xf32>
    %56 = arith.addf %49, %55 : vector<24x240xf32>
    %cst_41 = arith.constant 0.000000e+00 : f32
    %57 = vector.broadcast %cst_41 : f32 to vector<24x240xf32>
    %58 = arith.maximumf %56, %57 : vector<24x240xf32>
    %c0_42 = arith.constant 0 : index
    %c0_43 = arith.constant 0 : index
    %59 = vector.load %arg4[%c0_42, %c0_43] : memref<1x240xf32, #tpu.memory_space<vmem>>, vector<1x240xf32>
    %60 = vector.broadcast %59 : vector<1x240xf32> to vector<24x240xf32>
    %61 = arith.addf %53, %60 : vector<24x240xf32>
    %cst_44 = arith.constant 0.000000e+00 : f32
    %62 = vector.broadcast %cst_44 : f32 to vector<24x240xf32>
    %63 = arith.maximumf %61, %62 : vector<24x240xf32>
    %64 = arith.maximumf %58, %63 : vector<24x240xf32>
    %c0_45 = arith.constant 0 : index
    %c0_46 = arith.constant 0 : index
    %65 = vector.load %arg5[%c0_45, %c0_46] : memref<12x24xf32, #tpu.memory_space<vmem>>, vector<12x24xf32>
    %cst_47 = arith.constant dense<0.000000e+00> : vector<12x240xf32>
    %66 = tpu.matmul %65, %64, %cst_47 {dimension_numbers = #tpu.dot_dimension_numbers<[1], [0], [0], [1], [0, 0, 1, 1], [], []>} : vector<12x24xf32>, vector<24x240xf32>, vector<12x240xf32> -> vector<12x240xf32>
    %c0_48 = arith.constant 0 : index
    %c0_49 = arith.constant 0 : index
    %67 = vector.load %arg6[%c0_48, %c0_49] : memref<12x24xf32, #tpu.memory_space<vmem>>, vector<12x24xf32>
    %cst_50 = arith.constant dense<0.000000e+00> : vector<12x240xf32>
    %68 = tpu.matmul %67, %64, %cst_50 {dimension_numbers = #tpu.dot_dimension_numbers<[1], [0], [0], [1], [0, 0, 1, 1], [], []>} : vector<12x24xf32>, vector<24x240xf32>, vector<12x240xf32> -> vector<12x240xf32>
    %69 = arith.maximumf %66, %68 : vector<12x240xf32>
    %cst_51 = arith.constant 0.000000e+00 : f32
    %70 = vector.broadcast %cst_51 : f32 to vector<8x200xf32>
    %cst_52 = arith.constant 0.000000e+00 : f32
    %71 = vector.broadcast %cst_52 : f32 to vector<8x200xf32>
    %72 = vector.extract_strided_slice %69 {offsets = [0, 0], sizes = [8, 240], strides = [1, 1]} : vector<12x240xf32> to vector<8x240xf32>
    %73 = arith.truncf %72 : vector<8x240xf32> to vector<8x240xbf16>
    %c0_53 = arith.constant 0 : index
    %c0_54 = arith.constant 0 : index
    %c0_55 = arith.constant 0 : index
    %74 = vector.load %arg7[%c0_53, %c0_54, %c0_55] : memref<5x240x200xbf16, #tpu.memory_space<vmem>>, vector<1x240x200xbf16>
    %75 = vector.shape_cast %74 : vector<1x240x200xbf16> to vector<240x200xbf16>
    %cst_56 = arith.constant dense<0.000000e+00> : vector<8x200xf32>
    %76 = tpu.matmul %73, %75, %cst_56 {dimension_numbers = #tpu.dot_dimension_numbers<[1], [0], [0], [1], [0, 0, 1, 1], [], []>} : vector<8x240xbf16>, vector<240x200xbf16>, vector<8x200xf32> -> vector<8x200xf32>
    %77 = arith.addf %70, %76 : vector<8x200xf32>
    %c0_57 = arith.constant 0 : index
    %c0_58 = arith.constant 0 : index
    %c0_59 = arith.constant 0 : index
    %78 = vector.load %arg8[%c0_57, %c0_58, %c0_59] : memref<5x240x200xbf16, #tpu.memory_space<vmem>>, vector<1x240x200xbf16>
    %79 = vector.shape_cast %78 : vector<1x240x200xbf16> to vector<240x200xbf16>
    %cst_60 = arith.constant dense<0.000000e+00> : vector<8x200xf32>
    %80 = tpu.matmul %73, %79, %cst_60 {dimension_numbers = #tpu.dot_dimension_numbers<[1], [0], [0], [1], [0, 0, 1, 1], [], []>} : vector<8x240xbf16>, vector<240x200xbf16>, vector<8x200xf32> -> vector<8x200xf32>
    %81 = arith.addf %71, %80 : vector<8x200xf32>
    %82 = vector.extract_strided_slice %69 {offsets = [1, 0], sizes = [8, 240], strides = [1, 1]} : vector<12x240xf32> to vector<8x240xf32>
    %83 = arith.truncf %82 : vector<8x240xf32> to vector<8x240xbf16>
    %c1_61 = arith.constant 1 : index
    %c0_62 = arith.constant 0 : index
    %c0_63 = arith.constant 0 : index
    %84 = vector.load %arg7[%c1_61, %c0_62, %c0_63] : memref<5x240x200xbf16, #tpu.memory_space<vmem>>, vector<1x240x200xbf16>
    %85 = vector.shape_cast %84 : vector<1x240x200xbf16> to vector<240x200xbf16>
    %cst_64 = arith.constant dense<0.000000e+00> : vector<8x200xf32>
    %86 = tpu.matmul %83, %85, %cst_64 {dimension_numbers = #tpu.dot_dimension_numbers<[1], [0], [0], [1], [0, 0, 1, 1], [], []>} : vector<8x240xbf16>, vector<240x200xbf16>, vector<8x200xf32> -> vector<8x200xf32>
    %87 = arith.addf %77, %86 : vector<8x200xf32>
    %c1_65 = arith.constant 1 : index
    %c0_66 = arith.constant 0 : index
    %c0_67 = arith.constant 0 : index
    %88 = vector.load %arg8[%c1_65, %c0_66, %c0_67] : memref<5x240x200xbf16, #tpu.memory_space<vmem>>, vector<1x240x200xbf16>
    %89 = vector.shape_cast %88 : vector<1x240x200xbf16> to vector<240x200xbf16>
    %cst_68 = arith.constant dense<0.000000e+00> : vector<8x200xf32>
    %90 = tpu.matmul %83, %89, %cst_68 {dimension_numbers = #tpu.dot_dimension_numbers<[1], [0], [0], [1], [0, 0, 1, 1], [], []>} : vector<8x240xbf16>, vector<240x200xbf16>, vector<8x200xf32> -> vector<8x200xf32>
    %91 = arith.addf %81, %90 : vector<8x200xf32>
    %92 = vector.extract_strided_slice %69 {offsets = [2, 0], sizes = [8, 240], strides = [1, 1]} : vector<12x240xf32> to vector<8x240xf32>
    %93 = arith.truncf %92 : vector<8x240xf32> to vector<8x240xbf16>
    %c2_69 = arith.constant 2 : index
    %c0_70 = arith.constant 0 : index
    %c0_71 = arith.constant 0 : index
    %94 = vector.load %arg7[%c2_69, %c0_70, %c0_71] : memref<5x240x200xbf16, #tpu.memory_space<vmem>>, vector<1x240x200xbf16>
    %95 = vector.shape_cast %94 : vector<1x240x200xbf16> to vector<240x200xbf16>
    %cst_72 = arith.constant dense<0.000000e+00> : vector<8x200xf32>
    %96 = tpu.matmul %93, %95, %cst_72 {dimension_numbers = #tpu.dot_dimension_numbers<[1], [0], [0], [1], [0, 0, 1, 1], [], []>} : vector<8x240xbf16>, vector<240x200xbf16>, vector<8x200xf32> -> vector<8x200xf32>
    %97 = arith.addf %87, %96 : vector<8x200xf32>
    %c2_73 = arith.constant 2 : index
    %c0_74 = arith.constant 0 : index
    %c0_75 = arith.constant 0 : index
    %98 = vector.load %arg8[%c2_73, %c0_74, %c0_75] : memref<5x240x200xbf16, #tpu.memory_space<vmem>>, vector<1x240x200xbf16>
    %99 = vector.shape_cast %98 : vector<1x240x200xbf16> to vector<240x200xbf16>
    %cst_76 = arith.constant dense<0.000000e+00> : vector<8x200xf32>
    %100 = tpu.matmul %93, %99, %cst_76 {dimension_numbers = #tpu.dot_dimension_numbers<[1], [0], [0], [1], [0, 0, 1, 1], [], []>} : vector<8x240xbf16>, vector<240x200xbf16>, vector<8x200xf32> -> vector<8x200xf32>
    %101 = arith.addf %91, %100 : vector<8x200xf32>
    %102 = vector.extract_strided_slice %69 {offsets = [3, 0], sizes = [8, 240], strides = [1, 1]} : vector<12x240xf32> to vector<8x240xf32>
    %103 = arith.truncf %102 : vector<8x240xf32> to vector<8x240xbf16>
    %c3_77 = arith.constant 3 : index
    %c0_78 = arith.constant 0 : index
    %c0_79 = arith.constant 0 : index
    %104 = vector.load %arg7[%c3_77, %c0_78, %c0_79] : memref<5x240x200xbf16, #tpu.memory_space<vmem>>, vector<1x240x200xbf16>
    %105 = vector.shape_cast %104 : vector<1x240x200xbf16> to vector<240x200xbf16>
    %cst_80 = arith.constant dense<0.000000e+00> : vector<8x200xf32>
    %106 = tpu.matmul %103, %105, %cst_80 {dimension_numbers = #tpu.dot_dimension_numbers<[1], [0], [0], [1], [0, 0, 1, 1], [], []>} : vector<8x240xbf16>, vector<240x200xbf16>, vector<8x200xf32> -> vector<8x200xf32>
    %107 = arith.addf %97, %106 : vector<8x200xf32>
    %c3_81 = arith.constant 3 : index
    %c0_82 = arith.constant 0 : index
    %c0_83 = arith.constant 0 : index
    %108 = vector.load %arg8[%c3_81, %c0_82, %c0_83] : memref<5x240x200xbf16, #tpu.memory_space<vmem>>, vector<1x240x200xbf16>
    %109 = vector.shape_cast %108 : vector<1x240x200xbf16> to vector<240x200xbf16>
    %cst_84 = arith.constant dense<0.000000e+00> : vector<8x200xf32>
    %110 = tpu.matmul %103, %109, %cst_84 {dimension_numbers = #tpu.dot_dimension_numbers<[1], [0], [0], [1], [0, 0, 1, 1], [], []>} : vector<8x240xbf16>, vector<240x200xbf16>, vector<8x200xf32> -> vector<8x200xf32>
    %111 = arith.addf %101, %110 : vector<8x200xf32>
    %112 = vector.extract_strided_slice %69 {offsets = [4, 0], sizes = [8, 240], strides = [1, 1]} : vector<12x240xf32> to vector<8x240xf32>
    %113 = arith.truncf %112 : vector<8x240xf32> to vector<8x240xbf16>
    %c4_85 = arith.constant 4 : index
    %c0_86 = arith.constant 0 : index
    %c0_87 = arith.constant 0 : index
    %114 = vector.load %arg7[%c4_85, %c0_86, %c0_87] : memref<5x240x200xbf16, #tpu.memory_space<vmem>>, vector<1x240x200xbf16>
    %115 = vector.shape_cast %114 : vector<1x240x200xbf16> to vector<240x200xbf16>
    %cst_88 = arith.constant dense<0.000000e+00> : vector<8x200xf32>
    %116 = tpu.matmul %113, %115, %cst_88 {dimension_numbers = #tpu.dot_dimension_numbers<[1], [0], [0], [1], [0, 0, 1, 1], [], []>} : vector<8x240xbf16>, vector<240x200xbf16>, vector<8x200xf32> -> vector<8x200xf32>
    %117 = arith.addf %107, %116 : vector<8x200xf32>
    %c4_89 = arith.constant 4 : index
    %c0_90 = arith.constant 0 : index
    %c0_91 = arith.constant 0 : index
    %118 = vector.load %arg8[%c4_89, %c0_90, %c0_91] : memref<5x240x200xbf16, #tpu.memory_space<vmem>>, vector<1x240x200xbf16>
    %119 = vector.shape_cast %118 : vector<1x240x200xbf16> to vector<240x200xbf16>
    %cst_92 = arith.constant dense<0.000000e+00> : vector<8x200xf32>
    %120 = tpu.matmul %113, %119, %cst_92 {dimension_numbers = #tpu.dot_dimension_numbers<[1], [0], [0], [1], [0, 0, 1, 1], [], []>} : vector<8x240xbf16>, vector<240x200xbf16>, vector<8x200xf32> -> vector<8x200xf32>
    %121 = arith.addf %111, %120 : vector<8x200xf32>
    %c0_93 = arith.constant 0 : index
    %c0_94 = arith.constant 0 : index
    %122 = vector.load %arg9[%c0_93, %c0_94] : memref<1x200xf32, #tpu.memory_space<vmem>>, vector<1x200xf32>
    %123 = vector.broadcast %122 : vector<1x200xf32> to vector<8x200xf32>
    %124 = arith.addf %117, %123 : vector<8x200xf32>
    %cst_95 = arith.constant 0.000000e+00 : f32
    %125 = vector.broadcast %cst_95 : f32 to vector<8x200xf32>
    %126 = arith.maximumf %124, %125 : vector<8x200xf32>
    %c0_96 = arith.constant 0 : index
    %c0_97 = arith.constant 0 : index
    %127 = vector.load %arg9[%c0_96, %c0_97] : memref<1x200xf32, #tpu.memory_space<vmem>>, vector<1x200xf32>
    %128 = vector.broadcast %127 : vector<1x200xf32> to vector<8x200xf32>
    %129 = arith.addf %121, %128 : vector<8x200xf32>
    %cst_98 = arith.constant 0.000000e+00 : f32
    %130 = vector.broadcast %cst_98 : f32 to vector<8x200xf32>
    %131 = arith.maximumf %129, %130 : vector<8x200xf32>
    %132 = arith.maximumf %126, %131 : vector<8x200xf32>
    %c0_99 = arith.constant 0 : index
    %c0_100 = arith.constant 0 : index
    %133 = vector.load %arg10[%c0_99, %c0_100] : memref<4x8xf32, #tpu.memory_space<vmem>>, vector<4x8xf32>
    %cst_101 = arith.constant dense<0.000000e+00> : vector<4x200xf32>
    %134 = tpu.matmul %133, %132, %cst_101 {dimension_numbers = #tpu.dot_dimension_numbers<[1], [0], [0], [1], [0, 0, 1, 1], [], []>} : vector<4x8xf32>, vector<8x200xf32>, vector<4x200xf32> -> vector<4x200xf32>
    %c0_102 = arith.constant 0 : index
    %c0_103 = arith.constant 0 : index
    %135 = vector.load %arg11[%c0_102, %c0_103] : memref<4x8xf32, #tpu.memory_space<vmem>>, vector<4x8xf32>
    %cst_104 = arith.constant dense<0.000000e+00> : vector<4x200xf32>
    %136 = tpu.matmul %135, %132, %cst_104 {dimension_numbers = #tpu.dot_dimension_numbers<[1], [0], [0], [1], [0, 0, 1, 1], [], []>} : vector<4x8xf32>, vector<8x200xf32>, vector<4x200xf32> -> vector<4x200xf32>
    %137 = arith.maximumf %134, %136 : vector<4x200xf32>
    %cst_105 = arith.constant 0.000000e+00 : f32
    %138 = vector.broadcast %cst_105 : f32 to vector<1x500xf32>
    %139 = vector.extract_strided_slice %137 {offsets = [0, 0], sizes = [1, 200], strides = [1, 1]} : vector<4x200xf32> to vector<1x200xf32>
    %140 = arith.truncf %139 : vector<1x200xf32> to vector<1x200xbf16>
    %c0_106 = arith.constant 0 : index
    %c0_107 = arith.constant 0 : index
    %c0_108 = arith.constant 0 : index
    %141 = vector.load %arg12[%c0_106, %c0_107, %c0_108] : memref<4x200x500xbf16, #tpu.memory_space<vmem>>, vector<1x200x500xbf16>
    %142 = vector.shape_cast %141 : vector<1x200x500xbf16> to vector<200x500xbf16>
    %cst_109 = arith.constant dense<0.000000e+00> : vector<1x500xf32>
    %143 = tpu.matmul %140, %142, %cst_109 {dimension_numbers = #tpu.dot_dimension_numbers<[1], [0], [0], [1], [0, 0, 1, 1], [], []>} : vector<1x200xbf16>, vector<200x500xbf16>, vector<1x500xf32> -> vector<1x500xf32>
    %144 = arith.addf %138, %143 : vector<1x500xf32>
    %145 = vector.extract_strided_slice %137 {offsets = [1, 0], sizes = [1, 200], strides = [1, 1]} : vector<4x200xf32> to vector<1x200xf32>
    %146 = arith.truncf %145 : vector<1x200xf32> to vector<1x200xbf16>
    %c1_110 = arith.constant 1 : index
    %c0_111 = arith.constant 0 : index
    %c0_112 = arith.constant 0 : index
    %147 = vector.load %arg12[%c1_110, %c0_111, %c0_112] : memref<4x200x500xbf16, #tpu.memory_space<vmem>>, vector<1x200x500xbf16>
    %148 = vector.shape_cast %147 : vector<1x200x500xbf16> to vector<200x500xbf16>
    %cst_113 = arith.constant dense<0.000000e+00> : vector<1x500xf32>
    %149 = tpu.matmul %146, %148, %cst_113 {dimension_numbers = #tpu.dot_dimension_numbers<[1], [0], [0], [1], [0, 0, 1, 1], [], []>} : vector<1x200xbf16>, vector<200x500xbf16>, vector<1x500xf32> -> vector<1x500xf32>
    %150 = arith.addf %144, %149 : vector<1x500xf32>
    %151 = vector.extract_strided_slice %137 {offsets = [2, 0], sizes = [1, 200], strides = [1, 1]} : vector<4x200xf32> to vector<1x200xf32>
    %152 = arith.truncf %151 : vector<1x200xf32> to vector<1x200xbf16>
    %c2_114 = arith.constant 2 : index
    %c0_115 = arith.constant 0 : index
    %c0_116 = arith.constant 0 : index
    %153 = vector.load %arg12[%c2_114, %c0_115, %c0_116] : memref<4x200x500xbf16, #tpu.memory_space<vmem>>, vector<1x200x500xbf16>
    %154 = vector.shape_cast %153 : vector<1x200x500xbf16> to vector<200x500xbf16>
    %cst_117 = arith.constant dense<0.000000e+00> : vector<1x500xf32>
    %155 = tpu.matmul %152, %154, %cst_117 {dimension_numbers = #tpu.dot_dimension_numbers<[1], [0], [0], [1], [0, 0, 1, 1], [], []>} : vector<1x200xbf16>, vector<200x500xbf16>, vector<1x500xf32> -> vector<1x500xf32>
    %156 = arith.addf %150, %155 : vector<1x500xf32>
    %157 = vector.extract_strided_slice %137 {offsets = [3, 0], sizes = [1, 200], strides = [1, 1]} : vector<4x200xf32> to vector<1x200xf32>
    %158 = arith.truncf %157 : vector<1x200xf32> to vector<1x200xbf16>
    %c3_118 = arith.constant 3 : index
    %c0_119 = arith.constant 0 : index
    %c0_120 = arith.constant 0 : index
    %159 = vector.load %arg12[%c3_118, %c0_119, %c0_120] : memref<4x200x500xbf16, #tpu.memory_space<vmem>>, vector<1x200x500xbf16>
    %160 = vector.shape_cast %159 : vector<1x200x500xbf16> to vector<200x500xbf16>
    %cst_121 = arith.constant dense<0.000000e+00> : vector<1x500xf32>
    %161 = tpu.matmul %158, %160, %cst_121 {dimension_numbers = #tpu.dot_dimension_numbers<[1], [0], [0], [1], [0, 0, 1, 1], [], []>} : vector<1x200xbf16>, vector<200x500xbf16>, vector<1x500xf32> -> vector<1x500xf32>
    %162 = arith.addf %156, %161 : vector<1x500xf32>
    %c0_122 = arith.constant 0 : index
    %c0_123 = arith.constant 0 : index
    %163 = vector.load %arg13[%c0_122, %c0_123] : memref<1x500xf32, #tpu.memory_space<vmem>>, vector<1x500xf32>
    %164 = arith.addf %162, %163 : vector<1x500xf32>
    %cst_124 = arith.constant 0.000000e+00 : f32
    %165 = vector.broadcast %cst_124 : f32 to vector<1x500xf32>
    %166 = arith.maximumf %164, %165 : vector<1x500xf32>
    %167 = arith.truncf %166 : vector<1x500xf32> to vector<1x500xbf16>
    %c0_125 = arith.constant 0 : index
    %c0_126 = arith.constant 0 : index
    %168 = vector.load %arg14[%c0_125, %c0_126] : memref<500x10xbf16, #tpu.memory_space<vmem>>, vector<500x10xbf16>
    %cst_127 = arith.constant dense<0.000000e+00> : vector<1x10xf32>
    %169 = tpu.matmul %167, %168, %cst_127 {dimension_numbers = #tpu.dot_dimension_numbers<[1], [0], [0], [1], [0, 0, 1, 1], [], []>} : vector<1x500xbf16>, vector<500x10xbf16>, vector<1x10xf32> -> vector<1x10xf32>
    %c0_128 = arith.constant 0 : index
    %c0_129 = arith.constant 0 : index
    %170 = vector.load %arg15[%c0_128, %c0_129] : memref<1x10xf32, #tpu.memory_space<vmem>>, vector<1x10xf32>
    %171 = arith.addf %169, %170 : vector<1x10xf32>
    %c0_130 = arith.constant 0 : index
    %c0_131 = arith.constant 0 : index
    %c0_132 = arith.constant 0 : index
    %172 = vector.load %arg16[%c0_130, %c0_131, %c0_132] : memref<1x1x10xf32, #tpu.memory_space<vmem>>, vector<1x1x10xf32>
    %173 = vector.shape_cast %172 : vector<1x1x10xf32> to vector<1x10xf32>
    %174 = vector.shape_cast %171 : vector<1x10xf32> to vector<1x1x10xf32>
    tpu.vector_store %arg16[%c0_130, %c0_131, %c0_132], %174 {strides = array<i32>} : memref<1x1x10xf32, #tpu.memory_space<vmem>>, vector<1x1x10xf32>,
    return
  }
  func.func @transform_0(%arg0: i32) -> (i32, i32, i32) {
    %c0_i32 = arith.constant 0 : i32
    %c0_i32_0 = arith.constant 0 : i32
    %c0_i32_1 = arith.constant 0 : i32
    return %arg0, %c0_i32, %c0_i32_0 : i32, i32, i32
  }
  func.func @transform_1(%arg0: i32) -> (i32, i32, i32) {
    %c0_i32 = arith.constant 0 : i32
    %c0_i32_0 = arith.constant 0 : i32
    %c0_i32_1 = arith.constant 0 : i32
    %c0_i32_2 = arith.constant 0 : i32
    return %c0_i32, %c0_i32_0, %c0_i32_1 : i32, i32, i32
  }
  func.func @transform_2(%arg0: i32) -> (i32, i32, i32) {
    %c0_i32 = arith.constant 0 : i32
    %c0_i32_0 = arith.constant 0 : i32
    %c0_i32_1 = arith.constant 0 : i32
    %c0_i32_2 = arith.constant 0 : i32
    return %c0_i32, %c0_i32_0, %c0_i32_1 : i32, i32, i32
  }
  func.func @transform_3(%arg0: i32) -> (i32, i32) {
    %c0_i32 = arith.constant 0 : i32
    %c0_i32_0 = arith.constant 0 : i32
    %c0_i32_1 = arith.constant 0 : i32
    return %c0_i32, %c0_i32_0 : i32, i32
  }
  func.func @transform_4(%arg0: i32) -> (i32, i32) {
    %c0_i32 = arith.constant 0 : i32
    %c0_i32_0 = arith.constant 0 : i32
    %c0_i32_1 = arith.constant 0 : i32
    return %c0_i32, %c0_i32_0 : i32, i32
  }
  func.func @transform_5(%arg0: i32) -> (i32, i32) {
    %c0_i32 = arith.constant 0 : i32
    %c0_i32_0 = arith.constant 0 : i32
    %c0_i32_1 = arith.constant 0 : i32
    return %c0_i32, %c0_i32_0 : i32, i32
  }
  func.func @transform_6(%arg0: i32) -> (i32, i32, i32) {
    %c0_i32 = arith.constant 0 : i32
    %c0_i32_0 = arith.constant 0 : i32
    %c0_i32_1 = arith.constant 0 : i32
    %c0_i32_2 = arith.constant 0 : i32
    return %c0_i32, %c0_i32_0, %c0_i32_1 : i32, i32, i32
  }
  func.func @transform_7(%arg0: i32) -> (i32, i32, i32) {
    %c0_i32 = arith.constant 0 : i32
    %c0_i32_0 = arith.constant 0 : i32
    %c0_i32_1 = arith.constant 0 : i32
    %c0_i32_2 = arith.constant 0 : i32
    return %c0_i32, %c0_i32_0, %c0_i32_1 : i32, i32, i32
  }
  func.func @transform_8(%arg0: i32) -> (i32, i32) {
    %c0_i32 = arith.constant 0 : i32
    %c0_i32_0 = arith.constant 0 : i32
    %c0_i32_1 = arith.constant 0 : i32
    return %c0_i32, %c0_i32_0 : i32, i32
  }
  func.func @transform_9(%arg0: i32) -> (i32, i32) {
    %c0_i32 = arith.constant 0 : i32
    %c0_i32_0 = arith.constant 0 : i32
    %c0_i32_1 = arith.constant 0 : i32
    return %c0_i32, %c0_i32_0 : i32, i32
  }
  func.func @transform_10(%arg0: i32) -> (i32, i32) {
    %c0_i32 = arith.constant 0 : i32
    %c0_i32_0 = arith.constant 0 : i32
    %c0_i32_1 = arith.constant 0 : i32
    return %c0_i32, %c0_i32_0 : i32, i32
  }
  func.func @transform_11(%arg0: i32) -> (i32, i32, i32) {
    %c0_i32 = arith.constant 0 : i32
    %c0_i32_0 = arith.constant 0 : i32
    %c0_i32_1 = arith.constant 0 : i32
    %c0_i32_2 = arith.constant 0 : i32
    return %c0_i32, %c0_i32_0, %c0_i32_1 : i32, i32, i32
  }
  func.func @transform_12(%arg0: i32) -> (i32, i32) {
    %c0_i32 = arith.constant 0 : i32
    %c0_i32_0 = arith.constant 0 : i32
    %c0_i32_1 = arith.constant 0 : i32
    return %c0_i32, %c0_i32_0 : i32, i32
  }
  func.func @transform_13(%arg0: i32) -> (i32, i32) {
    %c0_i32 = arith.constant 0 : i32
    %c0_i32_0 = arith.constant 0 : i32
    %c0_i32_1 = arith.constant 0 : i32
    return %c0_i32, %c0_i32_0 : i32, i32
  }
  func.func @transform_14(%arg0: i32) -> (i32, i32) {
    %c0_i32 = arith.constant 0 : i32
    %c0_i32_0 = arith.constant 0 : i32
    %c0_i32_1 = arith.constant 0 : i32
    return %c0_i32, %c0_i32_0 : i32, i32
  }
  func.func @transform_15(%arg0: i32) -> (i32, i32, i32) {
    %c0_i32 = arith.constant 0 : i32
    %c0_i32_0 = arith.constant 0 : i32
    %c0_i32_1 = arith.constant 0 : i32
    return %arg0, %c0_i32, %c0_i32_0 : i32, i32, i32
  }
}

</mosaic_0001>

<bundles_post_ra>
// kernel: lenet5_caffe_forward.1
= control target key start
LH: loop header
LB: loop body
LE: loop exit
PB: predicated region body
PF: predicated region fallthrough
CT: control target
= control target key end

     0   :  { %s13391_s0 = inlined_call_operand.vmem [shape: f32[2,28,28], index: 0, kind: input, shape index: {}]   ;;  %s13392_s1 = inlined_call_operand.vmem [shape: bf16[5,28,240], index: 1, kind: input, shape index: {}]   ;;  %s13393_s2 = inlined_call_operand.vmem [shape: bf16[5,28,240], index: 2, kind: input, shape index: {}]   ;;  %s13394_s3 = inlined_call_operand.vmem [shape: f32[1,240], index: 3, kind: input, shape index: {}]   ;;  %s13395_s4 = inlined_call_operand.vmem [shape: f32[12,24], index: 4, kind: input, shape index: {}]   ;;  %s13396_s5 = inlined_call_operand.vmem [shape: f32[12,24], index: 5, kind: input, shape index: {}]   ;;  %s13397_s6 = inlined_call_operand.vmem [shape: bf16[5,240,200], index: 6, kind: input, shape index: {}]   ;;  %s13398_s7 = inlined_call_operand.vmem [shape: bf16[5,240,200], index: 7, kind: input, shape index: {}]   ;;  %s13399_s8 = inlined_call_operand.vmem [shape: f32[1,200], index: 8, kind: input, shape index: {}]   ;;  %s13400_s9 = inlined_call_operand.vmem [shape: f32[4,8], index: 9, kind: input, shape index: {}]   ;;  %s13401_s10 = inlined_call_operand.vmem [shape: f32[4,8], index: 10, kind: input, shape index: {}]   ;;  %s13402_s11 = inlined_call_operand.vmem [shape: bf16[4,200,500], index: 11, kind: input, shape index: {}]   ;;  %s13403_s12 = inlined_call_operand.vmem [shape: f32[1,500], index: 12, kind: input, shape index: {}]   ;;  %s13404_s13 = inlined_call_operand.vmem [shape: bf16[500,10], index: 13, kind: input, shape index: {}]   ;;  %s13405_s14 = inlined_call_operand.vmem [shape: f32[1,10], index: 14, kind: input, shape index: {}]   ;;  %s13406_s15 = inlined_call_operand.hbm [shape: f32[2,1,10], index: 15, kind: output, shape index: {}]  }
   0x1   :  { %13413 = sst [smem:[#allocation11_spill]] %s13391_s0 }
   0x2   :  { %20 = vsyncpa [#allocation3], 0 }
   0x3   :  { %22 = vsyncpa [#allocation3 + $0x1], 0  ;;  %s9523_s18 = smov 0   ;;  %s9525_s19 = smov 0  }
   0x4   :  { %s9527_s20 = smov 0   ;;  %s9529_s21 = smov 0  }
   0x5 LB: > { %13414 = sst [smem:[#allocation5_spill]] %s9429_s18  ;;  %s9544_s22 = sadd.s32 4294967295, %s9441_s21   ;;  %s9441_s21 = sphi %s9529_s21, %s13426_s21   ;;  %s9437_s20 = sphi %s9527_s20, %s13428_s20   ;;  %s9433_s19 = sphi %s9525_s19, %s13430_s19   ;;  %s9429_s18 = sphi %s9523_s18, %s13429_s18  }
   0x6   : > { %13415 = sst [smem:[#allocation6_spill]] %s9437_s20  ;;  %s6005_s23 = sadd.s32 4294967294, %s9441_s21  }
   0x7   : > { %13416 = sst [smem:[#allocation7_spill]] %s9441_s21  ;;  %s9548_s24 = sadd.s32 1, %s9441_s21  }
   0x8   : > { %13417 = sst [smem:[#allocation8_spill]] %s9548_s24  ;;  %s355_s25 = sadd.s32 1, %s9437_s20 }
   0x9   : > { %s352_s26 = ssub.s32 %s9441_s21, %s9548_s24  ;;  %p365_p0 = scmp.ne.s32.totalorder %s9437_s20, %s9433_s19 }
   0xa   : > { %p353_p1 = scmp.eq.s32.totalorder %s352_s26, 0  ;;  %p366_p2 = scmp.eq.s32.totalorder %s9544_s22, 1 }
   0xb   : > { %p371_p3 = scmp.ne.s32.totalorder %s9433_s19, %s9429_s18  ;;  %p372_p4 = scmp.eq.s32.totalorder %s6005_s23, 1 }
   0xc   : > { %s9559_s27 = scalar_select %p353_p1, %s9437_s20, %s355_s25  }
   0xd   : > { %p9561_p5 = por %p366_p2, %p365_p0  ;;  %p9565_p6 = por %p372_p4, %p371_p3 }
   0xe   : > { %13418 = sst [smem:[#allocation9_spill]] %s9559_s27  ;;  %p6008_p7 = scmp.ge.s32.totalorder %s9441_s21, 1 }
   0xf   : > { %s13420_s29 = scalar_select %p9565_p6, 1, 0 }
  0x10   : > { %p440_p8 = scmp.lt.s32.totalorder %s9441_s21, 3 }
  0x11   : > { %13421 = sst [smem:[#allocation10_spill]] %s13420_s29 }
  0x12   : > { %p441_p9 = pnand %p6008_p7, %p440_p8 }
  0x13   : > { %p487_p10 = scmp.lt.s32.totalorder (!%p441_p9), %s9544_s22, 1  ;;  %s13422_s0 = sld [smem:[#allocation11_spill]] (!%p441_p9) }
  0x14   : > { %444 = sbr.rel (%p441_p9) target bundleno = 1439 (0x59f), region = 80  ;;  %s5946_s20 = scalar_lea.hbm (!%p441_p9), %s13406_s15, %s9544_s22 }
  0x15   : > { %s5950_s26 = sshll.u32 (!%p441_p9), %s5946_s20, 4  ;;  %s5951_s26 = int_to_ptr.hbm [resolvable:$true] %s5950_s26 }
  0x19   : > { %v6045_v0 = vld [vmem:[%s13392_s1 + $0x10] sm:$0xf]  ;;  %v8780_v1 = vld [vmem:[%s13392_s1 + $0x14] sm:$0x30]  ;;  %vm554_vm0 = vcmask 1045504   ;;  %s488_s29 = scalar_select %p487_p10, %s9544_s22, 1 }
  0x1a   : > { %v6046_v2 = vor.u32 %v8780_v1, %v6045_v0  ;;  %v8779_v3 = vld [vmem:[%s13392_s1 + $0x14] sm:$0xf]  ;;  %v6047_v4 = vld [vmem:[%s13392_s1 + $0x18] sm:$0x30]  ;;  %v6037_v5 = vld [vmem:[%s13392_s1] sm:$0xf] }
  0x1b   : > { %v6050_v6 = vor.u32 %v8779_v3, %v6047_v4  ;;  %v8778_v7 = vld [vmem:[%s13392_s1 + $0x4] sm:$0xf0]  ;;  %v8777_v8 = vld [vmem:[%s13392_s1 + $0x4] sm:$0xf]  ;;  %v6039_v9 = vld [vmem:[%s13392_s1 + $0x8] sm:$0xf0] }
  0x1c   : > { %v621_v10 = vsel %vm554_vm0, %v6046_v2, 0  ;;  %v6025_v11 = vld [vmem:[%s13392_s1 + $0x30] sm:$0xf]  ;;  %v8788_v12 = vld [vmem:[%s13392_s1 + $0x34] sm:$0x30]  ;;  %v6038_v14 = vor.u32 %v8778_v7, %v6037_v5  ;;  %v6042_v18 = vor.u32 %v8777_v8, %v6039_v9  ;;  %s8776_s23 = sshll.u32 %s488_s29, 5 }
  0x1d   : > { %632 = vmatpush.bf16.msra.mxu2 %v621_v10  ;;  %v624_v13 = vsel %vm554_vm0, %v6050_v6, 0  ;;  %v6026_v15 = vor.u32 %v8788_v12, %v6025_v11  ;;  %v8787_v16 = vld [vmem:[%s13392_s1 + $0x34] sm:$0xf]  ;;  %v6027_v17 = vld [vmem:[%s13392_s1 + $0x38] sm:$0x30]  ;;  %s491_s16 = scalar_lea.vmem %s13422_s0, %s8776_s23  ;;  %vm547_vm1 = vcmask 228352  }
  0x1e   : > { %650 = vmatpush.bf16.msra.mxu3 %v624_v13  ;;  %v6030_v19 = vor.u32 %v8787_v16, %v6027_v17  ;;  %v6017_v20 = vld [vmem:[%s13392_s1 + $0x20] sm:$0xf]  ;;  %v8786_v21 = vld [vmem:[%s13392_s1 + $0x24] sm:$0xf0]  ;;  %v8785_v23 = vld [vmem:[%s13392_s1 + $0x24] sm:$0xf] }
  0x1f   : > { %v556_v22 = vsel %vm554_vm0, %v6026_v15, 0  ;;  %v6019_v24 = vld [vmem:[%s13392_s1 + $0x28] sm:$0xf0]  ;;  %v493_v26 = vld [vmem:[%s491_s16] sm:$0xff]  ;;  %v6018_v28 = vor.u32 %v8786_v21, %v6017_v20  ;;  %v495_v29 = vld [vmem:[%s491_s16 + $0x10] sm:$0xff]  ;;  %vm794_vm3 = vcmask 1046528  }
  0x20   : > { %567 = vmatpush.bf16.msra.mxu0 %v556_v22  ;;  %v559_v25 = vsel %vm554_vm0, %v6030_v19, 0  ;;  %v494_v27 = vld [vmem:[%s491_s16 + $0x8] sm:$0xff]  ;;  %v6022_v31 = vor.u32 %v8785_v23, %v6019_v24  ;;  %v496_v32 = vld [vmem:[%s491_s16 + $0x18] sm:$0xf]  ;;  %v6089_v33 = vld [vmem:[%s13393_s2 + $0x10] sm:$0xf]  ;;  %v498_v9 = vpack.c.bf16 %v495_v29, %v495_v29 }
  0x21   : > { %633 = vmatpush.bf16.msra.mxu2 %v6038_v14  ;;  %585 = vmatpush.bf16.msra.mxu1 %v559_v25  ;;  %v9628_v30 = vpack.c.bf16 %v494_v27, %v493_v26  ;;  %v8784_v34 = vld [vmem:[%s13393_s2 + $0x14] sm:$0x30]  ;;  %v9636_v35 = vpack.c.bf16 %v496_v32, %v495_v29  ;;  %v8783_v37 = vld [vmem:[%s13393_s2 + $0x14] sm:$0xf]  ;;  %v6091_v38 = vld [vmem:[%s13393_s2 + $0x18] sm:$0x30] }
  0x22   : > { %651 = vmatpush.bf16.msra.mxu3 %v6042_v18  ;;  %v6090_v36 = vor.u32 %v8784_v34, %v6089_v33  ;;  %v6081_v39 = vld [vmem:[%s13393_s2] sm:$0xf]  ;;  %v6094_v42 = vor.u32 %v8783_v37, %v6091_v38  ;;  %v8782_v43 = vld [vmem:[%s13393_s2 + $0x4] sm:$0xf0]  ;;  %v8781_v44 = vld [vmem:[%s13393_s2 + $0x4] sm:$0xf] }
  0x23   : > { %v515_v40 = vshrl.u32 %v9628_v30, 16  ;;  %v517_v41 = vshll.u32 %v9628_v30, 16  ;;  %v522_v45 = vshll.u32 %v9636_v35, 16  ;;  %v526_v46 = vshrl.u32 %v9636_v35, 16  ;;  %v6083_v48 = vld [vmem:[%s13393_s2 + $0x8] sm:$0xf0] }
  0x24   : > { %6051 = vmatmul.msk.bf16.vlgmr.msra.gmra.mxu2 %vm547_vm1, %v9628_v30  ;;  %568 = vmatpush.bf16.msra.mxu0 %v6018_v28  ;;  %v746_v47 = vsel %vm554_vm0, %v6090_v36, 0  ;;  %vm513_vm2 = vsmask.f32 7424  ;;  %v749_v50 = vsel %vm554_vm0, %v6094_v42, 0  ;;  %v6069_v51 = vld [vmem:[%s13393_s2 + $0x30] sm:$0xf]  ;;  %v6082_v57 = vor.u32 %v8782_v43, %v6081_v39 }
  0x25   : > { %6053 = vmatmul.msk.bf16.vlgmr.msra.gmra.mxu3 %vm547_vm1, %v9628_v30  ;;  %586 = vmatpush.bf16.msra.mxu1 %v6022_v31  ;;  %v519_v49 = vrot.slane %v517_v41, 1  ;;  %v524_v52 = vrot.slane %v522_v45, 1  ;;  %v951_v53 = vrot.slane %v522_v45, 2  ;;  %v950_v54 = vrot.slane %v526_v46, 1  ;;  %v8792_v55 = vld [vmem:[%s13393_s2 + $0x34] sm:$0x30] }
  0x26   : > { %757 = vmatpush.bf16.msrb.mxu2 %v746_v47  ;;  %775 = vmatpush.bf16.msrb.mxu3 %v749_v50  ;;  %v6086_v58 = vor.u32 %v8781_v44, %v6083_v48  ;;  %v6070_v59 = vor.u32 %v8792_v55, %v6069_v51  ;;  %v8791_v60 = vld [vmem:[%s13393_s2 + $0x34] sm:$0xf]  ;;  %v6071_v61 = vld [vmem:[%s13393_s2 + $0x38] sm:$0x30]  ;;  %v6061_v0 = vld [vmem:[%s13393_s2 + $0x20] sm:$0xf] }
  0x27   : > { %v520_v56 = vor.u32 %v519_v49, %v515_v40  ;;  %v9682_v62 = vor.u32 %v951_v53, %v950_v54  ;;  %v6074_v63 = vor.u32 %v8791_v60, %v6071_v61  ;;  %v8790_v1 = vld [vmem:[%s13393_s2 + $0x24] sm:$0xf0]  ;;  %v8789_v4 = vld [vmem:[%s13393_s2 + $0x24] sm:$0xf]  ;;  %v6063_v5 = vld [vmem:[%s13393_s2 + $0x28] sm:$0xf0]  ;;  %v528_v10 = vor.u32 %v526_v46, %v524_v52 }
  0x28   : > { %v686_v3 = vsel %vm554_vm0, %v6070_v59, 0  ;;  %v6062_v7 = vor.u32 %v8790_v1, %v6061_v0  ;;  %v6066_v8 = vor.u32 %v8789_v4, %v6063_v5  ;;  %v6137_v11 = vld [vmem:[%s13393_s2 + $0x50] sm:$0xf]  ;;  %v8800_v12 = vld [vmem:[%s13393_s2 + $0x54] sm:$0x30]  ;;  %v947_v43 = vrot.slane %v515_v40, 1 }
  0x29   : > { %v525_v2 = vsel %vm513_vm2, %v520_v56, %v524_v52  ;;  %v689_v6 = vsel %vm554_vm0, %v6074_v63, 0  ;;  %697 = vmatpush.bf16.msrb.mxu0 %v686_v3  ;;  %v8799_v13 = vld [vmem:[%s13393_s2 + $0x54] sm:$0xf]  ;;  %v6138_v14 = vor.u32 %v8800_v12, %v6137_v11  ;;  %v6139_v15 = vld [vmem:[%s13393_s2 + $0x58] sm:$0x30]  ;;  %v795_v44 = vrot.slane %v9628_v30, 1 }
  0x2a   : > { %6031 = vmatmul.msk.bf16.vlgmr.msra.gmra.mxu0 %vm547_vm1, %v525_v2  ;;  %6033 = vmatmul.msk.bf16.vlgmr.msra.gmra.mxu1 %vm547_vm1, %v525_v2  ;;  %v6129_v16 = vld [vmem:[%s13393_s2 + $0x40] sm:$0xf]  ;;  %v8798_v17 = vld [vmem:[%s13393_s2 + $0x44] sm:$0xf0]  ;;  %v6142_v18 = vor.u32 %v8799_v13, %v6139_v15  ;;  %v8797_v19 = vld [vmem:[%s13393_s2 + $0x44] sm:$0xf] }
  0x2b   : > { %758 = vmatpush.bf16.msrb.mxu2 %v6082_v57  ;;  %776 = vmatpush.bf16.msrb.mxu3 %v6086_v58  ;;  %v6131_v20 = vld [vmem:[%s13393_s2 + $0x48] sm:$0xf0]  ;;  %v6113_v21 = vld [vmem:[%s13392_s1 + $0x50] sm:$0xf]  ;;  %v894_v22 = vsel %vm554_vm0, %v6138_v14, 0  ;;  %v6130_v26 = vor.u32 %v8798_v17, %v6129_v16  ;;  %v796_v45 = vrot.slane %v9636_v35, 1 }
  0x2c   : > { %715 = vmatpush.bf16.msrb.mxu1 %v689_v6  ;;  %v8796_v23 = vld [vmem:[%s13392_s1 + $0x54] sm:$0x30]  ;;  %v8795_v24 = vld [vmem:[%s13392_s1 + $0x54] sm:$0xf]  ;;  %v897_v25 = vsel %vm554_vm0, %v6142_v18, 0  ;;  %v6134_v29 = vor.u32 %v8797_v19, %v6131_v20  ;;  %v948_v59 = vrot.slane %v517_v41, 2 }
  0x2d   : > { %698 = vmatpush.bf16.msrb.mxu0 %v6062_v7  ;;  %v6114_v27 = vor.u32 %v8796_v23, %v6113_v21  ;;  %v6115_v28 = vld [vmem:[%s13392_s1 + $0x58] sm:$0x30]  ;;  %v6105_v34 = vld [vmem:[%s13392_s1 + $0x40] sm:$0xf]  ;;  %v8794_v36 = vld [vmem:[%s13392_s1 + $0x44] sm:$0xf0]  ;;  %v797_v5 = vsel %vm794_vm3, %v795_v44, %v796_v45 }
  0x2e   : > { %v6118_v31 = vor.u32 %v8795_v24, %v6115_v28  ;;  %v8793_v37 = vld [vmem:[%s13392_s1 + $0x44] sm:$0xf]  ;;  %v6106_v38 = vor.u32 %v8794_v36, %v6105_v34  ;;  %v6107_v39 = vld [vmem:[%s13392_s1 + $0x48] sm:$0xf0]  ;;  %v6185_v46 = vld [vmem:[%s13393_s2 + $0x70] sm:$0xf]  ;;  %v949_v3 = vor.u32 %v948_v59, %v947_v43 }
  0x2f   : > { %905 = vmatpush.bf16.msra.mxu2 %v894_v22  ;;  %923 = vmatpush.bf16.msra.mxu3 %v897_v25  ;;  %v823_v32 = vsel %vm554_vm0, %v6114_v27, 0  ;;  %v6110_v42 = vor.u32 %v8793_v37, %v6107_v39  ;;  %v8808_v47 = vld [vmem:[%s13393_s2 + $0x74] sm:$0x30]  ;;  %v8807_v40 = vld [vmem:[%s13393_s2 + $0x74] sm:$0xf]  ;;  %vm1287_vm5 = vcmask 195584  }
  0x30   : > { %716 = vmatpush.bf16.msrb.mxu1 %v6066_v8  ;;  %v826_v33 = vsel %vm554_vm0, %v6118_v31, 0  ;;  %v6186_v48 = vor.u32 %v8808_v47, %v6185_v46  ;;  %v6187_v49 = vld [vmem:[%s13393_s2 + $0x78] sm:$0x30]  ;;  %v6177_v50 = vld [vmem:[%s13393_s2 + $0x60] sm:$0xf]  ;;  %v1104_v46 = vrot.slane %v9636_v35, 2 }
  0x31   : > { %834 = vmatpush.bf16.msra.mxu0 %v823_v32  ;;  %v8806_v51 = vld [vmem:[%s13393_s2 + $0x64] sm:$0xf0]  ;;  %v6190_v52 = vor.u32 %v8807_v40, %v6187_v49  ;;  %v8805_v53 = vld [vmem:[%s13393_s2 + $0x64] sm:$0xf]  ;;  %v6179_v54 = vld [vmem:[%s13393_s2 + $0x68] sm:$0xf0] }
  0x32   : > { %v6161_v55 = vld [vmem:[%s13392_s1 + $0x70] sm:$0xf]  ;;  %v1050_v56 = vsel %vm554_vm0, %v6186_v48, 0  ;;  %v8804_v57 = vld [vmem:[%s13392_s1 + $0x74] sm:$0x30]  ;;  %v6178_v61 = vor.u32 %v8806_v51, %v6177_v50  ;;  %v6182_v1 = vor.u32 %v8805_v53, %v6179_v54  ;;  %vm1658_vm6 = vcmask 916480  }
  0x33   : > { %906 = vmatpush.bf16.msra.mxu2 %v6130_v26  ;;  %924 = vmatpush.bf16.msra.mxu3 %v6134_v29  ;;  %v8803_v58 = vld [vmem:[%s13392_s1 + $0x74] sm:$0xf]  ;;  %v1053_v60 = vsel %vm554_vm0, %v6190_v52, 0  ;;  %v6162_v63 = vor.u32 %v8804_v57, %v6161_v55  ;;  %v6163_v0 = vld [vmem:[%s13392_s1 + $0x78] sm:$0x30]  ;;  %vm3805_vm7 = vcmask 64512  }
  0x34   : > { %6052 = vmatmul.msk.bf16.gmra.mxu2 %vm547_vm1, %v498_v9  ;;  %852 = vmatpush.bf16.msra.mxu1 %v826_v33  ;;  %vm946_vm4 = vsmask.f32 6400  ;;  %v6153_v7 = vld [vmem:[%s13392_s1 + $0x60] sm:$0xf]  ;;  %v8802_v8 = vld [vmem:[%s13392_s1 + $0x64] sm:$0xf0] }
  0x35   : > { %6054 = vmatmul.msk.bf16.gmra.mxu3 %vm547_vm1, %v498_v9  ;;  %835 = vmatpush.bf16.msra.mxu0 %v6106_v38  ;;  %v979_v4 = vsel %vm554_vm0, %v6162_v63, 0  ;;  %v953_v6 = vsel %vm946_vm4, %v949_v3, %v9682_v62  ;;  %v6155_v11 = vld [vmem:[%s13392_s1 + $0x68] sm:$0xf0]  ;;  %v6233_v13 = vld [vmem:[%s13393_s2 + $0x90] sm:$0xf]  ;;  %vm4259_vm8 = vcmask 1043456  }
  0x36   : > { %v8816_v14 = vld [vmem:[%s13393_s2 + $0x94] sm:$0x30]  ;;  %v8815_v15 = vld [vmem:[%s13393_s2 + $0x94] sm:$0xf]  ;;  %v6235_v17 = vld [vmem:[%s13393_s2 + $0x98] sm:$0x30] }
  0x37   : > { %v6234_v16 = vor.u32 %v8816_v14, %v6233_v13  ;;  %v6225_v18 = vld [vmem:[%s13393_s2 + $0x80] sm:$0xf]  ;;  %v8814_v19 = vld [vmem:[%s13393_s2 + $0x84] sm:$0xf0]  ;;  %v6238_v20 = vor.u32 %v8815_v15, %v6235_v17  ;;  %v8813_v21 = vld [vmem:[%s13393_s2 + $0x84] sm:$0xf] }
  0x38   : > { %853 = vmatpush.bf16.msra.mxu1 %v6110_v42  ;;  %v6227_v22 = vld [vmem:[%s13393_s2 + $0x88] sm:$0xf0]  ;;  %v6209_v23 = vld [vmem:[%s13392_s1 + $0x90] sm:$0xf]  ;;  %v8812_v25 = vld [vmem:[%s13392_s1 + $0x94] sm:$0x30]  ;;  %v6226_v28 = vor.u32 %v8814_v19, %v6225_v18 }
  0x39   : > { %v1202_v24 = vsel %vm554_vm0, %v6234_v16, 0  ;;  %v8811_v26 = vld [vmem:[%s13392_s1 + $0x94] sm:$0xf]  ;;  %v1205_v27 = vsel %vm554_vm0, %v6238_v20, 0  ;;  %v6210_v29 = vor.u32 %v8812_v25, %v6209_v23  ;;  %v6211_v31 = vld [vmem:[%s13392_s1 + $0x98] sm:$0x30]  ;;  %v6230_v32 = vor.u32 %v8813_v21, %v6227_v22 }
  0x3a   : > { %6032 = vmatmul.msk.bf16.gmra.mxu0 %vm547_vm1, %v528_v10  ;;  %6034 = vmatmul.msk.bf16.gmra.mxu1 %vm547_vm1, %v528_v10  ;;  %v6214_v33 = vor.u32 %v8811_v26, %v6211_v31  ;;  %v6201_v37 = vld [vmem:[%s13392_s1 + $0x80] sm:$0xf]  ;;  %v8810_v38 = vld [vmem:[%s13392_s1 + $0x84] sm:$0xf0]  ;;  %v8809_v39 = vld [vmem:[%s13392_s1 + $0x84] sm:$0xf] }
  0x3b   : > { %v1131_v34 = vsel %vm554_vm0, %v6210_v29, 0  ;;  %v6202_v42 = vor.u32 %v8810_v38, %v6201_v37  ;;  %v6203_v43 = vld [vmem:[%s13392_s1 + $0x88] sm:$0xf0]  ;;  %vm4255_vm9 = vcmask 588800   ;;  %vm5879_vm10 = vcmask 1041408   ;;  %s485_s23 = sand.u32 1, %s9433_s19  }
  0x3c   : > { %v1134_v36 = vsel %vm554_vm0, %v6214_v33, 0  ;;  %v6206_v44 = vor.u32 %v8809_v39, %v6203_v43  ;;  %vm5875_vm11 = vcmask 949248   ;;  %s486_s27 = scalar_lea.vmem [#allocation2], %s485_s23  ;;  %vm5935_vm12 = vcmask 73728   ;;  %s5938_s30 = scalar_lea.sflag [#allocation3], %s485_s23 }
  0x3d   : > { %s5948_s24 = sshll.u32 %s486_s27, 4  ;;  %s9393_s16 = sshra.s32 %s5951_s26, 4  ;;  %s5949_s24 = int_to_ptr.vmem [resolvable:$true] %s5948_s24  ;;  %s9394_s16 = int_to_ptr.hbm [resolvable:$true] %s9393_s16 }
  0x3e   : > { %s9395_s18 = scalar_lea.hbm %s9394_s16, 1  ;;  %s9399_s29 = scalar_lea.hbm %s13406_s15, 2 }
  0x3f   : > { %p9396_p11 = scmp.ne.s32.totalorder %s9394_s16, %s9395_s18  ;;  %p9400_p0 = scmp.lt.s32.totalorder %s9394_s16, %s13406_s15 }
  0x40   : > { %p9401_p1 = scmp.lt.s32.totalorder %s9399_s29, %s9395_s18 }
  0x41   : > { %p9397_p12 = pnand %p9396_p11, %p9561_p5 }
  0x42   : > { %p9402_p2 = por %p9401_p1, %p9400_p0 }
  0x43   : > { %p9398_p13 = pneg %p9397_p12 }
  0x44   : > { %6095 = vmatmul.msk.bf16.vlgmr.msrb.gmra.mxu2 %vm547_vm1, %v9628_v30 }
  0x45   : > { %6097 = vmatmul.msk.bf16.vlgmr.msrb.gmra.mxu3 %vm547_vm1, %v9628_v30  ;;  %1061 = vmatpush.bf16.msrb.mxu2 %v1050_v56  ;;  %p9403_p3 = pnand %p9402_p2, %p9398_p13 }
  0x46   : > { %1079 = vmatpush.bf16.msrb.mxu3 %v1053_v60 }
  0x49   : > { %1062 = vmatpush.bf16.msrb.mxu2 %v6178_v61 }
  0x4a   : > { %6075 = vmatmul.msk.bf16.vlgmr.msrb.gmra.mxu0 %vm547_vm1, %v525_v2  ;;  %6077 = vmatmul.msk.bf16.vlgmr.msrb.gmra.mxu1 %vm547_vm1, %v525_v2  ;;  %v6166_v2 = vor.u32 %v8803_v58, %v6163_v0 }
  0x4b   : > { %990 = vmatpush.bf16.msrb.mxu0 %v979_v4  ;;  %1080 = vmatpush.bf16.msrb.mxu3 %v6182_v1 }
  0x4c   : > { %v982_v41 = vsel %vm554_vm0, %v6166_v2, 0 }
  0x4d   : > { %1008 = vmatpush.bf16.msrb.mxu1 %v982_v41 }
  0x54   : > { %6096 = vmatmul.msk.bf16.gmra.mxu2 %vm547_vm1, %v498_v9 }
  0x55   : > { %6098 = vmatmul.msk.bf16.gmra.mxu3 %vm547_vm1, %v498_v9  ;;  %v8801_v9 = vld [vmem:[%s13392_s1 + $0x64] sm:$0xf] }
  0x56   : > { %v6158_v12 = vor.u32 %v8801_v9, %v6155_v11 }
  0x58   : > { %1009 = vmatpush.bf16.msrb.mxu1 %v6158_v12 }
  0x5a   : > { %6076 = vmatmul.msk.bf16.gmra.mxu0 %vm547_vm1, %v528_v10  ;;  %6078 = vmatmul.msk.bf16.gmra.mxu1 %vm547_vm1, %v528_v10  ;;  %v6154_v10 = vor.u32 %v8802_v8, %v6153_v7 }
  0x5c   : > { %991 = vmatpush.bf16.msrb.mxu0 %v6154_v10 }
  0x64   : > { %6143 = vmatmul.msk.bf16.vlgmr.msra.gmra.mxu2 %vm547_vm1, %v797_v5 }
  0x65   : > { %6145 = vmatmul.msk.bf16.vlgmr.msra.gmra.mxu3 %vm547_vm1, %v797_v5  ;;  %1213 = vmatpush.bf16.msra.mxu2 %v1202_v24 }
  0x66   : > { %1231 = vmatpush.bf16.msra.mxu3 %v1205_v27 }
  0x69   : > { %1214 = vmatpush.bf16.msra.mxu2 %v6226_v28 }
  0x6a   : > { %6119 = vmatmul.msk.bf16.vlgmr.msra.gmra.mxu0 %vm547_vm1, %v797_v5  ;;  %6121 = vmatmul.msk.bf16.vlgmr.msra.gmra.mxu1 %vm547_vm1, %v797_v5 }
  0x6b   : > { %1142 = vmatpush.bf16.msra.mxu0 %v1131_v34  ;;  %1160 = vmatpush.bf16.msra.mxu1 %v1134_v36 }
  0x6c   : > { %1232 = vmatpush.bf16.msra.mxu3 %v6230_v32 }
  0x6f   : > { %1143 = vmatpush.bf16.msra.mxu0 %v6202_v42  ;;  %1161 = vmatpush.bf16.msra.mxu1 %v6206_v44 }
  0x74   : > { %6144 = vmatmul.msk.bf16.gmra.mxu2 %vm547_vm1, %v796_v45 }
  0x75   : > { %6146 = vmatmul.msk.bf16.gmra.mxu3 %vm547_vm1, %v796_v45 }
  0x7a   : > { %6120 = vmatmul.msk.bf16.gmra.mxu0 %vm547_vm1, %v796_v45  ;;  %6122 = vmatmul.msk.bf16.gmra.mxu1 %vm547_vm1, %v796_v45  ;;  %v1103_v45 = vrot.slane %v9628_v30, 2 }
  0x7c   : > { %v1105_v47 = vsel %vm554_vm0, %v1103_v45, %v1104_v46 }
  0x84   : > { %6191 = vmatmul.msk.bf16.vlgmr.msrb.gmra.mxu2 %vm547_vm1, %v953_v6 }
  0x85   : > { %6193 = vmatmul.msk.bf16.vlgmr.msrb.gmra.mxu3 %vm547_vm1, %v953_v6 }
  0x8a   : > { %6167 = vmatmul.msk.bf16.vlgmr.msrb.gmra.mxu0 %vm547_vm1, %v953_v6  ;;  %6169 = vmatmul.msk.bf16.vlgmr.msrb.gmra.mxu1 %vm547_vm1, %v953_v6 }
  0x94   : > { %6192 = vmatmul.msk.bf16.gmra.mxu2 %vm547_vm1, %v9682_v62 }
  0x95   : > { %6194 = vmatmul.msk.bf16.gmra.mxu3 %vm547_vm1, %v9682_v62 }
  0x9a   : > { %6168 = vmatmul.msk.bf16.gmra.mxu0 %vm547_vm1, %v9682_v62  ;;  %6170 = vmatmul.msk.bf16.gmra.mxu1 %vm547_vm1, %v9682_v62 }
  0xa4   : > { %6239 = vmatmul.msk.bf16.vlgmr.msra.gmra.mxu2 %vm547_vm1, %v1105_v47 }
  0xa5   : > { %6241 = vmatmul.msk.bf16.vlgmr.msra.gmra.mxu3 %vm547_vm1, %v1105_v47 }
  0xa7   : > { %v570_v40 = vpop.f32.mrf.mxu0  ;;  %v588_v48 = vpop.f32.mrf.mxu1 }
  0xa8   : > { %v635_v49 = vpop.f32.mrf.mxu2  ;;  %v653_v50 = vpop.f32.mrf.mxu3 }
  0xa9   : > { %v636_v51 = vadd.f32 %v635_v49, %v570_v40  ;;  %v654_v52 = vadd.f32 %v653_v50, %v588_v48 }
  0xaa   : > { %6215 = vmatmul.msk.bf16.vlgmr.msra.gmra.mxu0 %vm547_vm1, %v1105_v47  ;;  %6217 = vmatmul.msk.bf16.vlgmr.msra.gmra.mxu1 %vm547_vm1, %v1105_v47 }
  0xaf   : > { %v9906_v62 = vpop.f32.mrf.mxu0  ;;  %v9908_v30 = vpop.f32.mrf.mxu1 }
  0xb0   : > { %v9910_v35 = vpop.f32.mrf.mxu2  ;;  %v9912_v53 = vpop.f32.mrf.mxu3 }
  0xb4   : > { %6240 = vmatmul.msk.bf16.gmra.mxu2 %vm547_vm1, %v1104_v46 }
  0xb5   : > { %6242 = vmatmul.msk.bf16.gmra.mxu3 %vm547_vm1, %v1104_v46 }
  0xb7   : > { %v575_v54 = vpop.f32.mrf.mxu0  ;;  %v593_v55 = vpop.f32.mrf.mxu1 }
  0xb8   : > { %v640_v56 = vpop.f32.mrf.mxu2  ;;  %v658_v57 = vpop.f32.mrf.mxu3 }
  0xb9   : > { %v9916_v58 = vadd.f32 %v640_v56, %v575_v54  ;;  %v9918_v59 = vadd.f32 %v658_v57, %v593_v55 }
  0xba   : > { %6216 = vmatmul.msk.bf16.gmra.mxu0 %vm547_vm1, %v1104_v46  ;;  %6218 = vmatmul.msk.bf16.gmra.mxu1 %vm547_vm1, %v1104_v46 }
  0xbf   : > { %v577_v60 = vpop.f32.mrf.mxu0  ;;  %v595_v61 = vpop.f32.mrf.mxu1 }
  0xc0   : > { %v642_v63 = vpop.f32.mrf.mxu2  ;;  %v660_v0 = vpop.f32.mrf.mxu3 }
  0xc1   : > { %v1249_v63 = vld [vmem:[%s13394_s3] sm:$0x3] }
  0xc7   : > { %v700_v1 = vpop.f32.mrf.mxu0  ;;  %v718_v2 = vpop.f32.mrf.mxu1 }
  0xc8   : > { %v760_v3 = vpop.f32.mrf.mxu2  ;;  %v778_v4 = vpop.f32.mrf.mxu3 }
  0xc9   : > { %v761_v5 = vadd.f32 %v760_v3, %v700_v1  ;;  %v779_v41 = vadd.f32 %v778_v4, %v718_v2  ;;  %v9945_v2 = vperm.slane %v1249_v63, 0  ;;  %v9947_v3 = vperm.slane %v1249_v63, 1 }
  0xcf   : > { %v9922_v6 = vpop.f32.mrf.mxu0  ;;  %v9924_v7 = vpop.f32.mrf.mxu1 }
  0xd0   : > { %v9926_v8 = vpop.f32.mrf.mxu2  ;;  %v9928_v9 = vpop.f32.mrf.mxu3 }
  0xd7   : > { %v705_v10 = vpop.f32.mrf.mxu0  ;;  %v723_v11 = vpop.f32.mrf.mxu1 }
  0xd8   : > { %v765_v12 = vpop.f32.mrf.mxu2  ;;  %v783_v13 = vpop.f32.mrf.mxu3 }
  0xd9   : > { %v9930_v14 = vadd.f32 %v765_v12, %v705_v10  ;;  %v9932_v15 = vadd.f32 %v783_v13, %v723_v11 }
  0xdf   : > { %v707_v16 = vpop.f32.mrf.mxu0  ;;  %v725_v17 = vpop.f32.mrf.mxu1 }
  0xe0   : > { %v767_v18 = vpop.f32.mrf.mxu2  ;;  %v785_v19 = vpop.f32.mrf.mxu3 }
  0xe7   : > { %v837_v20 = vpop.f32.mrf.mxu0  ;;  %v855_v21 = vpop.f32.mrf.mxu1 }
  0xe8   : > { %v864_v22 = vadd.f32 %v837_v20, %v636_v51  ;;  %v865_v23 = vadd.f32 %v855_v21, %v654_v52  ;;  %v908_v24 = vpop.f32.mrf.mxu2  ;;  %v926_v25 = vpop.f32.mrf.mxu3 }
  0xe9   : > { %v935_v26 = vadd.f32 %v908_v24, %v761_v5  ;;  %v936_v27 = vadd.f32 %v926_v25, %v779_v41 }
  0xef   : > { %v839_v28 = vpop.f32.mrf.mxu0  ;;  %v857_v29 = vpop.f32.mrf.mxu1 }
  0xf0   : > { %v910_v31 = vpop.f32.mrf.mxu2  ;;  %v928_v32 = vpop.f32.mrf.mxu3 }
  0xf7   : > { %v9934_v33 = vpop.f32.mrf.mxu0  ;;  %v9936_v34 = vpop.f32.mrf.mxu1 }
  0xf8   : > { %v9938_v36 = vpop.f32.mrf.mxu2  ;;  %v9940_v37 = vpop.f32.mrf.mxu3 }
  0xff   : > { %v844_v38 = vpop.f32.mrf.mxu0  ;;  %v862_v39 = vpop.f32.mrf.mxu1 }
 0x100   : > { %v915_v42 = vpop.f32.mrf.mxu2  ;;  %v933_v43 = vpop.f32.mrf.mxu3  ;;  %v656_v38 = vadd.f32 %v9912_v53, %v9908_v30  ;;  %v763_v39 = vadd.f32 %v9926_v8, %v9922_v6  ;;  %v868_v6 = vadd.f32 %v9934_v33, %v9916_v58 }
 0x101   : > { %v781_v42 = vadd.f32 %v9928_v9, %v9924_v7  ;;  %v869_v7 = vadd.f32 %v9936_v34, %v9918_v59 }
 0x107   : > { %v993_v44 = vpop.f32.mrf.mxu0  ;;  %v1011_v45 = vpop.f32.mrf.mxu1 }
 0x108   : > { %v1064_v46 = vpop.f32.mrf.mxu2  ;;  %v1082_v47 = vpop.f32.mrf.mxu3  ;;  %v1020_v0 = vadd.f32 %v993_v44, %v864_v22  ;;  %v1021_v1 = vadd.f32 %v1011_v45, %v865_v23 }
 0x109   : > { %v1091_v4 = vadd.f32 %v1064_v46, %v935_v26  ;;  %v1092_v5 = vadd.f32 %v1082_v47, %v936_v27  ;;  %v638_v27 = vadd.f32 %v9910_v35, %v9906_v62  ;;  %v937_v62 = vadd.f32 %v910_v31, %v763_v39  ;;  %v8891_v39 = vld [vmem:[%s13397_s6 + $0x164] sm:$0xf] }
 0x10a   : > { %v938_v35 = vadd.f32 %v928_v32, %v781_v42  ;;  %v6341_v42 = vld [vmem:[%s13397_s6 + $0x168] sm:$0xf0] }
 0x10b   : > { %v866_v47 = vadd.f32 %v839_v28, %v638_v27  ;;  %v939_v28 = vadd.f32 %v9938_v36, %v9930_v14  ;;  %v6395_v27 = vld [vmem:[%s13397_s6 + $0x1d0] sm:$0xf] }
 0x10f   : > { %v995_v40 = vpop.f32.mrf.mxu0  ;;  %v1013_v48 = vpop.f32.mrf.mxu1 }
 0x110   : > { %v1066_v49 = vpop.f32.mrf.mxu2  ;;  %v1084_v50 = vpop.f32.mrf.mxu3 }
 0x111   : > { %v1093_v53 = vadd.f32 %v1066_v49, %v937_v62  ;;  %v1094_v63 = vadd.f32 %v1084_v50, %v938_v35  ;;  %v8890_v62 = vld [vmem:[%s13397_s6 + $0x154] sm:$0xf0] }
 0x117   : > { %v998_v51 = vpop.f32.mrf.mxu0  ;;  %v1016_v52 = vpop.f32.mrf.mxu1 }
 0x118   : > { %v1069_v54 = vpop.f32.mrf.mxu2  ;;  %v1087_v55 = vpop.f32.mrf.mxu3 }
 0x119   : > { %v1095_v49 = vadd.f32 %v1069_v54, %v939_v28  ;;  %v8888_v28 = vld [vmem:[%s13397_s6 + $0x144] sm:$0xf0] }
 0x11f   : > { %v1000_v56 = vpop.f32.mrf.mxu0  ;;  %v1018_v57 = vpop.f32.mrf.mxu1 }
 0x120   : > { %v1071_v60 = vpop.f32.mrf.mxu2  ;;  %v1089_v61 = vpop.f32.mrf.mxu3  ;;  %v867_v56 = vadd.f32 %v857_v29, %v656_v38  ;;  %v940_v29 = vadd.f32 %v9940_v37, %v9932_v15  ;;  %v8906_v38 = vld [vmem:[%s13397_s6 + $0x1d4] sm:$0xf0] }
 0x121   : > { %v1022_v61 = vadd.f32 %v995_v40, %v866_v47  ;;  %v1024_v40 = vadd.f32 %v998_v51, %v868_v6  ;;  %v1340_v47 = vld [vmem:[%s13396_s5] sm:$0xff]  ;;  %v6396_v35 = vor.u32 %v8906_v38, %v6395_v27  ;;  %v8896_v27 = vld [vmem:[%s13397_s6 + $0x184] sm:$0xf0]  ;;  %v8881_v38 = vld [vmem:[%s13397_s6 + $0x114] sm:$0xf] }
 0x122   : > { %v1023_v30 = vadd.f32 %v1013_v48, %v867_v56  ;;  %v1025_v48 = vadd.f32 %v1016_v52, %v869_v7  ;;  %v1096_v50 = vadd.f32 %v1087_v55, %v940_v29  ;;  %v1285_v56 = vld [vmem:[%s13395_s4] sm:$0xff]  ;;  %v6389_v7 = vld [vmem:[%s13397_s6 + $0x1c8] sm:$0xf0] }
 0x127   : > { %v1145_v41 = vpop.f32.mrf.mxu0  ;;  %v1163_v10 = vpop.f32.mrf.mxu1 }
 0x128   : > { %v1172_v11 = vadd.f32 %v1145_v41, %v1020_v0  ;;  %v1173_v12 = vadd.f32 %v1163_v10, %v1021_v1  ;;  %v1216_v13 = vpop.f32.mrf.mxu2  ;;  %v1234_v16 = vpop.f32.mrf.mxu3 }
 0x129   : > { %v1243_v17 = vadd.f32 %v1216_v13, %v1091_v4  ;;  %v1244_v18 = vadd.f32 %v1234_v16, %v1092_v5 }
 0x12a   : > { %v1255_v19 = vadd.f32 %v9945_v2, %v1172_v11  ;;  %v1256_v20 = vadd.f32 %v9947_v3, %v1173_v12 }
 0x12b   : > { %v1267_v21 = vadd.f32 %v9945_v2, %v1243_v17  ;;  %v1268_v22 = vadd.f32 %v9947_v3, %v1244_v18 }
 0x12c   : > { %v1261_v23 = vmax.f32 %v1255_v19, 0.0  ;;  %v1262_v24 = vmax.f32 %v1256_v20, 0.0 }
 0x12d   : > { %v1273_v25 = vmax.f32 %v1267_v21, 0.0  ;;  %v1274_v26 = vmax.f32 %v1268_v22, 0.0 }
 0x12f   : > { %v1147_v43 = vpop.f32.mrf.mxu0  ;;  %v1165_v44 = vpop.f32.mrf.mxu1  ;;  %v9961_v45 = vmax.f32 %v1261_v23, %v1273_v25  ;;  %v9963_v46 = vmax.f32 %v1262_v24, %v1274_v26  ;;  %v8892_v26 = vld [vmem:[%s13397_s6 + $0x164] sm:$0xf0] }
 0x130   : > { %v1218_v57 = vpop.f32.mrf.mxu2  ;;  %v1236_v60 = vpop.f32.mrf.mxu3  ;;  %v1174_v8 = vadd.f32 %v1147_v43, %v1022_v61  ;;  %v1175_v9 = vadd.f32 %v1165_v44, %v1023_v30  ;;  %v8905_v43 = vld [vmem:[%s13397_s6 + $0x1d4] sm:$0xf]  ;;  %v6397_v44 = vld [vmem:[%s13397_s6 + $0x1d8] sm:$0xf0]  ;;  %v6344_v61 = vor.u32 %v8891_v39, %v6341_v42  ;;  %v6387_v30 = vld [vmem:[%s13397_s6 + $0x1c0] sm:$0xf] }
 0x131   : > { %v1245_v31 = vadd.f32 %v1218_v57, %v1093_v53  ;;  %v1246_v32 = vadd.f32 %v1236_v60, %v1094_v63  ;;  %v6331_v60 = vld [vmem:[%s13397_s6 + $0x150] sm:$0xf]  ;;  %v8904_v53 = vld [vmem:[%s13397_s6 + $0x1c4] sm:$0xf0]  ;;  %v8889_v63 = vld [vmem:[%s13397_s6 + $0x154] sm:$0xf]  ;;  %v6400_v6 = vor.u32 %v8905_v43, %v6397_v44 }
 0x132   : > { %v1257_v58 = vadd.f32 %v9945_v2, %v1174_v8  ;;  %v1258_v59 = vadd.f32 %v9947_v3, %v1175_v9  ;;  %v6332_v8 = vor.u32 %v8890_v62, %v6331_v60  ;;  %v6323_v9 = vld [vmem:[%s13397_s6 + $0x140] sm:$0xf]  ;;  %v6388_v29 = vor.u32 %v8904_v53, %v6387_v30  ;;  %v6301_v42 = vld [vmem:[%s13397_s6 + $0x118] sm:$0xf0]  ;;  %v8895_v43 = vld [vmem:[%s13397_s6 + $0x184] sm:$0xf] }
 0x133   : > { %v1269_v14 = vadd.f32 %v9945_v2, %v1245_v31  ;;  %v1270_v15 = vadd.f32 %v9947_v3, %v1246_v32  ;;  %v6379_v32 = vld [vmem:[%s13397_s6 + $0x1b0] sm:$0xf]  ;;  %v6357_v44 = vld [vmem:[%s13397_s6 + $0x188] sm:$0xf0]  ;;  %v6304_v62 = vor.u32 %v8881_v38, %v6301_v42  ;;  %v8879_v30 = vld [vmem:[%s13397_s6 + $0x104] sm:$0xf] }
 0x134   : > { %v1263_v41 = vmax.f32 %v1257_v58, 0.0  ;;  %v1264_v10 = vmax.f32 %v1258_v59, 0.0  ;;  %v1341_v58 = vld [vmem:[%s13396_s5 + $0x8] sm:$0xf]  ;;  %v6360_v53 = vor.u32 %v8895_v43, %v6357_v44  ;;  %v8841_v42 = vld [vmem:[%s13397_s6 + $0xc4] sm:$0xf] }
 0x135   : > { %v1275_v13 = vmax.f32 %v1269_v14, 0.0  ;;  %v1276_v16 = vmax.f32 %v1270_v15, 0.0  ;;  %v1286_v59 = vld [vmem:[%s13395_s4 + $0x8] sm:$0xf]  ;;  %v6371_v15 = vld [vmem:[%s13397_s6 + $0x1a0] sm:$0xf] }
 0x136   : > { %v6503_v43 = vld [vmem:[%s13397_s6 + $0xc8] sm:$0xf0] }
 0x137   : > { %v1150_v0 = vpop.f32.mrf.mxu0  ;;  %v1168_v1 = vpop.f32.mrf.mxu1  ;;  %v1281_v25 = vmax.f32 %v1263_v41, %v1275_v13  ;;  %v6506_v44 = vor.u32 %v8841_v42, %v6503_v43  ;;  %v6613_v43 = vld [vmem:[%s13398_s7 + $0x160] sm:$0xf] }
 0x138   : > { %v1176_v33 = vadd.f32 %v1150_v0, %v1024_v40  ;;  %v1177_v34 = vadd.f32 %v1168_v1, %v1025_v48  ;;  %v1221_v4 = vpop.f32.mrf.mxu2  ;;  %v1239_v5 = vpop.f32.mrf.mxu3  ;;  %v8902_v40 = vld [vmem:[%s13397_s6 + $0x1b4] sm:$0xf0]  ;;  %v8887_v48 = vld [vmem:[%s13397_s6 + $0x144] sm:$0xf]  ;;  %v8901_v0 = vld [vmem:[%s13397_s6 + $0x1b4] sm:$0xf] }
 0x139   : > { %v1247_v36 = vadd.f32 %v1221_v4, %v1095_v49  ;;  %v1248_v37 = vadd.f32 %v1239_v5, %v1096_v50  ;;  %v6325_v50 = vld [vmem:[%s13397_s6 + $0x148] sm:$0xf0]  ;;  %v6381_v1 = vld [vmem:[%s13397_s6 + $0x1b8] sm:$0xf0]  ;;  %v8886_v4 = vld [vmem:[%s13397_s6 + $0x134] sm:$0xf0]  ;;  %v6380_v5 = vor.u32 %v8902_v40, %v6379_v32 }
 0x13a   : > { %v1259_v51 = vadd.f32 %v9945_v2, %v1176_v33  ;;  %v1260_v52 = vadd.f32 %v9947_v3, %v1177_v34  ;;  %v6324_v33 = vor.u32 %v8888_v28, %v6323_v9  ;;  %v6315_v34 = vld [vmem:[%s13397_s6 + $0x130] sm:$0xf]  ;;  %v6328_v14 = vor.u32 %v8887_v48, %v6325_v50  ;;  %v8878_v32 = vld [vmem:[%s13397_s6 + $0xf4] sm:$0xf0]  ;;  %v6463_v50 = vld [vmem:[%s13397_s6 + $0x78] sm:$0xf0] }
 0x13b   : > { %v1271_v54 = vadd.f32 %v9945_v2, %v1247_v36  ;;  %v1272_v55 = vadd.f32 %v9947_v3, %v1248_v37  ;;  %v1282_v2 = vmax.f32 %v1264_v10, %v1276_v16  ;;  %v6339_v3 = vld [vmem:[%s13397_s6 + $0x160] sm:$0xf]  ;;  %v8900_v36 = vld [vmem:[%s13397_s6 + $0x1a4] sm:$0xf0]  ;;  %v8885_v37 = vld [vmem:[%s13397_s6 + $0x134] sm:$0xf]  ;;  %v6316_v41 = vor.u32 %v8886_v4, %v6315_v34 }
 0x13c   : > { %v1265_v11 = vmax.f32 %v1259_v51, 0.0  ;;  %v1266_v12 = vmax.f32 %v1260_v52, 0.0  ;;  %v6340_v57 = vor.u32 %v8892_v26, %v6339_v3  ;;  %v6384_v51 = vor.u32 %v8901_v0, %v6381_v1  ;;  %v6317_v52 = vld [vmem:[%s13397_s6 + $0x138] sm:$0xf0]  ;;  %v6307_v10 = vld [vmem:[%s13397_s6 + $0x120] sm:$0xf] }
 0x13d   : > { %v1277_v17 = vmax.f32 %v1271_v54, 0.0  ;;  %v1278_v18 = vmax.f32 %v1272_v55, 0.0  ;;  %v8899_v54 = vld [vmem:[%s13397_s6 + $0x1a4] sm:$0xf]  ;;  %v6373_v55 = vld [vmem:[%s13397_s6 + $0x1a8] sm:$0xf0]  ;;  %v6320_v13 = vor.u32 %v8885_v37, %v6317_v52 }
 0x13e   : > { %v6363_v16 = vld [vmem:[%s13397_s6 + $0x190] sm:$0xf]  ;;  %v6355_v26 = vld [vmem:[%s13397_s6 + $0x180] sm:$0xf]  ;;  %v8877_v0 = vld [vmem:[%s13397_s6 + $0xf4] sm:$0xf] }
 0x13f   : > { %v1283_v19 = vmax.f32 %v1265_v11, %v1277_v17  ;;  %v1284_v20 = vmax.f32 %v1266_v12, %v1278_v18  ;;  %v1170_v21 = vpop.f32.mrf.mxu1  ;;  %v1152_v22 = vpop.f32.mrf.mxu0  ;;  %v8884_v11 = vld [vmem:[%s13397_s6 + $0x124] sm:$0xf0]  ;;  %v6372_v12 = vor.u32 %v8900_v36, %v6371_v15  ;;  %v8898_v17 = vld [vmem:[%s13397_s6 + $0x194] sm:$0xf0]  ;;  %v8883_v18 = vld [vmem:[%s13397_s6 + $0x124] sm:$0xf]  ;;  %v6356_v60 = vor.u32 %v8896_v27, %v6355_v26 }
 0x140   : > { %v1241_v23 = vpop.f32.mrf.mxu3  ;;  %v1223_v24 = vpop.f32.mrf.mxu2  ;;  %v8897_v21 = vld [vmem:[%s13397_s6 + $0x194] sm:$0xf]  ;;  %v6365_v22 = vld [vmem:[%s13397_s6 + $0x198] sm:$0xf0]  ;;  %v6283_v9 = vld [vmem:[%s13397_s6 + $0xf0] sm:$0xf] }
 0x141   : > { %1307 = vmatpush.msrb.mxu0 %v1283_v19  ;;  %1330 = vmatpush.msrb.mxu1 %v1284_v20  ;;  %v6308_v23 = vor.u32 %v8884_v11, %v6307_v10  ;;  %v6299_v24 = vld [vmem:[%s13397_s6 + $0x110] sm:$0xf]  ;;  %v6368_v39 = vor.u32 %v8897_v21, %v6365_v22  ;;  %v6285_v1 = vld [vmem:[%s13397_s6 + $0xf8] sm:$0xf0]  ;;  %v8845_v4 = vld [vmem:[%s13397_s6 + $0xe4] sm:$0xf] }
 0x142   : > { %1361 = vmatpush.msrb.mxu2 %v1283_v19  ;;  %1384 = vmatpush.msrb.mxu3 %v1284_v20  ;;  %v6376_v19 = vor.u32 %v8899_v54, %v6373_v55  ;;  %v6309_v20 = vld [vmem:[%s13397_s6 + $0x128] sm:$0xf0]  ;;  %v6509_v15 = vld [vmem:[%s13397_s6 + $0xd0] sm:$0xf]  ;;  %v8844_v36 = vld [vmem:[%s13397_s6 + $0xd4] sm:$0xf0] }
 0x143   : > { %1308 = vmatpush.msrb.mxu0 %v1281_v25  ;;  %1331 = vmatpush.msrb.mxu1 %v1282_v2  ;;  %v6312_v3 = vor.u32 %v8883_v18, %v6309_v20  ;;  %v8829_v54 = vld [vmem:[%s13397_s6 + $0x64] sm:$0xf]  ;;  %v6455_v55 = vld [vmem:[%s13397_s6 + $0x68] sm:$0xf0]  ;;  %v6445_v10 = vld [vmem:[%s13397_s6 + $0x50] sm:$0xf] }
 0x144   : > { %1362 = vmatpush.msrb.mxu2 %v1281_v25  ;;  %1385 = vmatpush.msrb.mxu3 %v1282_v2  ;;  %v8882_v25 = vld [vmem:[%s13397_s6 + $0x114] sm:$0xf0]  ;;  %v6364_v2 = vor.u32 %v8898_v17, %v6363_v16  ;;  %v6511_v16 = vld [vmem:[%s13397_s6 + $0xd8] sm:$0xf0]  ;;  %v6458_v17 = vor.u32 %v8829_v54, %v6455_v55  ;;  %v8825_v26 = vld [vmem:[%s13397_s6 + $0x44] sm:$0xf] }
 0x145   : > { %1309 = vmatpush.msrb.mxu0 %v9961_v45  ;;  %1332 = vmatpush.msrb.mxu1 %v9963_v46  ;;  %v8828_v11 = vld [vmem:[%s13397_s6 + $0x54] sm:$0xf0]  ;;  %v6447_v20 = vld [vmem:[%s13397_s6 + $0x58] sm:$0xf0]  ;;  %v6439_v27 = vld [vmem:[%s13397_s6 + $0x48] sm:$0xf0] }
 0x146   : > { %1363 = vmatpush.msrb.mxu2 %v9961_v45  ;;  %1386 = vmatpush.msrb.mxu3 %v9963_v46  ;;  %v6333_v45 = vld [vmem:[%s13397_s6 + $0x158] sm:$0xf0]  ;;  %v8903_v46 = vld [vmem:[%s13397_s6 + $0x1c4] sm:$0xf]  ;;  %v6446_v18 = vor.u32 %v8828_v11, %v6445_v10  ;;  %v6469_v54 = vld [vmem:[%s13397_s6 + $0x80] sm:$0xf] }
 0x147   : > { %6247 = vmatmul.msk.f32.vlgmr.msrb.gmra.mxu2 %vm1287_vm5, %v1340_v47  ;;  %6249 = vmatmul.msk.f32.vlgmr.msrb.gmra.mxu3 %vm1287_vm5, %v1340_v47  ;;  %v6336_v31 = vor.u32 %v8889_v63, %v6333_v45  ;;  %v6392_v49 = vor.u32 %v8903_v46, %v6389_v7  ;;  %v6300_v47 = vor.u32 %v8882_v25, %v6299_v24  ;;  %v6293_v63 = vld [vmem:[%s13397_s6 + $0x108] sm:$0xf0]  ;;  %v8832_v45 = vld [vmem:[%s13397_s6 + $0x74] sm:$0xf0]  ;;  %v8893_v46 = vld [vmem:[%s13397_s6 + $0x174] sm:$0xf] }
 0x148   : > { %6243 = vmatmul.msk.f32.vlgmr.msrb.gmra.mxu0 %vm1287_vm5, %v1285_v56  ;;  %6245 = vmatmul.msk.f32.vlgmr.msrb.gmra.mxu1 %vm1287_vm5, %v1285_v56  ;;  %v6291_v56 = vld [vmem:[%s13397_s6 + $0x100] sm:$0xf]  ;;  %v6349_v7 = vld [vmem:[%s13397_s6 + $0x178] sm:$0xf0]  ;;  %v6296_v40 = vor.u32 %v8879_v30, %v6293_v63  ;;  %v8826_v24 = vld [vmem:[%s13397_s6 + $0x44] sm:$0xf0] }
 0x149   : > { %1662 = vmatpush.bf16.msra.mxu0 %v6340_v57  ;;  %1676 = vmatpush.bf16.msra.mxu1 %v6396_v35  ;;  %v8880_v57 = vld [vmem:[%s13397_s6 + $0x104] sm:$0xf0]  ;;  %v6347_v35 = vld [vmem:[%s13397_s6 + $0x170] sm:$0xf]  ;;  %v6501_v25 = vld [vmem:[%s13397_s6 + $0xc0] sm:$0xf] }
 0x14a   : > { %1688 = vmatpush.bf16.msra.mxu2 %v6344_v61  ;;  %1702 = vmatpush.bf16.msra.mxu3 %v6400_v6  ;;  %v8894_v61 = vld [vmem:[%s13397_s6 + $0x174] sm:$0xf0]  ;;  %v6461_v6 = vld [vmem:[%s13397_s6 + $0x70] sm:$0xf]  ;;  %v8839_v63 = vld [vmem:[%s13397_s6 + $0xb4] sm:$0xf] }
 0x14b   : > { %v6348_v28 = vor.u32 %v8894_v61, %v6347_v35  ;;  %v6462_v48 = vor.u32 %v8832_v45, %v6461_v6  ;;  %v8823_v35 = vld [vmem:[%s13397_s6 + $0x34] sm:$0xf]  ;;  %v6431_v61 = vld [vmem:[%s13397_s6 + $0x38] sm:$0xf0]  ;;  %v8817_v10 = vld [vmem:[%s13397_s6 + $0x4] sm:$0xf] }
 0x14c   : > { %v6495_v6 = vld [vmem:[%s13397_s6 + $0xb8] sm:$0xf0]  ;;  %v6407_v11 = vld [vmem:[%s13397_s6 + $0x8] sm:$0xf0] }
 0x14d   : > { %1663 = vmatpush.bf16.msra.mxu0 %v6332_v8  ;;  %1677 = vmatpush.bf16.msra.mxu1 %v6388_v29  ;;  %v6292_v8 = vor.u32 %v8880_v57, %v6291_v56  ;;  %v6517_v29 = vld [vmem:[%s13397_s6 + $0xe0] sm:$0xf]  ;;  %v8824_v56 = vld [vmem:[%s13397_s6 + $0x34] sm:$0xf0]  ;;  %v6493_v57 = vld [vmem:[%s13397_s6 + $0xb0] sm:$0xf]  ;;  %v6498_v45 = vor.u32 %v8839_v63, %v6495_v6 }
 0x14e   : > { %1689 = vmatpush.bf16.msra.mxu2 %v6336_v31  ;;  %1703 = vmatpush.bf16.msra.mxu3 %v6392_v49  ;;  %v8846_v31 = vld [vmem:[%s13397_s6 + $0xe4] sm:$0xf0]  ;;  %v8831_v49 = vld [vmem:[%s13397_s6 + $0x74] sm:$0xf] }
 0x14f   : > { %6248 = vmatmul.msk.f32.gmra.mxu2 %vm1287_vm5, %v1341_v58  ;;  %6250 = vmatmul.msk.f32.gmra.mxu3 %vm1287_vm5, %v1341_v58  ;;  %v6352_v58 = vor.u32 %v8893_v46, %v6349_v7  ;;  %v6518_v34 = vor.u32 %v8846_v31, %v6517_v29  ;;  %v6466_v37 = vor.u32 %v8831_v49, %v6463_v50  ;;  %v6421_v46 = vld [vmem:[%s13397_s6 + $0x20] sm:$0xf]  ;;  %v8822_v7 = vld [vmem:[%s13397_s6 + $0x24] sm:$0xf0]  ;;  %v8821_v29 = vld [vmem:[%s13397_s6 + $0x24] sm:$0xf] }
 0x150   : > { %6244 = vmatmul.msk.f32.gmra.mxu0 %vm1287_vm5, %v1286_v59  ;;  %6246 = vmatmul.msk.f32.gmra.mxu1 %vm1287_vm5, %v1286_v59  ;;  %v6453_v59 = vld [vmem:[%s13397_s6 + $0x60] sm:$0xf]  ;;  %v6423_v31 = vld [vmem:[%s13397_s6 + $0x28] sm:$0xf0] }
 0x151   : > { %1664 = vmatpush.bf16.msra.mxu0 %v6324_v33  ;;  %1678 = vmatpush.bf16.msra.mxu1 %v6380_v5  ;;  %v8830_v33 = vld [vmem:[%s13397_s6 + $0x64] sm:$0xf0]  ;;  %v6519_v5 = vld [vmem:[%s13397_s6 + $0xe8] sm:$0xf0] }
 0x152   : > { %1690 = vmatpush.bf16.msra.mxu2 %v6328_v14  ;;  %1704 = vmatpush.bf16.msra.mxu3 %v6384_v51  ;;  %v6284_v14 = vor.u32 %v8878_v32, %v6283_v9  ;;  %v6288_v51 = vor.u32 %v8877_v0, %v6285_v1  ;;  %v6454_v52 = vor.u32 %v8830_v33, %v6453_v59  ;;  %v6487_v49 = vld [vmem:[%s13397_s6 + $0xa8] sm:$0xf0]  ;;  %v6413_v0 = vld [vmem:[%s13397_s6 + $0x10] sm:$0xf]  ;;  %v8820_v1 = vld [vmem:[%s13397_s6 + $0x14] sm:$0xf0] }
 0x153   : > { %v6422_v9 = vor.u32 %v8822_v7, %v6421_v46  ;;  %v6414_v59 = vor.u32 %v8820_v1, %v6413_v0  ;;  %v8836_v33 = vld [vmem:[%s13397_s6 + $0x94] sm:$0xf0]  ;;  %v6671_v46 = vld [vmem:[%s13398_s7 + $0x1d8] sm:$0xf0]  ;;  %v6661_v1 = vld [vmem:[%s13398_s7 + $0x1c0] sm:$0xf] }
 0x155   : > { %1665 = vmatpush.bf16.msra.mxu0 %v6316_v41  ;;  %1679 = vmatpush.bf16.msra.mxu1 %v6372_v12  ;;  %v6522_v41 = vor.u32 %v8845_v4, %v6519_v5  ;;  %v6510_v12 = vor.u32 %v8844_v36, %v6509_v15  ;;  %v6415_v4 = vld [vmem:[%s13397_s6 + $0x18] sm:$0xf0]  ;;  %v8835_v15 = vld [vmem:[%s13397_s6 + $0x94] sm:$0xf] }
 0x156   : > { %1691 = vmatpush.bf16.msra.mxu2 %v6320_v13  ;;  %1705 = vmatpush.bf16.msra.mxu3 %v6376_v19  ;;  %v8843_v13 = vld [vmem:[%s13397_s6 + $0xd4] sm:$0xf]  ;;  %v6479_v36 = vld [vmem:[%s13397_s6 + $0x98] sm:$0xf0] }
 0x157   : > { %v8827_v19 = vld [vmem:[%s13397_s6 + $0x54] sm:$0xf]  ;;  %v6514_v21 = vor.u32 %v8843_v13, %v6511_v16  ;;  %v6410_v13 = vor.u32 %v8817_v10, %v6407_v11  ;;  %v8833_v16 = vld [vmem:[%s13397_s6 + $0x84] sm:$0xf]  ;;  %v6599_v10 = vld [vmem:[%s13398_s7 + $0x148] sm:$0xf0] }
 0x158   : > { %v6450_v22 = vor.u32 %v8827_v19, %v6447_v20  ;;  %v8931_v11 = vld [vmem:[%s13398_s7 + $0x1b4] sm:$0xf] }
 0x159   : > { %1666 = vmatpush.bf16.msra.mxu0 %v6308_v23  ;;  %1680 = vmatpush.bf16.msra.mxu1 %v6364_v2  ;;  %v6437_v23 = vld [vmem:[%s13397_s6 + $0x40] sm:$0xf] }
 0x15a   : > { %1692 = vmatpush.bf16.msra.mxu2 %v6312_v3  ;;  %1706 = vmatpush.bf16.msra.mxu3 %v6368_v39  ;;  %v6438_v2 = vor.u32 %v8826_v24, %v6437_v23  ;;  %v8842_v3 = vld [vmem:[%s13397_s6 + $0xc4] sm:$0xf0]  ;;  %v6442_v39 = vor.u32 %v8825_v26, %v6439_v27 }
 0x15b   : > { %v6502_v38 = vor.u32 %v8842_v3, %v6501_v25 }
 0x15d   : > { %1667 = vmatpush.bf16.msra.mxu0 %v6300_v47  ;;  %1681 = vmatpush.bf16.msra.mxu1 %v6356_v60  ;;  %v6429_v47 = vld [vmem:[%s13397_s6 + $0x30] sm:$0xf] }
 0x15e   : > { %1693 = vmatpush.bf16.msra.mxu2 %v6304_v62  ;;  %1707 = vmatpush.bf16.msra.mxu3 %v6360_v53  ;;  %v6430_v60 = vor.u32 %v8824_v56, %v6429_v47  ;;  %v8840_v62 = vld [vmem:[%s13397_s6 + $0xb4] sm:$0xf0]  ;;  %v6434_v53 = vor.u32 %v8823_v35, %v6431_v61  ;;  %v6669_v47 = vld [vmem:[%s13398_s7 + $0x1d0] sm:$0xf] }
 0x15f   : > { %v6494_v30 = vor.u32 %v8840_v62, %v6493_v57  ;;  %v8921_v62 = vld [vmem:[%s13398_s7 + $0x164] sm:$0xf] }
 0x161   : > { %1668 = vmatpush.bf16.msra.mxu0 %v6292_v8  ;;  %1682 = vmatpush.bf16.msra.mxu1 %v6348_v28  ;;  %v6485_v8 = vld [vmem:[%s13397_s6 + $0xa0] sm:$0xf]  ;;  %v8838_v28 = vld [vmem:[%s13397_s6 + $0xa4] sm:$0xf0] }
 0x162   : > { %1694 = vmatpush.bf16.msra.mxu2 %v6296_v40  ;;  %1708 = vmatpush.bf16.msra.mxu3 %v6352_v58  ;;  %v6486_v32 = vor.u32 %v8838_v28, %v6485_v8  ;;  %v6426_v40 = vor.u32 %v8821_v29, %v6423_v31  ;;  %v6477_v58 = vld [vmem:[%s13397_s6 + $0x90] sm:$0xf] }
 0x163   : > { %v6478_v5 = vor.u32 %v8836_v33, %v6477_v58  ;;  %v8934_v58 = vld [vmem:[%s13398_s7 + $0x1c4] sm:$0xf0] }
 0x165   : > { %1867 = vmatpush.bf16.msrb.mxu1 %v6462_v48  ;;  %1669 = vmatpush.bf16.msra.mxu0 %v6284_v14  ;;  %v8837_v48 = vld [vmem:[%s13397_s6 + $0xa4] sm:$0xf] }
 0x166   : > { %1881 = vmatpush.bf16.msrb.mxu3 %v6518_v34  ;;  %1695 = vmatpush.bf16.msra.mxu2 %v6288_v51  ;;  %v6490_v50 = vor.u32 %v8837_v48, %v6487_v49  ;;  %v8819_v34 = vld [vmem:[%s13397_s6 + $0x14] sm:$0xf]  ;;  %v6405_v51 = vld [vmem:[%s13397_s6] sm:$0xf]  ;;  %v8920_v48 = vld [vmem:[%s13398_s7 + $0x154] sm:$0xf0] }
 0x167   : > { %v6418_v14 = vor.u32 %v8819_v34, %v6415_v4  ;;  %v6607_v34 = vld [vmem:[%s13398_s7 + $0x158] sm:$0xf0]  ;;  %v8933_v4 = vld [vmem:[%s13398_s7 + $0x1c4] sm:$0xf] }
 0x169   : > { %1893 = vmatpush.bf16.msrb.mxu0 %v6466_v37  ;;  %1868 = vmatpush.bf16.msrb.mxu1 %v6454_v52  ;;  %v6482_v37 = vor.u32 %v8835_v15, %v6479_v36  ;;  %v8818_v52 = vld [vmem:[%s13397_s6 + $0x4] sm:$0xf0]  ;;  %v6662_v15 = vor.u32 %v8934_v58, %v6661_v1  ;;  %v6597_v36 = vld [vmem:[%s13398_s7 + $0x140] sm:$0xf] }
 0x16a   : > { %1907 = vmatpush.bf16.msrb.mxu2 %v6522_v41  ;;  %1882 = vmatpush.bf16.msrb.mxu3 %v6510_v12  ;;  %v6406_v55 = vor.u32 %v8818_v52, %v6405_v51  ;;  %v8834_v41 = vld [vmem:[%s13397_s6 + $0x84] sm:$0xf0]  ;;  %v6565_v1 = vld [vmem:[%s13398_s7 + $0x100] sm:$0xf] }
 0x16b   : > { %v6470_v12 = vor.u32 %v8834_v41, %v6469_v54  ;;  %v6653_v54 = vld [vmem:[%s13398_s7 + $0x1b0] sm:$0xf]  ;;  %v8917_v41 = vld [vmem:[%s13398_s7 + $0x144] sm:$0xf]  ;;  %v8910_v58 = vld [vmem:[%s13398_s7 + $0x104] sm:$0xf0] }
 0x16d   : > { %1894 = vmatpush.bf16.msrb.mxu0 %v6458_v17  ;;  %1869 = vmatpush.bf16.msrb.mxu1 %v6446_v18  ;;  %v6471_v17 = vld [vmem:[%s13397_s6 + $0x88] sm:$0xf0] }
 0x16e   : > { %1908 = vmatpush.bf16.msrb.mxu2 %v6514_v21  ;;  %1883 = vmatpush.bf16.msrb.mxu3 %v6502_v38  ;;  %v6474_v18 = vor.u32 %v8833_v16, %v6471_v17  ;;  %v6589_v17 = vld [vmem:[%s13398_s7 + $0x130] sm:$0xf] }
 0x171   : > { %1895 = vmatpush.bf16.msrb.mxu0 %v6450_v22  ;;  %1870 = vmatpush.bf16.msrb.mxu1 %v6438_v2 }
 0x172   : > { %1909 = vmatpush.bf16.msrb.mxu2 %v6506_v44  ;;  %1884 = vmatpush.bf16.msrb.mxu3 %v6494_v30  ;;  %v8922_v44 = vld [vmem:[%s13398_s7 + $0x164] sm:$0xf0]  ;;  %v6615_v30 = vld [vmem:[%s13398_s7 + $0x168] sm:$0xf0] }
 0x173   : > { %v6614_v29 = vor.u32 %v8922_v44, %v6613_v43  ;;  %v6581_v43 = vld [vmem:[%s13398_s7 + $0x120] sm:$0xf]  ;;  %v8914_v44 = vld [vmem:[%s13398_s7 + $0x124] sm:$0xf0] }
 0x175   : > { %1896 = vmatpush.bf16.msrb.mxu0 %v6442_v39  ;;  %1871 = vmatpush.bf16.msrb.mxu1 %v6430_v60  ;;  %v8936_v60 = vld [vmem:[%s13398_s7 + $0x1d4] sm:$0xf0] }
 0x176   : > { %1910 = vmatpush.bf16.msrb.mxu2 %v6498_v45  ;;  %1885 = vmatpush.bf16.msrb.mxu3 %v6486_v32  ;;  %v6670_v31 = vor.u32 %v8936_v60, %v6669_v47  ;;  %v6618_v32 = vor.u32 %v8921_v62, %v6615_v30  ;;  %v8928_v60 = vld [vmem:[%s13398_s7 + $0x194] sm:$0xf0]  ;;  %v8913_v62 = vld [vmem:[%s13398_s7 + $0x124] sm:$0xf]  ;;  %v6639_v30 = vld [vmem:[%s13398_s7 + $0x198] sm:$0xf0] }
 0x179   : > { %1897 = vmatpush.bf16.msrb.mxu0 %v6434_v53  ;;  %1872 = vmatpush.bf16.msrb.mxu1 %v6422_v9  ;;  %v8935_v53 = vld [vmem:[%s13398_s7 + $0x1d4] sm:$0xf] }
 0x17a   : > { %1911 = vmatpush.bf16.msrb.mxu2 %v6490_v50  ;;  %1886 = vmatpush.bf16.msrb.mxu3 %v6478_v5  ;;  %v6674_v0 = vor.u32 %v8935_v53, %v6671_v46  ;;  %v6663_v5 = vld [vmem:[%s13398_s7 + $0x1c8] sm:$0xf0]  ;;  %v6573_v46 = vld [vmem:[%s13398_s7 + $0x110] sm:$0xf] }
 0x17b   : > { %v6666_v52 = vor.u32 %v8933_v4, %v6663_v5  ;;  %v8924_v5 = vld [vmem:[%s13398_s7 + $0x174] sm:$0xf0] }
 0x17d   : > { %1898 = vmatpush.bf16.msrb.mxu0 %v6426_v40  ;;  %1873 = vmatpush.bf16.msrb.mxu1 %v6414_v59  ;;  %v6605_v40 = vld [vmem:[%s13398_s7 + $0x150] sm:$0xf]  ;;  %v8919_v59 = vld [vmem:[%s13398_s7 + $0x154] sm:$0xf] }
 0x17e   : > { %1912 = vmatpush.bf16.msrb.mxu2 %v6482_v37  ;;  %1887 = vmatpush.bf16.msrb.mxu3 %v6470_v12  ;;  %v8918_v37 = vld [vmem:[%s13398_s7 + $0x144] sm:$0xf0]  ;;  %v6610_v51 = vor.u32 %v8919_v59, %v6607_v34  ;;  %v6655_v12 = vld [vmem:[%s13398_s7 + $0x1b8] sm:$0xf0]  ;;  %v6621_v59 = vld [vmem:[%s13398_s7 + $0x170] sm:$0xf] }
 0x181   : > { %1899 = vmatpush.bf16.msrb.mxu0 %v6418_v14  ;;  %1874 = vmatpush.bf16.msrb.mxu1 %v6406_v55  ;;  %v6606_v14 = vor.u32 %v8920_v48, %v6605_v40  ;;  %v8932_v55 = vld [vmem:[%s13398_s7 + $0x1b4] sm:$0xf0]  ;;  %v6631_v40 = vld [vmem:[%s13398_s7 + $0x188] sm:$0xf0] }
 0x182   : > { %1913 = vmatpush.bf16.msrb.mxu2 %v6474_v18  ;;  %v6654_v16 = vor.u32 %v8932_v55, %v6653_v54  ;;  %v8916_v18 = vld [vmem:[%s13398_s7 + $0x134] sm:$0xf0]  ;;  %v8861_v54 = vld [vmem:[%s13398_s7 + $0x74] sm:$0xf]  ;;  %v6737_v55 = vld [vmem:[%s13398_s7 + $0x78] sm:$0xf0] }
 0x185   : > { %1900 = vmatpush.bf16.msrb.mxu0 %v6410_v13  ;;  %v6598_v13 = vor.u32 %v8918_v37, %v6597_v36  ;;  %v8923_v36 = vld [vmem:[%s13398_s7 + $0x174] sm:$0xf]  ;;  %v6623_v37 = vld [vmem:[%s13398_s7 + $0x178] sm:$0xf0] }
 0x1c5   : > { %v1311_v19 = vpop.f32.mrf.mxu0  ;;  %v1334_v20 = vpop.f32.mrf.mxu1 }
 0x1ca   : > { %v1365_v21 = vpop.f32.mrf.mxu2  ;;  %v1388_v22 = vpop.f32.mrf.mxu3 }
 0x1cb   : > { %v10365_v25 = vmax.f32 %v1311_v19, %v1365_v21  ;;  %v10367_v26 = vmax.f32 %v1334_v20, %v1388_v22  ;;  %v6602_v19 = vor.u32 %v8917_v41, %v6599_v10  ;;  %v6658_v20 = vor.u32 %v8931_v11, %v6655_v12  ;;  %v6645_v21 = vld [vmem:[%s13398_s7 + $0x1a0] sm:$0xf]  ;;  %v8930_v22 = vld [vmem:[%s13398_s7 + $0x1a4] sm:$0xf0]  ;;  %v6557_v11 = vld [vmem:[%s13398_s7 + $0xf0] sm:$0xf] }
 0x1cc   : > { %v6566_v41 = vor.u32 %v8910_v58, %v6565_v1  ;;  %v6622_v10 = vor.u32 %v8924_v5, %v6621_v59  ;;  %v8871_v1 = vld [vmem:[%s13398_s7 + $0xc4] sm:$0xf]  ;;  %v6777_v58 = vld [vmem:[%s13398_s7 + $0xc8] sm:$0xf0]  ;;  %v6767_v5 = vld [vmem:[%s13398_s7 + $0xb0] sm:$0xf] }
 0x1cd   : > { %v1314_v23 = vpop.f32.mrf.mxu0  ;;  %v1337_v24 = vpop.f32.mrf.mxu1  ;;  %v10515_v53 = vpack.c.bf16 %v10365_v25, %v10365_v25 }
 0x1d2   : > { %v1368_v2 = vpop.f32.mrf.mxu2  ;;  %v1391_v3 = vpop.f32.mrf.mxu3 }
 0x1d3   : > { %v1396_v27 = vmax.f32 %v1314_v23, %v1368_v2  ;;  %v1397_v38 = vmax.f32 %v1337_v24, %v1391_v3  ;;  %v8915_v23 = vld [vmem:[%s13398_s7 + $0x134] sm:$0xf]  ;;  %v6591_v24 = vld [vmem:[%s13398_s7 + $0x138] sm:$0xf0]  ;;  %v8929_v2 = vld [vmem:[%s13398_s7 + $0x1a4] sm:$0xf] }
 0x1d4   : > { %v6647_v3 = vld [vmem:[%s13398_s7 + $0x1a8] sm:$0xf0]  ;;  %v6594_v47 = vor.u32 %v8915_v23, %v6591_v24  ;;  %v8876_v23 = vld [vmem:[%s13398_s7 + $0xe4] sm:$0xf0] }
 0x1d5   : > { %v10370_v39 = vpack.c.bf16 %v1396_v27, %v10365_v25  ;;  %v10373_v42 = vpack.c.bf16 %v1397_v38, %v10367_v26  ;;  %v6590_v27 = vor.u32 %v8916_v18, %v6589_v17  ;;  %v6646_v38 = vor.u32 %v8930_v22, %v6645_v21  ;;  %v8907_v17 = vld [vmem:[%s13398_s7 + $0xf4] sm:$0xf]  ;;  %v6559_v18 = vld [vmem:[%s13398_s7 + $0xf8] sm:$0xf0]  ;;  %v6727_v21 = vld [vmem:[%s13398_s7 + $0x60] sm:$0xf] }
 0x1d6   : > { %v6791_v22 = vld [vmem:[%s13398_s7 + $0xe0] sm:$0xf]  ;;  %v8860_v24 = vld [vmem:[%s13398_s7 + $0x64] sm:$0xf0] }
 0x1d7   : > { %v1496_v56 = vshll.u32 %v10370_v39, 16  ;;  %v1501_v57 = vshrl.u32 %v10373_v42, 16  ;;  %v1503_v35 = vshll.u32 %v10373_v42, 16  ;;  %v1494_v61 = vshrl.u32 %v10370_v39, 16 }
 0x1d9   : > { %v2864_v63 = vrot.slane %v1496_v56, 2  ;;  %v2866_v6 = vrot.slane %v1501_v57, 1  ;;  %v1498_v45 = vrot.slane %v1496_v56, 1  ;;  %v1505_v7 = vrot.slane %v1503_v35, 1 }
 0x1da   : > { %v2867_v8 = vrot.slane %v1503_v35, 2  ;;  %v2863_v9 = vrot.slane %v1494_v61, 1  ;;  %v6650_v56 = vor.u32 %v8929_v2, %v6647_v3  ;;  %v6583_v35 = vld [vmem:[%s13398_s7 + $0x128] sm:$0xf0]  ;;  %v8859_v2 = vld [vmem:[%s13398_s7 + $0x64] sm:$0xf] }
 0x1db   : > { %v10403_v28 = vor.u32 %v1498_v45, %v1494_v61  ;;  %v10413_v50 = vor.u32 %v1505_v7, %v1501_v57  ;;  %v6637_v57 = vld [vmem:[%s13398_s7 + $0x190] sm:$0xf]  ;;  %v8927_v61 = vld [vmem:[%s13398_s7 + $0x194] sm:$0xf]  ;;  %v8912_v7 = vld [vmem:[%s13398_s7 + $0x114] sm:$0xf0]  ;;  %v6586_v25 = vor.u32 %v8913_v62, %v6583_v35 }
 0x1dc   : > { %v10411_v49 = vor.u32 %v2867_v8, %v2866_v6  ;;  %v10424_v33 = vor.u32 %v2864_v63, %v2863_v9  ;;  %v10519_v63 = vpack.c.bf16 %v10367_v26, %v10367_v26  ;;  %v6582_v6 = vor.u32 %v8914_v44, %v6581_v43  ;;  %v6629_v26 = vld [vmem:[%s13398_s7 + $0x180] sm:$0xf]  ;;  %v8926_v9 = vld [vmem:[%s13398_s7 + $0x184] sm:$0xf0]  ;;  %v6729_v3 = vld [vmem:[%s13398_s7 + $0x68] sm:$0xf0] }
 0x1dd   : > { %1670 = vmatmul.bf16.vlgmr.msra.gmra.mxu0 %v10403_v28  ;;  %1696 = vmatmul.bf16.vlgmr.msra.gmra.mxu2 %v10403_v28  ;;  %v6638_v45 = vor.u32 %v8928_v60, %v6637_v57  ;;  %v6642_v8 = vor.u32 %v8927_v61, %v6639_v30  ;;  %v6574_v48 = vor.u32 %v8912_v7, %v6573_v46  ;;  %v6793_v43 = vld [vmem:[%s13398_s7 + $0xe8] sm:$0xf0]  ;;  %v6719_v60 = vld [vmem:[%s13398_s7 + $0x50] sm:$0xf]  ;;  %v8874_v35 = vld [vmem:[%s13398_s7 + $0xd4] sm:$0xf0] }
 0x1de   : > { %6401 = vmatmul.msk.bf16.vlgmr.msra.gmra.mxu1 %vm1658_vm6, %v10413_v50  ;;  %6402 = vmatmul.msk.bf16.vlgmr.msra.gmra.mxu3 %vm1658_vm6, %v10413_v50  ;;  %v6562_v44 = vor.u32 %v8907_v17, %v6559_v18  ;;  %v6732_v57 = vor.u32 %v8859_v2, %v6729_v3  ;;  %v6783_v62 = vld [vmem:[%s13398_s7 + $0xd0] sm:$0xf]  ;;  %v8858_v30 = vld [vmem:[%s13398_s7 + $0x54] sm:$0xf0]  ;;  %v8873_v46 = vld [vmem:[%s13398_s7 + $0xd4] sm:$0xf] }
 0x1df   : > { %2100 = vmatpush.bf16.msra.mxu3 %v6614_v29  ;;  %2114 = vmatpush.bf16.msra.mxu1 %v6670_v31  ;;  %v8911_v29 = vld [vmem:[%s13398_s7 + $0x114] sm:$0xf]  ;;  %v6575_v31 = vld [vmem:[%s13398_s7 + $0x118] sm:$0xf0]  ;;  %v8851_v17 = vld [vmem:[%s13398_s7 + $0x24] sm:$0xf] }
 0x1e0   : > { %2126 = vmatpush.bf16.msra.mxu2 %v6618_v32  ;;  %2140 = vmatpush.bf16.msra.mxu0 %v6674_v0  ;;  %v8925_v32 = vld [vmem:[%s13398_s7 + $0x184] sm:$0xf]  ;;  %v6630_v0 = vor.u32 %v8926_v9, %v6629_v26  ;;  %v6578_v34 = vor.u32 %v8911_v29, %v6575_v31  ;;  %v6785_v7 = vld [vmem:[%s13398_s7 + $0xd8] sm:$0xf0]  ;;  %v6711_v9 = vld [vmem:[%s13398_s7 + $0x40] sm:$0xf] }
 0x1e1   : > { %v6634_v4 = vor.u32 %v8925_v32, %v6631_v40  ;;  %v6775_v29 = vld [vmem:[%s13398_s7 + $0xc0] sm:$0xf]  ;;  %v8872_v31 = vld [vmem:[%s13398_s7 + $0xc4] sm:$0xf0]  ;;  %v6788_v32 = vor.u32 %v8873_v46, %v6785_v7  ;;  %v6697_v18 = vld [vmem:[%s13398_s7 + $0x28] sm:$0xf0] }
 0x1e2   : > { %v8856_v40 = vld [vmem:[%s13398_s7 + $0x44] sm:$0xf0]  ;;  %v6776_v59 = vor.u32 %v8872_v31, %v6775_v29  ;;  %v6751_v2 = vld [vmem:[%s13398_s7 + $0x90] sm:$0xf]  ;;  %v8866_v3 = vld [vmem:[%s13398_s7 + $0x94] sm:$0xf0] }
 0x1e3   : > { %2101 = vmatpush.bf16.msra.mxu3 %v6606_v14  ;;  %2115 = vmatpush.bf16.msra.mxu1 %v6662_v15  ;;  %v8909_v14 = vld [vmem:[%s13398_s7 + $0x104] sm:$0xf]  ;;  %v6567_v15 = vld [vmem:[%s13398_s7 + $0x108] sm:$0xf0]  ;;  %v6943_v29 = vld [vmem:[%s13397_s6 + $0x2c0] sm:$0xf] }
 0x1e4   : > { %2127 = vmatpush.bf16.msra.mxu2 %v6610_v51  ;;  %2141 = vmatpush.bf16.msra.mxu0 %v6666_v52  ;;  %v6735_v51 = vld [vmem:[%s13398_s7 + $0x70] sm:$0xf]  ;;  %v8862_v52 = vld [vmem:[%s13398_s7 + $0x74] sm:$0xf0]  ;;  %v6570_v12 = vor.u32 %v8909_v14, %v6567_v15  ;;  %v6681_v7 = vld [vmem:[%s13398_s7 + $0x8] sm:$0xf0] }
 0x1e5   : > { %v8870_v14 = vld [vmem:[%s13398_s7 + $0xb4] sm:$0xf0] }
 0x1e6   : > { %v8854_v15 = vld [vmem:[%s13398_s7 + $0x34] sm:$0xf0] }
 0x1e7   : > { %2102 = vmatpush.bf16.msra.mxu3 %v6598_v13  ;;  %2116 = vmatpush.bf16.msra.mxu1 %v6654_v16  ;;  %v6626_v13 = vor.u32 %v8923_v36, %v6623_v37  ;;  %v8908_v16 = vld [vmem:[%s13398_s7 + $0xf4] sm:$0xf0]  ;;  %v8853_v36 = vld [vmem:[%s13398_s7 + $0x34] sm:$0xf]  ;;  %v6705_v37 = vld [vmem:[%s13398_s7 + $0x38] sm:$0xf0] }
 0x1e8   : > { %2128 = vmatpush.bf16.msra.mxu2 %v6602_v19  ;;  %2142 = vmatpush.bf16.msra.mxu0 %v6658_v20  ;;  %v6736_v19 = vor.u32 %v8862_v52, %v6735_v51  ;;  %v6740_v20 = vor.u32 %v8861_v54, %v6737_v55  ;;  %v8869_v51 = vld [vmem:[%s13398_s7 + $0xb4] sm:$0xf]  ;;  %v6769_v52 = vld [vmem:[%s13398_s7 + $0xb8] sm:$0xf0]  ;;  %v6768_v54 = vor.u32 %v8870_v14, %v6767_v5  ;;  %v6879_v14 = vld [vmem:[%s13397_s6 + $0x240] sm:$0xf] }
 0x1eb   : > { %2103 = vmatpush.bf16.msra.mxu3 %v6590_v27  ;;  %2117 = vmatpush.bf16.msra.mxu1 %v6646_v38  ;;  %v6558_v27 = vor.u32 %v8908_v16, %v6557_v11  ;;  %v8875_v38 = vld [vmem:[%s13398_s7 + $0xe4] sm:$0xf]  ;;  %v6759_v11 = vld [vmem:[%s13398_s7 + $0xa0] sm:$0xf]  ;;  %v8852_v16 = vld [vmem:[%s13398_s7 + $0x24] sm:$0xf0] }
 0x1ec   : > { %2129 = vmatpush.bf16.msra.mxu2 %v6594_v47  ;;  %2143 = vmatpush.bf16.msra.mxu0 %v6650_v56  ;;  %v6792_v47 = vor.u32 %v8876_v23, %v6791_v22  ;;  %v6728_v56 = vor.u32 %v8860_v24, %v6727_v21  ;;  %v6796_v61 = vor.u32 %v8875_v38, %v6793_v43  ;;  %v6687_v24 = vld [vmem:[%s13398_s7 + $0x10] sm:$0xf]  ;;  %v8850_v38 = vld [vmem:[%s13398_s7 + $0x14] sm:$0xf0]  ;;  %v8849_v43 = vld [vmem:[%s13398_s7 + $0x14] sm:$0xf] }
 0x1ed   : > { %1901 = vmatmul.bf16.vlgmr.msrb.gmra.mxu0 %v10515_v53  ;;  %6524 = vmatmul.msk.bf16.vlgmr.msrb.gmra.mxu2 %vm1658_vm6, %v10519_v63  ;;  %v6700_v23 = vor.u32 %v8851_v17, %v6697_v18  ;;  %v8962_v18 = vld [vmem:[%s13397_s6 + $0x2a4] sm:$0xf0] }
 0x1ee   : > { %1875 = vmatmul.bf16.vlgmr.msrb.gmra.mxu1 %v10515_v53  ;;  %6523 = vmatmul.msk.bf16.vlgmr.msrb.gmra.mxu3 %vm1658_vm6, %v10519_v63 }
 0x1ef   : > { %2104 = vmatpush.bf16.msra.mxu3 %v6582_v6  ;;  %2118 = vmatpush.bf16.msra.mxu1 %v6638_v45  ;;  %v8857_v6 = vld [vmem:[%s13398_s7 + $0x54] sm:$0xf]  ;;  %v6721_v45 = vld [vmem:[%s13398_s7 + $0x58] sm:$0xf0] }
 0x1f0   : > { %2130 = vmatpush.bf16.msra.mxu2 %v6586_v25  ;;  %2144 = vmatpush.bf16.msra.mxu0 %v6642_v8  ;;  %v6784_v25 = vor.u32 %v8874_v35, %v6783_v62  ;;  %v6720_v8 = vor.u32 %v8858_v30, %v6719_v60  ;;  %v6724_v26 = vor.u32 %v8857_v6, %v6721_v45  ;;  %v6679_v60 = vld [vmem:[%s13398_s7] sm:$0xf]  ;;  %v8848_v62 = vld [vmem:[%s13398_s7 + $0x4] sm:$0xf0]  ;;  %v8847_v45 = vld [vmem:[%s13398_s7 + $0x4] sm:$0xf] }
 0x1f1   : > { %v6688_v35 = vor.u32 %v8850_v38, %v6687_v24  ;;  %v6743_v30 = vld [vmem:[%s13398_s7 + $0x80] sm:$0xf]  ;;  %v8864_v6 = vld [vmem:[%s13398_s7 + $0x84] sm:$0xf0]  ;;  %v8960_v38 = vld [vmem:[%s13397_s6 + $0x294] sm:$0xf0] }
 0x1f2   : > { %v6744_v31 = vor.u32 %v8864_v6, %v6743_v30  ;;  %v6911_v30 = vld [vmem:[%s13397_s6 + $0x280] sm:$0xf] }
 0x1f3   : > { %2105 = vmatpush.bf16.msra.mxu3 %v6574_v48  ;;  %2119 = vmatpush.bf16.msra.mxu1 %v6630_v0  ;;  %v8855_v48 = vld [vmem:[%s13398_s7 + $0x44] sm:$0xf]  ;;  %v6713_v0 = vld [vmem:[%s13398_s7 + $0x48] sm:$0xf0] }
 0x1f4   : > { %2131 = vmatpush.bf16.msra.mxu2 %v6578_v34  ;;  %2145 = vmatpush.bf16.msra.mxu0 %v6634_v4  ;;  %v6712_v34 = vor.u32 %v8856_v40, %v6711_v9  ;;  %v6716_v4 = vor.u32 %v8855_v48, %v6713_v0  ;;  %v8952_v9 = vld [vmem:[%s13397_s6 + $0x254] sm:$0xf0]  ;;  %v8951_v40 = vld [vmem:[%s13397_s6 + $0x254] sm:$0xf]  ;;  %v6889_v48 = vld [vmem:[%s13397_s6 + $0x258] sm:$0xf0]  ;;  %v6680_v0 = vor.u32 %v8848_v62, %v6679_v60 }
 0x1f5   : > { %v6892_v5 = vor.u32 %v8951_v40, %v6889_v48  ;;  %v6903_v40 = vld [vmem:[%s13397_s6 + $0x270] sm:$0xf] }
 0x1f7   : > { %2106 = vmatpush.bf16.msra.mxu3 %v6566_v41  ;;  %2120 = vmatpush.bf16.msra.mxu1 %v6622_v10  ;;  %v6708_v41 = vor.u32 %v8853_v36, %v6705_v37  ;;  %v6695_v10 = vld [vmem:[%s13398_s7 + $0x20] sm:$0xf]  ;;  %v8964_v37 = vld [vmem:[%s13397_s6 + $0x2b4] sm:$0xf0] }
 0x1f8   : > { %2132 = vmatpush.bf16.msra.mxu2 %v6570_v12  ;;  %2146 = vmatpush.bf16.msra.mxu0 %v6626_v13  ;;  %v8868_v12 = vld [vmem:[%s13398_s7 + $0xa4] sm:$0xf0]  ;;  %v6772_v13 = vor.u32 %v8869_v51, %v6769_v52  ;;  %v6696_v22 = vor.u32 %v8852_v16, %v6695_v10  ;;  %v8949_v51 = vld [vmem:[%s13397_s6 + $0x244] sm:$0xf]  ;;  %v6881_v52 = vld [vmem:[%s13397_s6 + $0x248] sm:$0xf0] }
 0x1f9   : > { %v6760_v21 = vor.u32 %v8868_v12, %v6759_v11  ;;  %v6884_v11 = vor.u32 %v8949_v51, %v6881_v52  ;;  %v6871_v12 = vld [vmem:[%s13397_s6 + $0x230] sm:$0xf]  ;;  %v6927_v16 = vld [vmem:[%s13397_s6 + $0x2a0] sm:$0xf]  ;;  %v8939_v51 = vld [vmem:[%s13397_s6 + $0x1f4] sm:$0xf] }
 0x1fa   : > { %v6928_v24 = vor.u32 %v8962_v18, %v6927_v16  ;;  %v6841_v52 = vld [vmem:[%s13397_s6 + $0x1f8] sm:$0xf0]  ;;  %v6831_v18 = vld [vmem:[%s13397_s6 + $0x1e0] sm:$0xf] }
 0x1fb   : > { %2302 = vmatpush.bf16.msrb.mxu1 %v6736_v19  ;;  %2107 = vmatpush.bf16.msra.mxu3 %v6558_v27  ;;  %v8867_v19 = vld [vmem:[%s13398_s7 + $0xa4] sm:$0xf] }
 0x1fc   : > { %2328 = vmatpush.bf16.msrb.mxu0 %v6740_v20  ;;  %2133 = vmatpush.bf16.msra.mxu2 %v6562_v44  ;;  %v6761_v20 = vld [vmem:[%s13398_s7 + $0xa8] sm:$0xf0]  ;;  %v6689_v44 = vld [vmem:[%s13398_s7 + $0x18] sm:$0xf0] }
 0x1fd   : > { %6676 = vmatmul.msk.bf16.vlgmr.msra.gmra.mxu0 %vm1658_vm6, %v10413_v50  ;;  %v6764_v27 = vor.u32 %v8867_v19, %v6761_v20  ;;  %v8947_v19 = vld [vmem:[%s13397_s6 + $0x234] sm:$0xf]  ;;  %v6873_v20 = vld [vmem:[%s13397_s6 + $0x238] sm:$0xf0] }
 0x1fe   : > { %2108 = vmatmul.bf16.vlgmr.msra.gmra.mxu3 %v10403_v28  ;;  %6675 = vmatmul.msk.bf16.vlgmr.msra.gmra.mxu1 %vm1658_vm6, %v10413_v50  ;;  %v6780_v50 = vor.u32 %v8871_v1, %v6777_v58  ;;  %v6684_v1 = vor.u32 %v8847_v45, %v6681_v7  ;;  %v8965_v58 = vld [vmem:[%s13397_s6 + $0x2c4] sm:$0xf]  ;;  %v8958_v45 = vld [vmem:[%s13397_s6 + $0x284] sm:$0xf0]  ;;  %v6857_v7 = vld [vmem:[%s13397_s6 + $0x218] sm:$0xf0] }
 0x1ff   : > { %2316 = vmatpush.bf16.msrb.mxu3 %v6792_v47  ;;  %2303 = vmatpush.bf16.msrb.mxu1 %v6728_v56  ;;  %v8865_v47 = vld [vmem:[%s13398_s7 + $0x94] sm:$0xf]  ;;  %v6753_v56 = vld [vmem:[%s13398_s7 + $0x98] sm:$0xf0] }
 0x200   : > { %2329 = vmatpush.bf16.msrb.mxu0 %v6732_v57  ;;  %2342 = vmatpush.bf16.msrb.mxu2 %v6796_v61  ;;  %v6752_v57 = vor.u32 %v8866_v3, %v6751_v2  ;;  %v6692_v61 = vor.u32 %v8849_v43, %v6689_v44  ;;  %v6756_v46 = vor.u32 %v8865_v47, %v6753_v56  ;;  %v8946_v3 = vld [vmem:[%s13397_s6 + $0x224] sm:$0xf0]  ;;  %v8945_v43 = vld [vmem:[%s13397_s6 + $0x224] sm:$0xf]  ;;  %v6865_v44 = vld [vmem:[%s13397_s6 + $0x228] sm:$0xf0] }
 0x201   : > { %2134 = vmatmul.bf16.vlgmr.msra.gmra.mxu2 %v10403_v28  ;;  %v6703_v28 = vld [vmem:[%s13398_s7 + $0x30] sm:$0xf]  ;;  %v6876_v2 = vor.u32 %v8947_v19, %v6873_v20  ;;  %v8959_v47 = vld [vmem:[%s13397_s6 + $0x294] sm:$0xf]  ;;  %v6921_v56 = vld [vmem:[%s13397_s6 + $0x298] sm:$0xf0]  ;;  %v6868_v62 = vor.u32 %v8945_v43, %v6865_v44 }
 0x202   : > { %v6704_v55 = vor.u32 %v8854_v15, %v6703_v28  ;;  %v6935_v15 = vld [vmem:[%s13397_s6 + $0x2b0] sm:$0xf]  ;;  %v6924_v6 = vor.u32 %v8959_v47, %v6921_v56  ;;  %v8938_v19 = vld [vmem:[%s13397_s6 + $0x1e4] sm:$0xf0]  ;;  %v8937_v20 = vld [vmem:[%s13397_s6 + $0x1e4] sm:$0xf] }
 0x203   : > { %2317 = vmatpush.bf16.msrb.mxu3 %v6784_v25  ;;  %2304 = vmatpush.bf16.msrb.mxu1 %v6720_v8  ;;  %v8863_v25 = vld [vmem:[%s13398_s7 + $0x84] sm:$0xf]  ;;  %v6745_v8 = vld [vmem:[%s13398_s7 + $0x88] sm:$0xf0]  ;;  %v6936_v10 = vor.u32 %v8964_v37, %v6935_v15  ;;  %v6895_v15 = vld [vmem:[%s13397_s6 + $0x260] sm:$0xf] }
 0x204   : > { %2330 = vmatpush.bf16.msrb.mxu0 %v6724_v26  ;;  %2343 = vmatpush.bf16.msrb.mxu2 %v6788_v32  ;;  %v6887_v26 = vld [vmem:[%s13397_s6 + $0x250] sm:$0xf]  ;;  %v8966_v32 = vld [vmem:[%s13397_s6 + $0x2c4] sm:$0xf0]  ;;  %v7033_v43 = vld [vmem:[%s13398_s7 + $0x248] sm:$0xf0] }
 0x205   : > { %v6944_v28 = vor.u32 %v8966_v32, %v6943_v29  ;;  %v8942_v32 = vld [vmem:[%s13397_s6 + $0x204] sm:$0xf0]  ;;  %v8995_v44 = vld [vmem:[%s13398_s7 + $0x2c4] sm:$0xf]  ;;  %v7097_v47 = vld [vmem:[%s13398_s7 + $0x2c8] sm:$0xf0] }
 0x207   : > { %2318 = vmatpush.bf16.msrb.mxu3 %v6776_v59  ;;  %2305 = vmatpush.bf16.msrb.mxu1 %v6712_v34  ;;  %v6945_v59 = vld [vmem:[%s13397_s6 + $0x2c8] sm:$0xf0]  ;;  %v6748_v34 = vor.u32 %v8863_v25, %v6745_v8  ;;  %v8957_v25 = vld [vmem:[%s13397_s6 + $0x284] sm:$0xf] }
 0x208   : > { %2331 = vmatpush.bf16.msrb.mxu0 %v6716_v4  ;;  %2344 = vmatpush.bf16.msrb.mxu2 %v6780_v50  ;;  %v6888_v4 = vor.u32 %v8952_v9, %v6887_v26  ;;  %v8950_v50 = vld [vmem:[%s13397_s6 + $0x244] sm:$0xf0]  ;;  %v6948_v36 = vor.u32 %v8965_v58, %v6945_v59  ;;  %v6913_v8 = vld [vmem:[%s13397_s6 + $0x288] sm:$0xf0]  ;;  %v6912_v9 = vor.u32 %v8958_v45, %v6911_v30  ;;  %v8955_v59 = vld [vmem:[%s13397_s6 + $0x274] sm:$0xf] }
 0x209   : > { %v6916_v48 = vor.u32 %v8957_v25, %v6913_v8  ;;  %v6849_v58 = vld [vmem:[%s13397_s6 + $0x208] sm:$0xf0]  ;;  %v7087_v45 = vld [vmem:[%s13398_s7 + $0x2b0] sm:$0xf]  ;;  %v7025_v25 = vld [vmem:[%s13398_s7 + $0x238] sm:$0xf0] }
 0x20a   : > { %v8993_v8 = vld [vmem:[%s13398_s7 + $0x2b4] sm:$0xf] }
 0x20b   : > { %2319 = vmatpush.bf16.msrb.mxu3 %v6768_v54  ;;  %2306 = vmatpush.bf16.msrb.mxu1 %v6704_v55  ;;  %v8963_v54 = vld [vmem:[%s13397_s6 + $0x2b4] sm:$0xf]  ;;  %v6937_v55 = vld [vmem:[%s13397_s6 + $0x2b8] sm:$0xf0] }
 0x20c   : > { %2332 = vmatpush.bf16.msrb.mxu0 %v6708_v41  ;;  %2345 = vmatpush.bf16.msrb.mxu2 %v6772_v13  ;;  %v6880_v41 = vor.u32 %v8950_v50, %v6879_v14  ;;  %v8948_v13 = vld [vmem:[%s13397_s6 + $0x234] sm:$0xf0]  ;;  %v6940_v17 = vor.u32 %v8963_v54, %v6937_v55  ;;  %v8953_v54 = vld [vmem:[%s13397_s6 + $0x264] sm:$0xf]  ;;  %v6897_v55 = vld [vmem:[%s13397_s6 + $0x268] sm:$0xf0] }
 0x20d   : > { %v8940_v50 = vld [vmem:[%s13397_s6 + $0x1f4] sm:$0xf0] }
 0x20f   : > { %2320 = vmatpush.bf16.msrb.mxu3 %v6760_v21  ;;  %2307 = vmatpush.bf16.msrb.mxu1 %v6696_v22  ;;  %v8961_v21 = vld [vmem:[%s13397_s6 + $0x2a4] sm:$0xf]  ;;  %v6929_v22 = vld [vmem:[%s13397_s6 + $0x2a8] sm:$0xf0] }
 0x210   : > { %2333 = vmatpush.bf16.msrb.mxu0 %v6700_v23  ;;  %2346 = vmatpush.bf16.msrb.mxu2 %v6764_v27  ;;  %v6872_v23 = vor.u32 %v8948_v13, %v6871_v12  ;;  %v6919_v27 = vld [vmem:[%s13397_s6 + $0x290] sm:$0xf]  ;;  %v8981_v12 = vld [vmem:[%s13398_s7 + $0x254] sm:$0xf]  ;;  %v7041_v13 = vld [vmem:[%s13398_s7 + $0x258] sm:$0xf0] }
 0x211   : > { %v6920_v60 = vor.u32 %v8960_v38, %v6919_v27  ;;  %v8996_v27 = vld [vmem:[%s13398_s7 + $0x2c4] sm:$0xf0]  ;;  %v6832_v38 = vor.u32 %v8938_v19, %v6831_v18  ;;  %v7063_v19 = vld [vmem:[%s13398_s7 + $0x280] sm:$0xf] }
 0x213   : > { %2321 = vmatpush.bf16.msrb.mxu3 %v6752_v57  ;;  %2308 = vmatpush.bf16.msrb.mxu1 %v6688_v35  ;;  %v6855_v35 = vld [vmem:[%s13397_s6 + $0x210] sm:$0xf] }
 0x214   : > { %2334 = vmatpush.bf16.msrb.mxu0 %v6692_v61  ;;  %2347 = vmatpush.bf16.msrb.mxu2 %v6756_v46  ;;  %v8944_v61 = vld [vmem:[%s13397_s6 + $0x214] sm:$0xf0]  ;;  %v8943_v46 = vld [vmem:[%s13397_s6 + $0x214] sm:$0xf] }
 0x215   : > { %v6856_v26 = vor.u32 %v8944_v61, %v6855_v35  ;;  %v6860_v29 = vor.u32 %v8943_v46, %v6857_v7  ;;  %v7023_v35 = vld [vmem:[%s13398_s7 + $0x230] sm:$0xf]  ;;  %v8978_v61 = vld [vmem:[%s13398_s7 + $0x234] sm:$0xf0]  ;;  %v8977_v7 = vld [vmem:[%s13398_s7 + $0x234] sm:$0xf] }
 0x216   : > { %v8994_v46 = vld [vmem:[%s13398_s7 + $0x2b4] sm:$0xf0] }
 0x217   : > { %2322 = vmatpush.bf16.msrb.mxu3 %v6744_v31  ;;  %2309 = vmatpush.bf16.msrb.mxu1 %v6680_v0  ;;  %v6847_v31 = vld [vmem:[%s13397_s6 + $0x200] sm:$0xf]  ;;  %v8956_v0 = vld [vmem:[%s13397_s6 + $0x274] sm:$0xf0] }
 0x218   : > { %2335 = vmatpush.bf16.msrb.mxu0 %v6684_v1  ;;  %2348 = vmatpush.bf16.msrb.mxu2 %v6748_v34  ;;  %v8941_v1 = vld [vmem:[%s13397_s6 + $0x204] sm:$0xf]  ;;  %v6905_v34 = vld [vmem:[%s13397_s6 + $0x278] sm:$0xf0] }
 0x219   : > { %v6852_v14 = vor.u32 %v8941_v1, %v6849_v58  ;;  %v6908_v37 = vor.u32 %v8955_v59, %v6905_v34  ;;  %v7079_v1 = vld [vmem:[%s13398_s7 + $0x2a0] sm:$0xf]  ;;  %v8992_v58 = vld [vmem:[%s13398_s7 + $0x2a4] sm:$0xf0]  ;;  %v8975_v59 = vld [vmem:[%s13398_s7 + $0x224] sm:$0xf] }
 0x21a   : > { %2310 = vmatmul.bf16.vlgmr.msrb.gmra.mxu1 %v10515_v53  ;;  %6797 = vmatmul.msk.bf16.vlgmr.msrb.gmra.mxu3 %vm1658_vm6, %v10519_v63  ;;  %v7017_v34 = vld [vmem:[%s13398_s7 + $0x228] sm:$0xf0] }
 0x21b   : > { %2543 = vmatpush.bf16.msra.mxu3 %v6888_v4  ;;  %2557 = vmatpush.bf16.msra.mxu1 %v6944_v28  ;;  %v6848_v4 = vor.u32 %v8942_v32, %v6847_v31  ;;  %v6839_v28 = vld [vmem:[%s13397_s6 + $0x1f0] sm:$0xf]  ;;  %v7088_v31 = vor.u32 %v8994_v46, %v7087_v45  ;;  %v7015_v32 = vld [vmem:[%s13398_s7 + $0x220] sm:$0xf]  ;;  %v8984_v46 = vld [vmem:[%s13398_s7 + $0x264] sm:$0xf0] }
 0x21c   : > { %2569 = vmatpush.bf16.msra.mxu2 %v6892_v5  ;;  %2583 = vmatpush.bf16.msra.mxu0 %v6948_v36  ;;  %v6904_v5 = vor.u32 %v8956_v0, %v6903_v40  ;;  %v8954_v36 = vld [vmem:[%s13397_s6 + $0x264] sm:$0xf0]  ;;  %v7047_v45 = vld [vmem:[%s13398_s7 + $0x260] sm:$0xf] }
 0x21d   : > { %2336 = vmatmul.bf16.vlgmr.msrb.gmra.mxu0 %v10515_v53  ;;  %6798 = vmatmul.msk.bf16.vlgmr.msrb.gmra.mxu2 %vm1658_vm6, %v10519_v63  ;;  %v6863_v53 = vld [vmem:[%s13397_s6 + $0x220] sm:$0xf]  ;;  %v6932_v63 = vor.u32 %v8961_v21, %v6929_v22  ;;  %v6896_v16 = vor.u32 %v8954_v36, %v6895_v15  ;;  %v6900_v21 = vor.u32 %v8953_v54, %v6897_v55  ;;  %v8976_v40 = vld [vmem:[%s13398_s7 + $0x224] sm:$0xf0]  ;;  %v8974_v15 = vld [vmem:[%s13398_s7 + $0x214] sm:$0xf0] }
 0x21e   : > { %v6864_v57 = vor.u32 %v8946_v3, %v6863_v53  ;;  %v7044_v53 = vor.u32 %v8981_v12, %v7041_v13  ;;  %v7095_v3 = vld [vmem:[%s13398_s7 + $0x2c0] sm:$0xf]  ;;  %v7020_v36 = vor.u32 %v8975_v59, %v7017_v34  ;;  %v8973_v54 = vld [vmem:[%s13398_s7 + $0x214] sm:$0xf]  ;;  %v7009_v55 = vld [vmem:[%s13398_s7 + $0x218] sm:$0xf0]  ;;  %v7048_v59 = vor.u32 %v8984_v46, %v7047_v45 }
 0x21f   : > { %2544 = vmatpush.bf16.msra.mxu3 %v6880_v41  ;;  %2558 = vmatpush.bf16.msra.mxu1 %v6936_v10  ;;  %v7039_v41 = vld [vmem:[%s13398_s7 + $0x250] sm:$0xf]  ;;  %v8982_v10 = vld [vmem:[%s13398_s7 + $0x254] sm:$0xf0]  ;;  %v6999_v13 = vld [vmem:[%s13398_s7 + $0x200] sm:$0xf] }
 0x220   : > { %2570 = vmatpush.bf16.msra.mxu2 %v6884_v11  ;;  %2584 = vmatpush.bf16.msra.mxu0 %v6940_v17  ;;  %v6840_v11 = vor.u32 %v8940_v50, %v6839_v28  ;;  %v6844_v17 = vor.u32 %v8939_v51, %v6841_v52  ;;  %v7040_v22 = vor.u32 %v8982_v10, %v7039_v41  ;;  %v7081_v28 = vld [vmem:[%s13398_s7 + $0x2a8] sm:$0xf0]  ;;  %v7007_v50 = vld [vmem:[%s13398_s7 + $0x210] sm:$0xf]  ;;  %v8990_v52 = vld [vmem:[%s13398_s7 + $0x294] sm:$0xf0] }
 0x221   : > { %v7071_v51 = vld [vmem:[%s13398_s7 + $0x290] sm:$0xf]  ;;  %v8989_v41 = vld [vmem:[%s13398_s7 + $0x294] sm:$0xf]  ;;  %v7073_v10 = vld [vmem:[%s13398_s7 + $0x298] sm:$0xf0] }
 0x222   : > { %v7072_v12 = vor.u32 %v8990_v52, %v7071_v51  ;;  %v7076_v18 = vor.u32 %v8989_v41, %v7073_v10  ;;  %v7193_v34 = vld [vmem:[%s13397_s6 + $0x348] sm:$0xf0]  ;;  %v9009_v41 = vld [vmem:[%s13397_s6 + $0x334] sm:$0xf]  ;;  %v7185_v10 = vld [vmem:[%s13397_s6 + $0x338] sm:$0xf0] }
 0x223   : > { %2545 = vmatpush.bf16.msra.mxu3 %v6872_v23  ;;  %2559 = vmatpush.bf16.msra.mxu1 %v6928_v24  ;;  %v6833_v23 = vld [vmem:[%s13397_s6 + $0x1e8] sm:$0xf0]  ;;  %v7031_v24 = vld [vmem:[%s13398_s7 + $0x240] sm:$0xf] }
 0x224   : > { %2571 = vmatpush.bf16.msra.mxu2 %v6876_v2  ;;  %2585 = vmatpush.bf16.msra.mxu0 %v6932_v63  ;;  %v8980_v2 = vld [vmem:[%s13398_s7 + $0x244] sm:$0xf0]  ;;  %v8979_v63 = vld [vmem:[%s13398_s7 + $0x244] sm:$0xf]  ;;  %v6836_v56 = vor.u32 %v8937_v20, %v6833_v23 }
 0x225   : > { %v7036_v30 = vor.u32 %v8979_v63, %v7033_v43  ;;  %v8988_v20 = vld [vmem:[%s13398_s7 + $0x284] sm:$0xf0]  ;;  %v8987_v23 = vld [vmem:[%s13398_s7 + $0x284] sm:$0xf]  ;;  %v7055_v43 = vld [vmem:[%s13398_s7 + $0x270] sm:$0xf] }
 0x227   : > { %2546 = vmatpush.bf16.msra.mxu3 %v6864_v57  ;;  %2560 = vmatpush.bf16.msra.mxu1 %v6920_v60  ;;  %v10996_v57 = vrot.slane %v10373_v42, 1  ;;  %v7032_v60 = vor.u32 %v8980_v2, %v7031_v24  ;;  %v7065_v24 = vld [vmem:[%s13398_s7 + $0x288] sm:$0xf0] }
 0x228   : > { %2572 = vmatpush.bf16.msra.mxu2 %v6868_v62  ;;  %2586 = vmatpush.bf16.msra.mxu0 %v6924_v6  ;;  %v7096_v62 = vor.u32 %v8996_v27, %v7095_v3  ;;  %v7100_v6 = vor.u32 %v8995_v44, %v7097_v47  ;;  %v6991_v3 = vld [vmem:[%s13398_s7 + $0x1f0] sm:$0xf]  ;;  %v8970_v27 = vld [vmem:[%s13398_s7 + $0x1f4] sm:$0xf0]  ;;  %v8969_v47 = vld [vmem:[%s13398_s7 + $0x1f4] sm:$0xf] }
 0x229   : > { %v8986_v44 = vld [vmem:[%s13398_s7 + $0x274] sm:$0xf0] }
 0x22b   : > { %2547 = vmatpush.bf16.msra.mxu3 %v6856_v26  ;;  %2561 = vmatpush.bf16.msra.mxu1 %v6912_v9  ;;  %v7089_v26 = vld [vmem:[%s13398_s7 + $0x2b8] sm:$0xf0]  ;;  %v11027_v9 = vrot.slane %v10370_v39, 1 }
 0x22c   : > { %2573 = vmatpush.bf16.msra.mxu2 %v6860_v29  ;;  %2587 = vmatpush.bf16.msra.mxu0 %v6916_v48  ;;  %v7024_v29 = vor.u32 %v8978_v61, %v7023_v35  ;;  %v7028_v48 = vor.u32 %v8977_v7, %v7025_v25  ;;  %v7092_v0 = vor.u32 %v8993_v8, %v7089_v26  ;;  %v6983_v35 = vld [vmem:[%s13398_s7 + $0x1e0] sm:$0xf]  ;;  %v8967_v8 = vld [vmem:[%s13398_s7 + $0x1e4] sm:$0xf]  ;;  %v6985_v26 = vld [vmem:[%s13398_s7 + $0x1e8] sm:$0xf0] }
 0x22d   : > { %v6992_v61 = vor.u32 %v8970_v27, %v6991_v3 }
 0x22f   : > { %2548 = vmatpush.bf16.msra.mxu3 %v6848_v4  ;;  %2562 = vmatpush.bf16.msra.mxu1 %v6904_v5  ;;  %v8991_v4 = vld [vmem:[%s13398_s7 + $0x2a4] sm:$0xf]  ;;  %v7016_v5 = vor.u32 %v8976_v40, %v7015_v32  ;;  %v7191_v32 = vld [vmem:[%s13397_s6 + $0x340] sm:$0xf]  ;;  %v9012_v40 = vld [vmem:[%s13397_s6 + $0x344] sm:$0xf0] }
 0x230   : > { %2574 = vmatpush.bf16.msra.mxu2 %v6852_v14  ;;  %2588 = vmatpush.bf16.msra.mxu0 %v6908_v37  ;;  %v7080_v14 = vor.u32 %v8992_v58, %v7079_v1  ;;  %v7084_v37 = vor.u32 %v8991_v4, %v7081_v28  ;;  %v9011_v1 = vld [vmem:[%s13397_s6 + $0x344] sm:$0xf]  ;;  %v9025_v4 = vld [vmem:[%s13397_s6 + $0x3b4] sm:$0xf]  ;;  %v7249_v28 = vld [vmem:[%s13397_s6 + $0x3b8] sm:$0xf0] }
 0x231   : > { %v7196_v51 = vor.u32 %v9011_v1, %v7193_v34  ;;  %v7252_v52 = vor.u32 %v9025_v4, %v7249_v28  ;;  %v9002_v1 = vld [vmem:[%s13397_s6 + $0x2f4] sm:$0xf0]  ;;  %v7207_v4 = vld [vmem:[%s13397_s6 + $0x360] sm:$0xf]  ;;  %v9016_v28 = vld [vmem:[%s13397_s6 + $0x364] sm:$0xf0] }
 0x233   : > { %2549 = vmatpush.bf16.msra.mxu3 %v6840_v11  ;;  %2563 = vmatpush.bf16.msra.mxu1 %v6896_v16  ;;  %v7008_v11 = vor.u32 %v8974_v15, %v7007_v50  ;;  %v8972_v16 = vld [vmem:[%s13398_s7 + $0x204] sm:$0xf0]  ;;  %v7192_v50 = vor.u32 %v9012_v40, %v7191_v32 }
 0x234   : > { %2575 = vmatpush.bf16.msra.mxu2 %v6844_v17  ;;  %2589 = vmatpush.bf16.msra.mxu0 %v6900_v21  ;;  %v7012_v17 = vor.u32 %v8973_v54, %v7009_v55  ;;  %v8971_v21 = vld [vmem:[%s13398_s7 + $0x204] sm:$0xf]  ;;  %v7000_v2 = vor.u32 %v8972_v16, %v6999_v13  ;;  %v7239_v54 = vld [vmem:[%s13397_s6 + $0x3a0] sm:$0xf]  ;;  %v9024_v55 = vld [vmem:[%s13397_s6 + $0x3a4] sm:$0xf0] }
 0x235   : > { %v7240_v16 = vor.u32 %v9024_v55, %v7239_v54  ;;  %v7199_v54 = vld [vmem:[%s13397_s6 + $0x350] sm:$0xf] }
 0x236   : > { %6949 = vmatmul.msk.bf16.vlgmr.msra.gmra.mxu1 %vm1658_vm6, %v10996_v57 }
 0x237   : > { %2778 = vmatpush.bf16.msrb.mxu1 %v7040_v22  ;;  %2550 = vmatpush.bf16.msra.mxu3 %v6832_v38  ;;  %v7001_v22 = vld [vmem:[%s13398_s7 + $0x208] sm:$0xf0]  ;;  %v7068_v38 = vor.u32 %v8987_v23, %v7065_v24  ;;  %v9007_v23 = vld [vmem:[%s13397_s6 + $0x324] sm:$0xf] }
 0x238   : > { %2804 = vmatpush.bf16.msrb.mxu0 %v7044_v53  ;;  %2576 = vmatpush.bf16.msra.mxu2 %v6836_v56  ;;  %v7064_v53 = vor.u32 %v8988_v20, %v7063_v19  ;;  %v7004_v63 = vor.u32 %v8971_v21, %v7001_v22  ;;  %v6993_v56 = vld [vmem:[%s13398_s7 + $0x1f8] sm:$0xf0]  ;;  %v7188_v19 = vor.u32 %v9009_v41, %v7185_v10  ;;  %v7231_v21 = vld [vmem:[%s13397_s6 + $0x390] sm:$0xf]  ;;  %v9022_v22 = vld [vmem:[%s13397_s6 + $0x394] sm:$0xf0] }
 0x239   : > { %6950 = vmatmul.msk.bf16.vlgmr.msra.gmra.mxu0 %vm1658_vm6, %v10996_v57  ;;  %v6996_v7 = vor.u32 %v8969_v47, %v6993_v56  ;;  %v7177_v24 = vld [vmem:[%s13397_s6 + $0x328] sm:$0xf0]  ;;  %v7232_v27 = vor.u32 %v9022_v22, %v7231_v21  ;;  %v9005_v47 = vld [vmem:[%s13397_s6 + $0x314] sm:$0xf]  ;;  %v7169_v56 = vld [vmem:[%s13397_s6 + $0x318] sm:$0xf0] }
 0x23a   : > { %2551 = vmatmul.bf16.vlgmr.msra.gmra.mxu3 %v11027_v9  ;;  %v7172_v45 = vor.u32 %v9005_v47, %v7169_v56  ;;  %v9014_v10 = vld [vmem:[%s13397_s6 + $0x354] sm:$0xf0]  ;;  %v9041_v21 = vld [vmem:[%s13398_s7 + $0x344] sm:$0xf]  ;;  %v7345_v22 = vld [vmem:[%s13398_s7 + $0x348] sm:$0xf0] }
 0x23b   : > { %2779 = vmatpush.bf16.msrb.mxu1 %v7032_v60  ;;  %2792 = vmatpush.bf16.msrb.mxu3 %v7096_v62  ;;  %v8985_v60 = vld [vmem:[%s13398_s7 + $0x274] sm:$0xf]  ;;  %v7057_v62 = vld [vmem:[%s13398_s7 + $0x278] sm:$0xf0]  ;;  %v7335_v47 = vld [vmem:[%s13398_s7 + $0x330] sm:$0xf] }
 0x23c   : > { %2805 = vmatpush.bf16.msrb.mxu0 %v7036_v30  ;;  %2818 = vmatpush.bf16.msrb.mxu2 %v7100_v6  ;;  %v7056_v30 = vor.u32 %v8986_v44, %v7055_v43  ;;  %v8968_v6 = vld [vmem:[%s13398_s7 + $0x1e4] sm:$0xf0]  ;;  %v7060_v25 = vor.u32 %v8985_v60, %v7057_v62  ;;  %v7180_v43 = vor.u32 %v9007_v23, %v7177_v24  ;;  %v9019_v60 = vld [vmem:[%s13397_s6 + $0x384] sm:$0xf]  ;;  %v7225_v62 = vld [vmem:[%s13397_s6 + $0x388] sm:$0xf0] }
 0x23d   : > { %2577 = vmatmul.bf16.vlgmr.msra.gmra.mxu2 %v11027_v9  ;;  %v6984_v58 = vor.u32 %v8968_v6, %v6983_v35  ;;  %v9004_v6 = vld [vmem:[%s13397_s6 + $0x304] sm:$0xf0]  ;;  %v7228_v46 = vor.u32 %v9019_v60, %v7225_v62  ;;  %v7200_v24 = vor.u32 %v9014_v10, %v7199_v54  ;;  %v7399_v56 = vld [vmem:[%s13398_s7 + $0x3b0] sm:$0xf]  ;;  %v9056_v60 = vld [vmem:[%s13398_s7 + $0x3b4] sm:$0xf0] }
 0x23e   : > { %v9040_v62 = vld [vmem:[%s13398_s7 + $0x334] sm:$0xf0]  ;;  %v7383_v54 = vld [vmem:[%s13398_s7 + $0x390] sm:$0xf] }
 0x23f   : > { %2780 = vmatpush.bf16.msrb.mxu1 %v7024_v29  ;;  %2793 = vmatpush.bf16.msrb.mxu3 %v7088_v31  ;;  %v8983_v29 = vld [vmem:[%s13398_s7 + $0x264] sm:$0xf]  ;;  %v7049_v31 = vld [vmem:[%s13398_s7 + $0x268] sm:$0xf0]  ;;  %v9036_v10 = vld [vmem:[%s13398_s7 + $0x314] sm:$0xf0] }
 0x240   : > { %2806 = vmatpush.bf16.msrb.mxu0 %v7028_v48  ;;  %2819 = vmatpush.bf16.msrb.mxu2 %v7092_v0  ;;  %v7247_v48 = vld [vmem:[%s13397_s6 + $0x3b0] sm:$0xf]  ;;  %v9026_v0 = vld [vmem:[%s13397_s6 + $0x3b4] sm:$0xf0] }
 0x241   : > { %v7248_v15 = vor.u32 %v9026_v0, %v7247_v48  ;;  %v7151_v0 = vld [vmem:[%s13397_s6 + $0x2f0] sm:$0xf] }
 0x243   : > { %2781 = vmatpush.bf16.msrb.mxu1 %v7016_v5  ;;  %2794 = vmatpush.bf16.msrb.mxu3 %v7080_v14  ;;  %v6988_v5 = vor.u32 %v8967_v8, %v6985_v26  ;;  %v7052_v14 = vor.u32 %v8983_v29, %v7049_v31  ;;  %v9003_v8 = vld [vmem:[%s13397_s6 + $0x304] sm:$0xf]  ;;  %v7161_v26 = vld [vmem:[%s13397_s6 + $0x308] sm:$0xf0]  ;;  %v9017_v29 = vld [vmem:[%s13397_s6 + $0x374] sm:$0xf] }
 0x244   : > { %2807 = vmatpush.bf16.msrb.mxu0 %v7020_v36  ;;  %2820 = vmatpush.bf16.msrb.mxu2 %v7084_v37  ;;  %v7183_v36 = vld [vmem:[%s13397_s6 + $0x330] sm:$0xf]  ;;  %v9010_v37 = vld [vmem:[%s13397_s6 + $0x334] sm:$0xf0]  ;;  %v7217_v31 = vld [vmem:[%s13397_s6 + $0x378] sm:$0xf0] }
 0x245   : > { %v7184_v13 = vor.u32 %v9010_v37, %v7183_v36  ;;  %v7152_v36 = vor.u32 %v9002_v1, %v7151_v0  ;;  %v7208_v37 = vor.u32 %v9016_v28, %v7207_v4  ;;  %v7329_v4 = vld [vmem:[%s13398_s7 + $0x328] sm:$0xf0] }
 0x247   : > { %2782 = vmatpush.bf16.msrb.mxu1 %v7008_v11  ;;  %2795 = vmatpush.bf16.msrb.mxu3 %v7072_v12  ;;  %v9023_v11 = vld [vmem:[%s13397_s6 + $0x3a4] sm:$0xf]  ;;  %v7241_v12 = vld [vmem:[%s13397_s6 + $0x3a8] sm:$0xf0] }
 0x248   : > { %2808 = vmatpush.bf16.msrb.mxu0 %v7012_v17  ;;  %2821 = vmatpush.bf16.msrb.mxu2 %v7076_v18  ;;  %v7175_v17 = vld [vmem:[%s13397_s6 + $0x320] sm:$0xf]  ;;  %v9008_v18 = vld [vmem:[%s13397_s6 + $0x324] sm:$0xf0]  ;;  %v7244_v20 = vor.u32 %v9023_v11, %v7241_v12  ;;  %v8999_v11 = vld [vmem:[%s13397_s6 + $0x2e4] sm:$0xf] }
 0x249   : > { %v7176_v3 = vor.u32 %v9008_v18, %v7175_v17  ;;  %v7145_v12 = vld [vmem:[%s13397_s6 + $0x2e8] sm:$0xf0]  ;;  %v7201_v17 = vld [vmem:[%s13397_s6 + $0x358] sm:$0xf0]  ;;  %v7343_v18 = vld [vmem:[%s13398_s7 + $0x340] sm:$0xf] }
 0x24b   : > { %2783 = vmatpush.bf16.msrb.mxu1 %v7000_v2  ;;  %2796 = vmatpush.bf16.msrb.mxu3 %v7064_v53  ;;  %v9021_v2 = vld [vmem:[%s13397_s6 + $0x394] sm:$0xf]  ;;  %v7233_v53 = vld [vmem:[%s13397_s6 + $0x398] sm:$0xf0] }
 0x24c   : > { %2809 = vmatpush.bf16.msrb.mxu0 %v7004_v63  ;;  %2822 = vmatpush.bf16.msrb.mxu2 %v7068_v38  ;;  %v7167_v63 = vld [vmem:[%s13397_s6 + $0x310] sm:$0xf]  ;;  %v9006_v38 = vld [vmem:[%s13397_s6 + $0x314] sm:$0xf0]  ;;  %v7236_v44 = vor.u32 %v9021_v2, %v7233_v53 }
 0x24d   : > { %v7168_v35 = vor.u32 %v9006_v38, %v7167_v63  ;;  %v7135_v53 = vld [vmem:[%s13397_s6 + $0x2d0] sm:$0xf]  ;;  %v8998_v38 = vld [vmem:[%s13397_s6 + $0x2d4] sm:$0xf0] }
 0x24f   : > { %2784 = vmatpush.bf16.msrb.mxu1 %v6992_v61  ;;  %2797 = vmatpush.bf16.msrb.mxu3 %v7056_v30  ;;  %v7159_v30 = vld [vmem:[%s13397_s6 + $0x300] sm:$0xf] }
 0x250   : > { %2810 = vmatpush.bf16.msrb.mxu0 %v6996_v7  ;;  %2823 = vmatpush.bf16.msrb.mxu2 %v7060_v25  ;;  %v7215_v7 = vld [vmem:[%s13397_s6 + $0x370] sm:$0xf]  ;;  %v9018_v25 = vld [vmem:[%s13397_s6 + $0x374] sm:$0xf0]  ;;  %v7160_v32 = vor.u32 %v9004_v6, %v7159_v30  ;;  %v7136_v30 = vor.u32 %v8998_v38, %v7135_v53  ;;  %v9055_v6 = vld [vmem:[%s13398_s7 + $0x3b4] sm:$0xf] }
 0x251   : > { %v7216_v40 = vor.u32 %v9018_v25, %v7215_v7  ;;  %v7400_v7 = vor.u32 %v9056_v60, %v7399_v56  ;;  %v7336_v25 = vor.u32 %v9040_v62, %v7335_v47  ;;  %v9034_v53 = vld [vmem:[%s13398_s7 + $0x304] sm:$0xf0]  ;;  %v7303_v60 = vld [vmem:[%s13398_s7 + $0x2f0] sm:$0xf] }
 0x252   : > { %v7367_v62 = vld [vmem:[%s13398_s7 + $0x370] sm:$0xf] }
 0x253   : > { %2785 = vmatpush.bf16.msrb.mxu1 %v6984_v58  ;;  %2798 = vmatpush.bf16.msrb.mxu3 %v7048_v59  ;;  %v7164_v58 = vor.u32 %v9003_v8, %v7161_v26  ;;  %v7220_v59 = vor.u32 %v9017_v29, %v7217_v31  ;;  %v7327_v29 = vld [vmem:[%s13398_s7 + $0x320] sm:$0xf] }
 0x254   : > { %2811 = vmatpush.bf16.msrb.mxu0 %v6988_v5  ;;  %2824 = vmatpush.bf16.msrb.mxu2 %v7052_v14  ;;  %v9001_v5 = vld [vmem:[%s13397_s6 + $0x2f4] sm:$0xf]  ;;  %v7153_v14 = vld [vmem:[%s13397_s6 + $0x2f8] sm:$0xf0]  ;;  %v7391_v31 = vld [vmem:[%s13398_s7 + $0x3a0] sm:$0xf] }
 0x255   : > { %v7156_v55 = vor.u32 %v9001_v5, %v7153_v14  ;;  %v9053_v5 = vld [vmem:[%s13398_s7 + $0x3a4] sm:$0xf]  ;;  %v7393_v14 = vld [vmem:[%s13398_s7 + $0x3a8] sm:$0xf0] }
 0x256   : > { %2786 = vmatmul.bf16.vlgmr.msrb.gmra.mxu1 %v11027_v9  ;;  %7101 = vmatmul.msk.bf16.vlgmr.msrb.gmra.mxu3 %vm1658_vm6, %v10996_v57 }
 0x257   : > { %3023 = vmatpush.bf16.msra.mxu3 %v7192_v50  ;;  %3037 = vmatpush.bf16.msra.mxu1 %v7248_v15  ;;  %v9015_v50 = vld [vmem:[%s13397_s6 + $0x364] sm:$0xf]  ;;  %v7209_v15 = vld [vmem:[%s13397_s6 + $0x368] sm:$0xf0] }
 0x258   : > { %3049 = vmatpush.bf16.msra.mxu2 %v7196_v51  ;;  %3063 = vmatpush.bf16.msra.mxu0 %v7252_v52  ;;  %v7143_v51 = vld [vmem:[%s13397_s6 + $0x2e0] sm:$0xf]  ;;  %v9000_v52 = vld [vmem:[%s13397_s6 + $0x2e4] sm:$0xf0]  ;;  %v7212_v41 = vor.u32 %v9015_v50, %v7209_v15 }
 0x259   : > { %2812 = vmatmul.bf16.vlgmr.msrb.gmra.mxu0 %v11027_v9  ;;  %7102 = vmatmul.msk.bf16.vlgmr.msrb.gmra.mxu2 %vm1658_vm6, %v10996_v57  ;;  %v7223_v57 = vld [vmem:[%s13397_s6 + $0x380] sm:$0xf]  ;;  %v9020_v9 = vld [vmem:[%s13397_s6 + $0x384] sm:$0xf0]  ;;  %v7144_v23 = vor.u32 %v9000_v52, %v7143_v51  ;;  %v7319_v52 = vld [vmem:[%s13398_s7 + $0x310] sm:$0xf] }
 0x25a   : > { %v7224_v61 = vor.u32 %v9020_v9, %v7223_v57  ;;  %v11277_v48 = vpop.f32.mrf.mxu0  ;;  %v7348_v9 = vor.u32 %v9041_v21, %v7345_v22 }
 0x25b   : > { %3024 = vmatpush.bf16.msra.mxu3 %v7184_v13  ;;  %3038 = vmatpush.bf16.msra.mxu1 %v7240_v16  ;;  %v11285_v34 = vpop.f32.mrf.mxu1  ;;  %v9013_v16 = vld [vmem:[%s13397_s6 + $0x354] sm:$0xf] }
 0x25c   : > { %3050 = vmatpush.bf16.msra.mxu2 %v7188_v19  ;;  %3064 = vmatpush.bf16.msra.mxu0 %v7244_v20  ;;  %v9042_v20 = vld [vmem:[%s13398_s7 + $0x344] sm:$0xf0] }
 0x25d   : > { %v7344_v57 = vor.u32 %v9042_v20, %v7343_v18  ;;  %v7320_v20 = vor.u32 %v9036_v10, %v7319_v52 }
 0x25f   : > { %3025 = vmatpush.bf16.msra.mxu3 %v7176_v3  ;;  %3039 = vmatpush.bf16.msra.mxu1 %v7232_v27  ;;  %v7148_v3 = vor.u32 %v8999_v11, %v7145_v12  ;;  %v7204_v27 = vor.u32 %v9013_v16, %v7201_v17  ;;  %v9035_v11 = vld [vmem:[%s13398_s7 + $0x314] sm:$0xf]  ;;  %v7321_v12 = vld [vmem:[%s13398_s7 + $0x318] sm:$0xf0] }
 0x260   : > { %3051 = vmatpush.bf16.msra.mxu2 %v7180_v43  ;;  %3065 = vmatpush.bf16.msra.mxu0 %v7236_v44  ;;  %v1697_v13 = vpop.f32.mrf.mxu2  ;;  %v8997_v43 = vld [vmem:[%s13397_s6 + $0x2d4] sm:$0xf]  ;;  %v7137_v44 = vld [vmem:[%s13397_s6 + $0x2d8] sm:$0xf0]  ;;  %v7324_v21 = vor.u32 %v9035_v11, %v7321_v12 }
 0x261   : > { %v1710_v19 = vpop.f32.mrf.mxu3  ;;  %v9051_v16 = vld [vmem:[%s13398_s7 + $0x394] sm:$0xf]  ;;  %v7385_v17 = vld [vmem:[%s13398_s7 + $0x398] sm:$0xf0] }
 0x262   : > { %v1673_v2 = vpop.f32.mrf.mxu0  ;;  %v7289_v12 = vld [vmem:[%s13398_s7 + $0x2d8] sm:$0xf0] }
 0x263   : > { %3026 = vmatpush.bf16.msra.mxu3 %v7168_v35  ;;  %3040 = vmatpush.bf16.msra.mxu1 %v7224_v61  ;;  %v1686_v63 = vpop.f32.mrf.mxu1  ;;  %v9039_v35 = vld [vmem:[%s13398_s7 + $0x334] sm:$0xf]  ;;  %v7337_v61 = vld [vmem:[%s13398_s7 + $0x338] sm:$0xf0] }
 0x264   : > { %3052 = vmatpush.bf16.msra.mxu2 %v7172_v45  ;;  %3066 = vmatpush.bf16.msra.mxu0 %v7228_v46  ;;  %v7401_v45 = vld [vmem:[%s13398_s7 + $0x3b8] sm:$0xf0]  ;;  %v7140_v46 = vor.u32 %v8997_v43, %v7137_v44  ;;  %v7340_v8 = vor.u32 %v9039_v35, %v7337_v61  ;;  %v9049_v43 = vld [vmem:[%s13398_s7 + $0x384] sm:$0xf]  ;;  %v7377_v44 = vld [vmem:[%s13398_s7 + $0x388] sm:$0xf0] }
 0x265   : > { %v7404_v0 = vor.u32 %v9055_v6, %v7401_v45  ;;  %v9048_v35 = vld [vmem:[%s13398_s7 + $0x374] sm:$0xf0]  ;;  %v7380_v61 = vor.u32 %v9049_v43, %v7377_v44  ;;  %v9031_v6 = vld [vmem:[%s13398_s7 + $0x2f4] sm:$0xf]  ;;  %v7305_v45 = vld [vmem:[%s13398_s7 + $0x2f8] sm:$0xf0] }
 0x267   : > { %3027 = vmatpush.bf16.msra.mxu3 %v7160_v32  ;;  %3041 = vmatpush.bf16.msra.mxu1 %v7216_v40  ;;  %v9054_v32 = vld [vmem:[%s13398_s7 + $0x3a4] sm:$0xf0]  ;;  %v1711_v40 = vadd.f32 %v1710_v19, %v1697_v13  ;;  %v1685_v13 = vadd.f32 %v11285_v34, %v11277_v48  ;;  %v7311_v48 = vld [vmem:[%s13398_s7 + $0x300] sm:$0xf] }
 0x268   : > { %3053 = vmatpush.bf16.msra.mxu2 %v7164_v58  ;;  %3067 = vmatpush.bf16.msra.mxu0 %v7220_v59  ;;  %v1699_v26 = vpop.f32.mrf.mxu2  ;;  %v9038_v58 = vld [vmem:[%s13398_s7 + $0x324] sm:$0xf0]  ;;  %v9037_v59 = vld [vmem:[%s13398_s7 + $0x324] sm:$0xf]  ;;  %v7375_v34 = vld [vmem:[%s13398_s7 + $0x380] sm:$0xf]  ;;  %v7312_v47 = vor.u32 %v9034_v53, %v7311_v48 }
 0x269   : > { %v1712_v1 = vpop.f32.mrf.mxu3  ;;  %v7332_v51 = vor.u32 %v9037_v59, %v7329_v4  ;;  %v7308_v26 = vor.u32 %v9031_v6, %v7305_v45  ;;  %v9029_v59 = vld [vmem:[%s13398_s7 + $0x2e4] sm:$0xf]  ;;  %v7297_v4 = vld [vmem:[%s13398_s7 + $0x2e8] sm:$0xf0]  ;;  %v9071_v48 = vld [vmem:[%s13397_s6 + $0x434] sm:$0xf] }
 0x26a   : > { %v1902_v28 = vpop.f32.mrf.mxu0  ;;  %v7300_v52 = vor.u32 %v9029_v59, %v7297_v4  ;;  %v7553_v53 = vld [vmem:[%s13397_s6 + $0x4a8] sm:$0xf0]  ;;  %v9083_v6 = vld [vmem:[%s13397_s6 + $0x494] sm:$0xf]  ;;  %v7545_v45 = vld [vmem:[%s13397_s6 + $0x498] sm:$0xf0] }
 0x26b   : > { %3028 = vmatpush.bf16.msra.mxu3 %v7152_v36  ;;  %3042 = vmatpush.bf16.msra.mxu1 %v7208_v37  ;;  %v1876_v50 = vpop.f32.mrf.mxu1  ;;  %v11405_v15 = vadd.f32 %v1902_v28, %v1711_v40  ;;  %v7392_v36 = vor.u32 %v9054_v32, %v7391_v31  ;;  %v7328_v37 = vor.u32 %v9038_v58, %v7327_v29  ;;  %v7295_v31 = vld [vmem:[%s13398_s7 + $0x2e0] sm:$0xf]  ;;  %v9046_v40 = vld [vmem:[%s13398_s7 + $0x364] sm:$0xf0]  ;;  %v9045_v28 = vld [vmem:[%s13398_s7 + $0x364] sm:$0xf] }
 0x26c   : > { %3054 = vmatpush.bf16.msra.mxu2 %v7156_v55  ;;  %3068 = vmatpush.bf16.msra.mxu0 %v7212_v41  ;;  %v9052_v55 = vld [vmem:[%s13398_s7 + $0x394] sm:$0xf0]  ;;  %v7396_v41 = vor.u32 %v9053_v5, %v7393_v14  ;;  %v1877_v19 = vadd.f32 %v1876_v50, %v1685_v13  ;;  %v7359_v32 = vld [vmem:[%s13398_s7 + $0x360] sm:$0xf]  ;;  %v9030_v58 = vld [vmem:[%s13398_s7 + $0x2e4] sm:$0xf0] }
 0x26d   : > { %v7384_v18 = vor.u32 %v9052_v55, %v7383_v54  ;;  %v7361_v5 = vld [vmem:[%s13398_s7 + $0x368] sm:$0xf0]  ;;  %v7360_v14 = vor.u32 %v9046_v40, %v7359_v32  ;;  %v7287_v50 = vld [vmem:[%s13398_s7 + $0x2d0] sm:$0xf]  ;;  %v9044_v55 = vld [vmem:[%s13398_s7 + $0x354] sm:$0xf0]  ;;  %v7548_v32 = vor.u32 %v9083_v6, %v7545_v45 }
 0x26e   : > { %v7351_v54 = vld [vmem:[%s13398_s7 + $0x350] sm:$0xf]  ;;  %v7364_v11 = vor.u32 %v9045_v28, %v7361_v5  ;;  %v9043_v13 = vld [vmem:[%s13398_s7 + $0x354] sm:$0xf]  ;;  %v9082_v40 = vld [vmem:[%s13397_s6 + $0x484] sm:$0xf0] }
 0x26f   : > { %3029 = vmatpush.bf16.msra.mxu3 %v7144_v23  ;;  %3043 = vmatpush.bf16.msra.mxu1 %v7200_v24  ;;  %v9050_v23 = vld [vmem:[%s13398_s7 + $0x384] sm:$0xf0]  ;;  %v7388_v24 = vor.u32 %v9051_v16, %v7385_v17  ;;  %v7353_v16 = vld [vmem:[%s13398_s7 + $0x358] sm:$0xf0]  ;;  %v7495_v17 = vld [vmem:[%s13397_s6 + $0x430] sm:$0xf] }
 0x270   : > { %3055 = vmatpush.bf16.msra.mxu2 %v7148_v3  ;;  %3069 = vmatpush.bf16.msra.mxu0 %v7204_v27  ;;  %v11435_v22 = vpop.f32.mrf.mxu2  ;;  %v9033_v3 = vld [vmem:[%s13398_s7 + $0x304] sm:$0xf]  ;;  %v7313_v27 = vld [vmem:[%s13398_s7 + $0x308] sm:$0xf0]  ;;  %v7447_v45 = vld [vmem:[%s13397_s6 + $0x3d0] sm:$0xf] }
 0x271   : > { %v1889_v2 = vpop.f32.mrf.mxu3  ;;  %v7316_v56 = vor.u32 %v9033_v3, %v7313_v27  ;;  %v7356_v3 = vor.u32 %v9043_v13, %v7353_v16  ;;  %v7537_v59 = vld [vmem:[%s13397_s6 + $0x488] sm:$0xf0] }
 0x272   : > { %7253 = vmatmul.msk.bf16.vlgmr.msra.gmra.mxu1 %vm1658_vm6, %v10411_v49  ;;  %v11455_v63 = vadd.f32 %v1889_v2, %v1877_v19  ;;  %v1904_v38 = vpop.f32.mrf.mxu0  ;;  %v7551_v19 = vld [vmem:[%s13397_s6 + $0x4a0] sm:$0xf]  ;;  %v9085_v2 = vld [vmem:[%s13397_s6 + $0x4a4] sm:$0xf] }
 0x273   : > { %3258 = vmatpush.bf16.msrb.mxu1 %v7344_v57  ;;  %7254 = vmatmul.msk.bf16.vlgmr.msra.gmra.mxu0 %vm1658_vm6, %v10411_v49  ;;  %v1878_v57 = vpop.f32.mrf.mxu1 }
 0x274   : > { %3284 = vmatpush.bf16.msrb.mxu0 %v7348_v9  ;;  %3030 = vmatpush.bf16.msra.mxu3 %v7136_v30  ;;  %v7376_v9 = vor.u32 %v9050_v23, %v7375_v34  ;;  %v9032_v30 = vld [vmem:[%s13398_s7 + $0x2f4] sm:$0xf0]  ;;  %v7497_v34 = vld [vmem:[%s13397_s6 + $0x438] sm:$0xf0] }
 0x275   : > { %3056 = vmatpush.bf16.msra.mxu2 %v7140_v46  ;;  %v9047_v46 = vld [vmem:[%s13398_s7 + $0x374] sm:$0xf]  ;;  %v7500_v44 = vor.u32 %v9071_v48, %v7497_v34  ;;  %v7465_v34 = vld [vmem:[%s13397_s6 + $0x3f8] sm:$0xf0] }
 0x276   : > { %v9063_v48 = vld [vmem:[%s13397_s6 + $0x3f4] sm:$0xf] }
 0x277   : > { %3259 = vmatpush.bf16.msrb.mxu1 %v7336_v25  ;;  %3031 = vmatmul.bf16.vlgmr.msra.gmra.mxu3 %v10424_v33  ;;  %v7368_v25 = vor.u32 %v9048_v35, %v7367_v62  ;;  %v9084_v62 = vld [vmem:[%s13397_s6 + $0x494] sm:$0xf0]  ;;  %v9069_v35 = vld [vmem:[%s13397_s6 + $0x424] sm:$0xf] }
 0x278   : > { %3272 = vmatpush.bf16.msrb.mxu3 %v7400_v7  ;;  %3285 = vmatpush.bf16.msrb.mxu0 %v7340_v8  ;;  %v7369_v7 = vld [vmem:[%s13398_s7 + $0x378] sm:$0xf0]  ;;  %v7304_v8 = vor.u32 %v9032_v30, %v7303_v60  ;;  %v1917_v29 = vpop.f32.mrf.mxu2  ;;  %v7556_v60 = vor.u32 %v9085_v2, %v7553_v53 }
 0x279   : > { %3298 = vmatpush.bf16.msrb.mxu2 %v7404_v0  ;;  %v7372_v0 = vor.u32 %v9047_v46, %v7369_v7  ;;  %v1891_v1 = vpop.f32.mrf.mxu3  ;;  %v9068_v29 = vld [vmem:[%s13397_s6 + $0x414] sm:$0xf0] }
 0x27a   : > { %3057 = vmatmul.bf16.vlgmr.msra.gmra.mxu2 %v10424_v33  ;;  %v11528_v10 = vpop.f32.mrf.mxu0  ;;  %v7481_v1 = vld [vmem:[%s13397_s6 + $0x418] sm:$0xf0] }
 0x27b   : > { %3260 = vmatpush.bf16.msrb.mxu1 %v7328_v37  ;;  %v11517_v37 = vpop.f32.mrf.mxu1 }
 0x27c   : > { %3273 = vmatpush.bf16.msrb.mxu3 %v7392_v36  ;;  %3286 = vmatpush.bf16.msrb.mxu0 %v7332_v51  ;;  %v9028_v36 = vld [vmem:[%s13398_s7 + $0x2d4] sm:$0xf0]  ;;  %v7296_v51 = vor.u32 %v9030_v58, %v7295_v31  ;;  %v7535_v31 = vld [vmem:[%s13397_s6 + $0x480] sm:$0xf]  ;;  %v9081_v58 = vld [vmem:[%s13397_s6 + $0x484] sm:$0xf] }
 0x27d   : > { %3299 = vmatpush.bf16.msrb.mxu2 %v7396_v41  ;;  %v9027_v41 = vld [vmem:[%s13398_s7 + $0x2d4] sm:$0xf]  ;;  %v7288_v23 = vor.u32 %v9028_v36, %v7287_v50  ;;  %v7536_v5 = vor.u32 %v9082_v40, %v7535_v31  ;;  %v9066_v36 = vld [vmem:[%s13397_s6 + $0x404] sm:$0xf0]  ;;  %v9073_v40 = vld [vmem:[%s13397_s6 + $0x444] sm:$0xf] }
 0x27e   : > { %v9059_v31 = vld [vmem:[%s13397_s6 + $0x3d4] sm:$0xf] }
 0x27f   : > { %3261 = vmatpush.bf16.msrb.mxu1 %v7320_v20  ;;  %v7352_v20 = vor.u32 %v9044_v55, %v7351_v54  ;;  %v9065_v54 = vld [vmem:[%s13397_s6 + $0x404] sm:$0xf]  ;;  %v7473_v55 = vld [vmem:[%s13397_s6 + $0x408] sm:$0xf0] }
 0x280   : > { %3274 = vmatpush.bf16.msrb.mxu3 %v7384_v18  ;;  %3287 = vmatpush.bf16.msrb.mxu0 %v7324_v21  ;;  %v9072_v18 = vld [vmem:[%s13397_s6 + $0x434] sm:$0xf0]  ;;  %v9086_v21 = vld [vmem:[%s13397_s6 + $0x4a4] sm:$0xf0]  ;;  %v7476_v16 = vor.u32 %v9065_v54, %v7473_v55  ;;  %v7639_v54 = vld [vmem:[%s13398_s7 + $0x420] sm:$0xf] }
 0x281   : > { %3300 = vmatpush.bf16.msrb.mxu2 %v7388_v24  ;;  %v7292_v24 = vor.u32 %v9027_v41, %v7289_v12  ;;  %v7496_v27 = vor.u32 %v9072_v18, %v7495_v17  ;;  %v11563_v38 = vpop.f32.mrf.mxu3  ;;  %v7552_v43 = vor.u32 %v9086_v21, %v7551_v19  ;;  %v9079_v41 = vld [vmem:[%s13397_s6 + $0x474] sm:$0xf]  ;;  %v7463_v17 = vld [vmem:[%s13397_s6 + $0x3f0] sm:$0xf]  ;;  %v9064_v18 = vld [vmem:[%s13397_s6 + $0x3f4] sm:$0xf0] }
 0x282   : > { %v2150_v46 = vpop.f32.mrf.mxu0  ;;  %v7519_v19 = vld [vmem:[%s13397_s6 + $0x460] sm:$0xf]  ;;  %v9078_v21 = vld [vmem:[%s13397_s6 + $0x464] sm:$0xf0]  ;;  %v7464_v2 = vor.u32 %v9064_v18, %v7463_v17 }
 0x283   : > { %3262 = vmatpush.bf16.msrb.mxu1 %v7312_v47  ;;  %v9070_v47 = vld [vmem:[%s13397_s6 + $0x424] sm:$0xf0]  ;;  %v2124_v30 = vpop.f32.mrf.mxu1  ;;  %v7520_v53 = vor.u32 %v9078_v21, %v7519_v19  ;;  %v7641_v21 = vld [vmem:[%s13398_s7 + $0x428] sm:$0xf0] }
 0x284   : > { %3275 = vmatpush.bf16.msrb.mxu3 %v7376_v9  ;;  %3288 = vmatpush.bf16.msrb.mxu0 %v7316_v56  ;;  %v11565_v57 = vpop.f32.mrf.mxu2  ;;  %v7487_v9 = vld [vmem:[%s13397_s6 + $0x420] sm:$0xf]  ;;  %v7543_v56 = vld [vmem:[%s13397_s6 + $0x490] sm:$0xf]  ;;  %v9100_v55 = vld [vmem:[%s13398_s7 + $0x424] sm:$0xf0] }
 0x285   : > { %3301 = vmatpush.bf16.msrb.mxu2 %v7380_v61  ;;  %v7489_v61 = vld [vmem:[%s13397_s6 + $0x428] sm:$0xf0]  ;;  %v7488_v7 = vor.u32 %v9070_v47, %v7487_v9  ;;  %v9076_v47 = vld [vmem:[%s13397_s6 + $0x454] sm:$0xf0] }
 0x287   : > { %3263 = vmatpush.bf16.msrb.mxu1 %v7304_v8  ;;  %v7492_v8 = vor.u32 %v9069_v35, %v7489_v61  ;;  %v7513_v35 = vld [vmem:[%s13397_s6 + $0x458] sm:$0xf0]  ;;  %v2149_v61 = vadd.f32 %v11528_v10, %v11565_v57  ;;  %v7503_v10 = vld [vmem:[%s13397_s6 + $0x440] sm:$0xf]  ;;  %v9074_v57 = vld [vmem:[%s13397_s6 + $0x444] sm:$0xf0] }
 0x288   : > { %3276 = vmatpush.bf16.msrb.mxu3 %v7368_v25  ;;  %3289 = vmatpush.bf16.msrb.mxu0 %v7308_v26  ;;  %v7544_v25 = vor.u32 %v9084_v62, %v7543_v56  ;;  %v7479_v26 = vld [vmem:[%s13397_s6 + $0x410] sm:$0xf]  ;;  %v9061_v56 = vld [vmem:[%s13397_s6 + $0x3e4] sm:$0xf]  ;;  %v9075_v62 = vld [vmem:[%s13397_s6 + $0x454] sm:$0xf] }
 0x289   : > { %3302 = vmatpush.bf16.msrb.mxu2 %v7372_v0  ;;  %v9067_v0 = vld [vmem:[%s13397_s6 + $0x414] sm:$0xf]  ;;  %v7480_v4 = vor.u32 %v9068_v29, %v7479_v26  ;;  %v2111_v28 = vpop.f32.mrf.mxu3  ;;  %v7516_v29 = vor.u32 %v9075_v62, %v7513_v35  ;;  %v7697_v35 = vld [vmem:[%s13398_s7 + $0x498] sm:$0xf0] }
 0x28a   : > { %v9101_v28 = vld [vmem:[%s13398_s7 + $0x434] sm:$0xf] }
 0x28b   : > { %3264 = vmatpush.bf16.msrb.mxu1 %v7296_v51  ;;  %v7540_v51 = vor.u32 %v9081_v58, %v7537_v59  ;;  %v9102_v58 = vld [vmem:[%s13398_s7 + $0x434] sm:$0xf0]  ;;  %v2123_v59 = vadd.f32 %v11517_v37, %v11563_v38  ;;  %v9058_v37 = vld [vmem:[%s13397_s6 + $0x3c4] sm:$0xf0]  ;;  %v9057_v38 = vld [vmem:[%s13397_s6 + $0x3c4] sm:$0xf] }
 0x28c   : > { %3277 = vmatpush.bf16.msrb.mxu3 %v7360_v14  ;;  %3290 = vmatpush.bf16.msrb.mxu0 %v7300_v52  ;;  %v7484_v14 = vor.u32 %v9067_v0, %v7481_v1  ;;  %v2137_v50 = vpop.f32.mrf.mxu2  ;;  %v9080_v52 = vld [vmem:[%s13397_s6 + $0x474] sm:$0xf0]  ;;  %v7505_v0 = vld [vmem:[%s13397_s6 + $0x448] sm:$0xf0]  ;;  %v7647_v1 = vld [vmem:[%s13398_s7 + $0x430] sm:$0xf] }
 0x28d   : > { %3303 = vmatpush.bf16.msrb.mxu2 %v7364_v11  ;;  %v7529_v11 = vld [vmem:[%s13397_s6 + $0x478] sm:$0xf0]  ;;  %v9113_v62 = vld [vmem:[%s13398_s7 + $0x494] sm:$0xf] }
 0x28f   : > { %3265 = vmatpush.bf16.msrb.mxu1 %v7288_v23  ;;  %v9077_v23 = vld [vmem:[%s13397_s6 + $0x464] sm:$0xf] }
 0x290   : > { %3278 = vmatpush.bf16.msrb.mxu3 %v7352_v20  ;;  %3291 = vmatpush.bf16.msrb.mxu0 %v7292_v24  ;;  %v7532_v20 = vor.u32 %v9079_v41, %v7529_v11  ;;  %v7521_v24 = vld [vmem:[%s13397_s6 + $0x468] sm:$0xf0] }
 0x291   : > { %3304 = vmatpush.bf16.msrb.mxu2 %v7356_v3  ;;  %v7468_v3 = vor.u32 %v9063_v48, %v7465_v34  ;;  %v7524_v9 = vor.u32 %v9077_v23, %v7521_v24  ;;  %v9115_v48 = vld [vmem:[%s13398_s7 + $0x4a4] sm:$0xf]  ;;  %v7705_v34 = vld [vmem:[%s13398_s7 + $0x4a8] sm:$0xf0] }
 0x292   : > { %3266 = vmatmul.bf16.vlgmr.msrb.gmra.mxu1 %v10424_v33 }
 0x293   : > { %3513 = vmatpush.bf16.msra.mxu1 %v7552_v43  ;;  %7405 = vmatmul.msk.bf16.vlgmr.msrb.gmra.mxu3 %vm1658_vm6, %v10411_v49  ;;  %v9062_v43 = vld [vmem:[%s13397_s6 + $0x3e4] sm:$0xf0] }
 0x294   : > { %3499 = vmatpush.bf16.msra.mxu3 %v7496_v27  ;;  %3539 = vmatpush.bf16.msra.mxu0 %v7556_v60  ;;  %v7455_v27 = vld [vmem:[%s13397_s6 + $0x3e0] sm:$0xf]  ;;  %v7457_v60 = vld [vmem:[%s13397_s6 + $0x3e8] sm:$0xf0] }
 0x295   : > { %3525 = vmatpush.bf16.msra.mxu2 %v7500_v44  ;;  %3292 = vmatmul.bf16.vlgmr.msrb.gmra.mxu0 %v10424_v33  ;;  %v7471_v33 = vld [vmem:[%s13397_s6 + $0x400] sm:$0xf]  ;;  %v7511_v44 = vld [vmem:[%s13397_s6 + $0x450] sm:$0xf]  ;;  %v7456_v6 = vor.u32 %v9062_v43, %v7455_v27  ;;  %v9098_v43 = vld [vmem:[%s13398_s7 + $0x414] sm:$0xf0] }
 0x296   : > { %7406 = vmatmul.msk.bf16.vlgmr.msrb.gmra.mxu2 %vm1658_vm6, %v10411_v49  ;;  %v7527_v49 = vld [vmem:[%s13397_s6 + $0x470] sm:$0xf]  ;;  %v7472_v12 = vor.u32 %v9066_v36, %v7471_v33  ;;  %v7439_v33 = vld [vmem:[%s13397_s6 + $0x3c0] sm:$0xf] }
 0x297   : > { %3514 = vmatpush.bf16.msra.mxu1 %v7544_v25  ;;  %v7528_v13 = vor.u32 %v9080_v52, %v7527_v49  ;;  %v2311_v30 = vpop.f32.mrf.mxu1  ;;  %v7460_v25 = vor.u32 %v9061_v56, %v7457_v60  ;;  %v7508_v49 = vor.u32 %v9073_v40, %v7505_v0  ;;  %v7441_v52 = vld [vmem:[%s13397_s6 + $0x3c8] sm:$0xf0]  ;;  %v7631_v27 = vld [vmem:[%s13398_s7 + $0x410] sm:$0xf]  ;;  %v9097_v56 = vld [vmem:[%s13398_s7 + $0x414] sm:$0xf] }
 0x298   : > { %3500 = vmatpush.bf16.msra.mxu3 %v7488_v7  ;;  %3540 = vmatpush.bf16.msra.mxu0 %v7548_v32  ;;  %v7512_v7 = vor.u32 %v9076_v47, %v7511_v44  ;;  %v7449_v32 = vld [vmem:[%s13397_s6 + $0x3d8] sm:$0xf0]  ;;  %v2312_v36 = vadd.f32 %v2311_v30, %v2123_v59  ;;  %v7444_v24 = vor.u32 %v9057_v38, %v7441_v52  ;;  %v9114_v47 = vld [vmem:[%s13398_s7 + $0x494] sm:$0xf0]  ;;  %v7689_v40 = vld [vmem:[%s13398_s7 + $0x488] sm:$0xf0] }
 0x299   : > { %3526 = vmatpush.bf16.msra.mxu2 %v7492_v8  ;;  %v9060_v8 = vld [vmem:[%s13397_s6 + $0x3d4] sm:$0xf0]  ;;  %v7452_v50 = vor.u32 %v9059_v31, %v7449_v32  ;;  %v7633_v60 = vld [vmem:[%s13398_s7 + $0x418] sm:$0xf0]  ;;  %v7632_v30 = vor.u32 %v9098_v43, %v7631_v27  ;;  %v7625_v31 = vld [vmem:[%s13398_s7 + $0x408] sm:$0xf0] }
 0x29a   : > { %v2337_v46 = vpop.f32.mrf.mxu0  ;;  %v9111_v32 = vld [vmem:[%s13398_s7 + $0x484] sm:$0xf]  ;;  %v9094_v59 = vld [vmem:[%s13398_s7 + $0x3f4] sm:$0xf0]  ;;  %v7681_v38 = vld [vmem:[%s13398_s7 + $0x478] sm:$0xf0] }
 0x29b   : > { %3515 = vmatpush.bf16.msra.mxu1 %v7536_v5  ;;  %v11707_v26 = vadd.f32 %v2337_v46, %v2149_v61  ;;  %v7649_v5 = vld [vmem:[%s13398_s7 + $0x438] sm:$0xf0]  ;;  %v11807_v61 = vrot.slane %v10370_v39, 2  ;;  %v9096_v46 = vld [vmem:[%s13398_s7 + $0x404] sm:$0xf0] }
 0x29c   : > { %3501 = vmatpush.bf16.msra.mxu3 %v7480_v4  ;;  %3541 = vmatpush.bf16.msra.mxu0 %v7540_v51  ;;  %v7448_v4 = vor.u32 %v9060_v8, %v7447_v45  ;;  %v7648_v51 = vor.u32 %v9102_v58, %v7647_v1  ;;  %v7652_v11 = vor.u32 %v9101_v28, %v7649_v5  ;;  %v7623_v45 = vld [vmem:[%s13398_s7 + $0x400] sm:$0xf]  ;;  %v7615_v58 = vld [vmem:[%s13398_s7 + $0x3f0] sm:$0xf]  ;;  %v9092_v52 = vld [vmem:[%s13398_s7 + $0x3e4] sm:$0xf0] }
 0x29d   : > { %3527 = vmatpush.bf16.msra.mxu2 %v7484_v14  ;;  %v7504_v14 = vor.u32 %v9074_v57, %v7503_v10  ;;  %v2324_v41 = vpop.f32.mrf.mxu3  ;;  %v7700_v8 = vor.u32 %v9113_v62, %v7697_v35  ;;  %v7687_v39 = vld [vmem:[%s13398_s7 + $0x480] sm:$0xf]  ;;  %v9112_v10 = vld [vmem:[%s13398_s7 + $0x484] sm:$0xf0]  ;;  %v9095_v57 = vld [vmem:[%s13398_s7 + $0x404] sm:$0xf]  ;;  %v7624_v0 = vor.u32 %v9096_v46, %v7623_v45  ;;  %v7692_v28 = vor.u32 %v9111_v32, %v7689_v40 }
 0x29e   : > { %v11762_v17 = vadd.f32 %v2324_v41, %v2312_v36  ;;  %v7688_v1 = vor.u32 %v9112_v10, %v7687_v39  ;;  %v7679_v5 = vld [vmem:[%s13398_s7 + $0x470] sm:$0xf]  ;;  %v7616_v36 = vor.u32 %v9094_v59, %v7615_v58  ;;  %v7671_v41 = vld [vmem:[%s13398_s7 + $0x460] sm:$0xf]  ;;  %v9106_v43 = vld [vmem:[%s13398_s7 + $0x454] sm:$0xf0]  ;;  %v1916_v58 = vadd.f32 %v11435_v22, %v11405_v15 }
 0x29f   : > { %3516 = vmatpush.bf16.msra.mxu1 %v7528_v13  ;;  %v9116_v13 = vld [vmem:[%s13398_s7 + $0x4a4] sm:$0xf0]  ;;  %v2313_v19 = vpop.f32.mrf.mxu1  ;;  %v7663_v27 = vld [vmem:[%s13398_s7 + $0x450] sm:$0xf]  ;;  %v7591_v62 = vld [vmem:[%s13398_s7 + $0x3c0] sm:$0xf] }
 0x2a0   : > { %3502 = vmatpush.bf16.msra.mxu3 %v7472_v12  ;;  %3542 = vmatpush.bf16.msra.mxu0 %v7532_v20  ;;  %v7703_v12 = vld [vmem:[%s13398_s7 + $0x4a0] sm:$0xf]  ;;  %v11764_v18 = vpop.f32.mrf.mxu2  ;;  %v7440_v20 = vor.u32 %v9058_v37, %v7439_v33  ;;  %v7617_v33 = vld [vmem:[%s13398_s7 + $0x3f8] sm:$0xf0]  ;;  %v9109_v37 = vld [vmem:[%s13398_s7 + $0x474] sm:$0xf] }
 0x2a1   : > { %3528 = vmatpush.bf16.msra.mxu2 %v7476_v16  ;;  %v9099_v16 = vld [vmem:[%s13398_s7 + $0x424] sm:$0xf]  ;;  %v7673_v19 = vld [vmem:[%s13398_s7 + $0x468] sm:$0xf0]  ;;  %v9088_v35 = vld [vmem:[%s13398_s7 + $0x3c4] sm:$0xf0] }
 0x2a2   : > { %v2339_v23 = vpop.f32.mrf.mxu0  ;;  %v7644_v44 = vor.u32 %v9099_v16, %v7641_v21  ;;  %v9107_v16 = vld [vmem:[%s13398_s7 + $0x464] sm:$0xf]  ;;  %v7655_v45 = vld [vmem:[%s13398_s7 + $0x440] sm:$0xf]  ;;  %v9104_v46 = vld [vmem:[%s13398_s7 + $0x444] sm:$0xf0] }
 0x2a3   : > { %3517 = vmatpush.bf16.msra.mxu1 %v7520_v53  ;;  %v7640_v53 = vor.u32 %v9100_v55, %v7639_v54  ;;  %v7684_v55 = vor.u32 %v9109_v37, %v7681_v38  ;;  %v9090_v23 = vld [vmem:[%s13398_s7 + $0x3d4] sm:$0xf0]  ;;  %v7657_v39 = vld [vmem:[%s13398_s7 + $0x448] sm:$0xf0] }
 0x2a4   : > { %3503 = vmatpush.bf16.msra.mxu3 %v7464_v2  ;;  %3543 = vmatpush.bf16.msra.mxu0 %v7524_v9  ;;  %v11776_v2 = vrot.slane %v10373_v42, 2  ;;  %v7708_v9 = vor.u32 %v9115_v48, %v7705_v34  ;;  %v7695_v42 = vld [vmem:[%s13398_s7 + $0x490] sm:$0xf] }
 0x2a5   : > { %3529 = vmatpush.bf16.msra.mxu2 %v7468_v3  ;;  %v7704_v3 = vor.u32 %v9116_v13, %v7703_v12  ;;  %v9091_v12 = vld [vmem:[%s13398_s7 + $0x3e4] sm:$0xf]  ;;  %v7609_v13 = vld [vmem:[%s13398_s7 + $0x3e8] sm:$0xf0]  ;;  %v7599_v34 = vld [vmem:[%s13398_s7 + $0x3d0] sm:$0xf] }
 0x2a7   : > { %3518 = vmatpush.bf16.msra.mxu1 %v7512_v7  ;;  %v2326_v7 = vpop.f32.mrf.mxu3 }
 0x2a8   : > { %3504 = vmatpush.bf16.msra.mxu3 %v7456_v6  ;;  %3544 = vmatpush.bf16.msra.mxu0 %v7516_v29  ;;  %v7696_v6 = vor.u32 %v9114_v47, %v7695_v42  ;;  %v2352_v29 = vpop.f32.mrf.mxu2  ;;  %v9105_v42 = vld [vmem:[%s13398_s7 + $0x454] sm:$0xf]  ;;  %v7665_v47 = vld [vmem:[%s13398_s7 + $0x458] sm:$0xf0]  ;;  %v9087_v7 = vld [vmem:[%s13398_s7 + $0x3c4] sm:$0xf] }
 0x2a9   : > { %3530 = vmatpush.bf16.msra.mxu2 %v7460_v25  ;;  %v7636_v25 = vor.u32 %v9097_v56, %v7633_v60  ;;  %v7600_v56 = vor.u32 %v9090_v23, %v7599_v34  ;;  %v7664_v60 = vor.u32 %v9106_v43, %v7663_v27  ;;  %v7656_v29 = vor.u32 %v9104_v46, %v7655_v45  ;;  %v7863_v45 = vld [vmem:[%s13402_s11 + $0x250] sm:$0xf] }
 0x2ab   : > { %3519 = vmatpush.bf16.msra.mxu1 %v7504_v14  ;;  %v9110_v14 = vld [vmem:[%s13398_s7 + $0x474] sm:$0xf0] }
 0x2ac   : > { %3505 = vmatpush.bf16.msra.mxu3 %v7448_v4  ;;  %3545 = vmatpush.bf16.msra.mxu0 %v7508_v49  ;;  %v7628_v4 = vor.u32 %v9095_v57, %v7625_v31  ;;  %v7680_v49 = vor.u32 %v9110_v14, %v7679_v5  ;;  %v7592_v57 = vor.u32 %v9088_v35, %v7591_v62 }
 0x2ad   : > { %3531 = vmatpush.bf16.msra.mxu2 %v7452_v50  ;;  %v9093_v50 = vld [vmem:[%s13398_s7 + $0x3f4] sm:$0xf] }
 0x2ae   : > { %7557 = vmatmul.msk.bf16.vlgmr.msra.gmra.mxu1 %vm1658_vm6, %v11776_v2  ;;  %v7620_v54 = vor.u32 %v9093_v50, %v7617_v33 }
 0x2af   : > { %3734 = vmatpush.bf16.msrb.mxu1 %v7648_v51  ;;  %7558 = vmatmul.msk.bf16.vlgmr.msra.gmra.mxu0 %vm1658_vm6, %v11776_v2  ;;  %v7607_v51 = vld [vmem:[%s13398_s7 + $0x3e0] sm:$0xf] }
 0x2b0   : > { %3760 = vmatpush.bf16.msrb.mxu0 %v7652_v11  ;;  %3506 = vmatpush.bf16.msra.mxu3 %v7440_v20  ;;  %v9108_v11 = vld [vmem:[%s13398_s7 + $0x464] sm:$0xf0]  ;;  %v7608_v21 = vor.u32 %v9092_v52, %v7607_v51 }
 0x2b1   : > { %3532 = vmatpush.bf16.msra.mxu2 %v7444_v24  ;;  %v7672_v48 = vor.u32 %v9108_v11, %v7671_v41 }
 0x2b3   : > { %3735 = vmatpush.bf16.msrb.mxu1 %v7640_v53  ;;  %3507 = vmatmul.bf16.vlgmr.msra.gmra.mxu3 %v11807_v61  ;;  %v2565_v20 = vpop.f32.mrf.mxu1  ;;  %v7612_v53 = vor.u32 %v9091_v12, %v7609_v13 }
 0x2b4   : > { %3748 = vmatpush.bf16.msrb.mxu3 %v7704_v3  ;;  %3761 = vmatpush.bf16.msrb.mxu0 %v7644_v44  ;;  %v7676_v3 = vor.u32 %v9107_v16, %v7673_v19  ;;  %v9089_v44 = vld [vmem:[%s13398_s7 + $0x3d4] sm:$0xf] }
 0x2b5   : > { %3774 = vmatpush.bf16.msrb.mxu2 %v7708_v9  ;;  %v7601_v9 = vld [vmem:[%s13398_s7 + $0x3d8] sm:$0xf0] }
 0x2b6   : > { %3533 = vmatmul.bf16.vlgmr.msra.gmra.mxu2 %v11807_v61  ;;  %v2591_v24 = vpop.f32.mrf.mxu0 }
 0x2b7   : > { %3736 = vmatpush.bf16.msrb.mxu1 %v7632_v30  ;;  %v7604_v30 = vor.u32 %v9089_v44, %v7601_v9 }
 0x2b8   : > { %3749 = vmatpush.bf16.msrb.mxu3 %v7696_v6  ;;  %3762 = vmatpush.bf16.msrb.mxu0 %v7636_v25  ;;  %v7668_v6 = vor.u32 %v9105_v42, %v7665_v47  ;;  %v7593_v25 = vld [vmem:[%s13398_s7 + $0x3c8] sm:$0xf0] }
 0x2b9   : > { %3775 = vmatpush.bf16.msrb.mxu2 %v7700_v8  ;;  %v9103_v8 = vld [vmem:[%s13398_s7 + $0x444] sm:$0xf]  ;;  %v7596_v32 = vor.u32 %v9087_v7, %v7593_v25  ;;  %v9191_v7 = vld [vmem:[%s13402_s11 + $0x25c] sm:$0xf0] }
 0x2ba   : > { %v7660_v40 = vor.u32 %v9103_v8, %v7657_v39  ;;  %v7864_v25 = vor.u32 %v9191_v7, %v7863_v45  ;;  %v7847_v8 = vld [vmem:[%s13402_s11 + $0x230] sm:$0xf]  ;;  %v9187_v39 = vld [vmem:[%s13402_s11 + $0x23c] sm:$0xf0] }
 0x2bb   : > { %3737 = vmatpush.bf16.msrb.mxu1 %v7624_v0  ;;  %v2567_v10 = vpop.f32.mrf.mxu1  ;;  %v7783_v45 = vld [vmem:[%s13402_s11 + $0x1b0] sm:$0xf] }
 0x2bc   : > { %3750 = vmatpush.bf16.msrb.mxu3 %v7688_v1  ;;  %3763 = vmatpush.bf16.msrb.mxu0 %v7628_v4 }
 0x2bd   : > { %3776 = vmatpush.bf16.msrb.mxu2 %v7692_v28  ;;  %v2552_v0 = vpop.f32.mrf.mxu3 }
 0x2be   : > { %v2593_v31 = vpop.f32.mrf.mxu0  ;;  %v2566_v59 = vadd.f32 %v2565_v20, %v2552_v0  ;;  %v7831_v0 = vld [vmem:[%s13402_s11 + $0x210] sm:$0xf] }
 0x2bf   : > { %3738 = vmatpush.bf16.msrb.mxu1 %v7616_v36  ;;  %v7848_v31 = vor.u32 %v9187_v39, %v7847_v8  ;;  %v9209_v8 = vld [vmem:[%s13402_s11 + $0x2f4] sm:$0xf]  ;;  %v7945_v39 = vld [vmem:[%s13402_s11 + $0x300] sm:$0xf0] }
 0x2c0   : > { %3751 = vmatpush.bf16.msrb.mxu3 %v7680_v49  ;;  %3764 = vmatpush.bf16.msrb.mxu0 %v7620_v54  ;;  %v2578_v1 = vpop.f32.mrf.mxu2  ;;  %v2595_v28 = vadd.f32 %v2566_v59, %v11455_v63  ;;  %v2351_v63 = vadd.f32 %v11764_v18, %v11707_v26 }
 0x2c1   : > { %3777 = vmatpush.bf16.msrb.mxu2 %v7684_v55  ;;  %v2592_v4 = vadd.f32 %v2591_v24, %v2578_v1  ;;  %v9183_v1 = vld [vmem:[%s13402_s11 + $0x21c] sm:$0xf0] }
 0x2c3   : > { %3739 = vmatpush.bf16.msrb.mxu1 %v7608_v21  ;;  %v2596_v5 = vadd.f32 %v2592_v4, %v1916_v58 }
 0x2c4   : > { %3752 = vmatpush.bf16.msrb.mxu3 %v7672_v48  ;;  %3765 = vmatpush.bf16.msrb.mxu0 %v7612_v53 }
 0x2c5   : > { %3778 = vmatpush.bf16.msrb.mxu2 %v7676_v3  ;;  %v2554_v15 = vpop.f32.mrf.mxu3 }
 0x2c7   : > { %3740 = vmatpush.bf16.msrb.mxu1 %v7600_v56 }
 0x2c8   : > { %3753 = vmatpush.bf16.msrb.mxu3 %v7664_v60  ;;  %3766 = vmatpush.bf16.msrb.mxu0 %v7604_v30  ;;  %v2580_v22 = vpop.f32.mrf.mxu2  ;;  %v7879_v30 = vld [vmem:[%s13402_s11 + $0x270] sm:$0xf] }
 0x2c9   : > { %3779 = vmatpush.bf16.msrb.mxu2 %v7668_v6  ;;  %v9195_v6 = vld [vmem:[%s13402_s11 + $0x27c] sm:$0xf0] }
 0x2ca   : > { %v7880_v46 = vor.u32 %v9195_v6, %v7879_v30 }
 0x2cb   : > { %3741 = vmatpush.bf16.msrb.mxu1 %v7592_v57 }
 0x2cc   : > { %3754 = vmatpush.bf16.msrb.mxu3 %v7656_v29  ;;  %3767 = vmatpush.bf16.msrb.mxu0 %v7596_v32  ;;  %v3788_v32 = vld [vmem:[%s13399_s8] sm:$0x3] }
 0x2cd   : > { %3780 = vmatpush.bf16.msrb.mxu2 %v7660_v40  ;;  %v3791_v22 = vperm.slane %v3788_v32, 1 }
 0x2ce   : > { %3742 = vmatmul.bf16.vlgmr.msrb.gmra.mxu1 %v11807_v61 }
 0x2cf   : > { %7709 = vmatmul.msk.bf16.vlgmr.msrb.gmra.mxu3 %vm1658_vm6, %v11776_v2  ;;  %3768 = vmatmul.bf16.vlgmr.msrb.gmra.mxu0 %v11807_v61 }
 0x2d0   : > { %7710 = vmatmul.msk.bf16.vlgmr.msrb.gmra.mxu2 %vm1658_vm6, %v11776_v2  ;;  %4272 = vmatpush.bf16.msra.mxu3 %v7880_v46  ;;  %v9171_v46 = vld [vmem:[%s13402_s11 + $0x1bc] sm:$0xf0] }
 0x2d3   : > { %v2787_v14 = vpop.f32.mrf.mxu1 }
 0x2d4   : > { %4273 = vmatpush.bf16.msra.mxu3 %v7864_v25 }
 0x2d6   : > { %v2813_v50 = vpop.f32.mrf.mxu0 }
 0x2d8   : > { %4274 = vmatpush.bf16.msra.mxu3 %v7848_v31  ;;  %v7927_v31 = vld [vmem:[%s13402_s11 + $0x2d0] sm:$0xf] }
 0x2d9   : > { %v2800_v33 = vpop.f32.mrf.mxu3 }
 0x2da   : > { %v2801_v37 = vadd.f32 %v2800_v33, %v2787_v14  ;;  %v9179_v33 = vld [vmem:[%s13402_s11 + $0x1fc] sm:$0xf0] }
 0x2db   : > { %v2789_v49 = vpop.f32.mrf.mxu1 }
 0x2dc   : > { %v2826_v38 = vpop.f32.mrf.mxu2  ;;  %v2830_v51 = vadd.f32 %v2801_v37, %v11762_v17 }
 0x2dd   : > { %v2827_v36 = vadd.f32 %v2826_v38, %v2813_v50  ;;  %v7815_v50 = vld [vmem:[%s13402_s11 + $0x1f0] sm:$0xf] }
 0x2de   : > { %v2815_v52 = vpop.f32.mrf.mxu0 }
 0x2df   : > { %v11943_v54 = vadd.f32 %v2827_v36, %v2351_v63  ;;  %v7763_v36 = vld [vmem:[%s13402_s11 + $0x310] sm:$0xff] }
 0x2e1   : > { %v2802_v61 = vpop.f32.mrf.mxu3 }
 0x2e4   : > { %v2828_v55 = vpop.f32.mrf.mxu2 }
 0x2ef   : > { %v3045_v2 = vpop.f32.mrf.mxu1 }
 0x2f0   : > { %v3071_v41 = vpop.f32.mrf.mxu0 }
 0x2f7   : > { %v3047_v11 = vpop.f32.mrf.mxu1 }
 0x2f8   : > { %v3073_v12 = vpop.f32.mrf.mxu0  ;;  %v7816_v11 = vor.u32 %v9179_v33, %v7815_v50  ;;  %v7833_v50 = vld [vmem:[%s13402_s11 + $0x220] sm:$0xf0] }
 0x2fa   : > { %v3032_v13 = vpop.f32.mrf.mxu3 }
 0x2fb   : > { %v3046_v16 = vadd.f32 %v3045_v2, %v3032_v13 }
 0x2fd   : > { %v3058_v19 = vpop.f32.mrf.mxu2  ;;  %v3075_v21 = vadd.f32 %v3046_v16, %v2595_v28  ;;  %v3790_v28 = vperm.slane %v3788_v32, 0  ;;  %v4151_v16 = vunpack.c.l.b16 %v7763_v36  ;;  %v7784_v32 = vor.u32 %v9171_v46, %v7783_v45 }
 0x2fe   : > { %v3072_v20 = vadd.f32 %v3071_v41, %v3058_v19 }
 0x300   : > { %v3076_v48 = vadd.f32 %v3072_v20, %v2596_v5  ;;  %v7832_v5 = vor.u32 %v9183_v1, %v7831_v0  ;;  %v7767_v0 = vld [vmem:[%s13402_s11 + $0x190] sm:$0xf]  ;;  %v9167_v1 = vld [vmem:[%s13402_s11 + $0x19c] sm:$0xf0] }
 0x301   : > { %v7768_v33 = vor.u32 %v9167_v1, %v7767_v0 }
 0x302   : > { %v3034_v26 = vpop.f32.mrf.mxu3  ;;  %4275 = vmatpush.bf16.msra.mxu3 %v7832_v5  ;;  %v9205_v5 = vld [vmem:[%s13402_s11 + $0x2d4] sm:$0xf] }
 0x303   : > { %v9193_v26 = vld [vmem:[%s13402_s11 + $0x274] sm:$0xf] }
 0x305   : > { %v3060_v18 = vpop.f32.mrf.mxu2 }
 0x306   : > { %4276 = vmatpush.bf16.msra.mxu3 %v7816_v11 }
 0x30f   : > { %v3267_v34 = vpop.f32.mrf.mxu1 }
 0x312   : > { %v3293_v23 = vpop.f32.mrf.mxu0 }
 0x316   : > { %v3280_v17 = vpop.f32.mrf.mxu3 }
 0x317   : > { %v3269_v53 = vpop.f32.mrf.mxu1  ;;  %v3281_v58 = vadd.f32 %v3280_v17, %v3267_v34  ;;  %v4203_v17 = vpack.c.b16 %v4151_v16, %v4151_v16 }
 0x318   : > { %v9175_v53 = vld [vmem:[%s13402_s11 + $0x1dc] sm:$0xf0] }
 0x319   : > { %v3306_v24 = vpop.f32.mrf.mxu2  ;;  %v3310_v37 = vadd.f32 %v3281_v58, %v2830_v51  ;;  %v4152_v51 = vunpack.c.h.b16 %v7763_v36  ;;  %v4261_v6 = vsel %vm4259_vm8, %v4203_v17, 0  ;;  %v9194_v58 = vld [vmem:[%s13402_s11 + $0x27c] sm:$0xf]  ;;  %v7897_v17 = vld [vmem:[%s13402_s11 + $0x2a0] sm:$0xf0] }
 0x31a   : > { %v3295_v3 = vpop.f32.mrf.mxu0  ;;  %v3307_v59 = vadd.f32 %v3306_v24, %v3293_v23  ;;  %v7799_v24 = vld [vmem:[%s13402_s11 + $0x1d0] sm:$0xf]  ;;  %v9190_v36 = vld [vmem:[%s13402_s11 + $0x25c] sm:$0xf] }
 0x31b   : > { %v7800_v30 = vor.u32 %v9175_v53, %v7799_v24  ;;  %v9173_v53 = vld [vmem:[%s13402_s11 + $0x1d4] sm:$0xf] }
 0x31c   : > { %v3311_v49 = vadd.f32 %v3307_v59, %v11943_v54  ;;  %v7881_v54 = vld [vmem:[%s13402_s11 + $0x280] sm:$0xf0]  ;;  %v7889_v59 = vld [vmem:[%s13402_s11 + $0x288] sm:$0xf0] }
 0x31d   : > { %4277 = vmatpush.bf16.msra.mxu3 %v7800_v30  ;;  %v7785_v30 = vld [vmem:[%s13402_s11 + $0x1c0] sm:$0xf0] }
 0x31e   : > { %v3282_v27 = vpop.f32.mrf.mxu3 }
 0x321   : > { %v3308_v43 = vpop.f32.mrf.mxu2  ;;  %4278 = vmatpush.bf16.msra.mxu3 %v7784_v32  ;;  %v7839_v32 = vld [vmem:[%s13402_s11 + $0x218] sm:$0xf] }
 0x322   : > { %v3804_v43 = vld [vmem:[%s13400_s9] sm:$0xf] }
 0x325   : > { %4279 = vmatpush.bf16.msra.mxu3 %v7768_v33  ;;  %v7951_v33 = vld [vmem:[%s13402_s11 + $0x2f8] sm:$0xf] }
 0x32b   : > { %v3521_v44 = vpop.f32.mrf.mxu1 }
 0x32c   : > { %v3547_v9 = vpop.f32.mrf.mxu0 }
 0x333   : > { %v3523_v42 = vpop.f32.mrf.mxu1 }
 0x334   : > { %v3549_v47 = vpop.f32.mrf.mxu0  ;;  %v3849_v42 = vld [vmem:[%s13401_s10] sm:$0xf] }
 0x335   : > { %v7884_v47 = vor.u32 %v9193_v26, %v7881_v54  ;;  %v9186_v26 = vld [vmem:[%s13402_s11 + $0x23c] sm:$0xf]  ;;  %v7857_v54 = vld [vmem:[%s13402_s11 + $0x248] sm:$0xf0] }
 0x336   : > { %v3508_v56 = vpop.f32.mrf.mxu3 }
 0x337   : > { %v3522_v57 = vadd.f32 %v3521_v44, %v3508_v56  ;;  %v4204_v44 = vpack.c.b16 %v4152_v51, %v4152_v51  ;;  %v9189_v56 = vld [vmem:[%s13402_s11 + $0x254] sm:$0xf]  ;;  %v9199_v51 = vld [vmem:[%s13402_s11 + $0x29c] sm:$0xf0] }
 0x339   : > { %v3534_v60 = vpop.f32.mrf.mxu2  ;;  %v3551_v4 = vadd.f32 %v3522_v57, %v3075_v21  ;;  %v4264_v7 = vsel %vm4259_vm8, %v4204_v44, 0  ;;  %v9185_v57 = vld [vmem:[%s13402_s11 + $0x234] sm:$0xf]  ;;  %v7871_v44 = vld [vmem:[%s13402_s11 + $0x258] sm:$0xf] }
 0x33a   : > { %v3548_v40 = vadd.f32 %v3547_v9, %v3534_v60  ;;  %v7865_v60 = vld [vmem:[%s13402_s11 + $0x260] sm:$0xf0] }
 0x33b   : > { %v3794_v55 = vadd.f32 %v3790_v28, %v3551_v4  ;;  %v7868_v25 = vor.u32 %v9189_v56, %v7865_v60  ;;  %v7948_v4 = vor.u32 %v9209_v8, %v7945_v39  ;;  %v7841_v56 = vld [vmem:[%s13402_s11 + $0x228] sm:$0xf0]  ;;  %v9188_v8 = vld [vmem:[%s13402_s11 + $0x244] sm:$0xf0] }
 0x33c   : > { %v3552_v15 = vadd.f32 %v3548_v40, %v3076_v48  ;;  %v9207_v40 = vld [vmem:[%s13402_s11 + $0x2dc] sm:$0xf0] }
 0x33d   : > { %v3796_v21 = vmax.f32 %v3794_v55, 0.0  ;;  %v9201_v55 = vld [vmem:[%s13402_s11 + $0x2b4] sm:$0xf] }
 0x33e   : > { %v3510_v62 = vpop.f32.mrf.mxu3  ;;  %v3795_v12 = vadd.f32 %v3791_v22, %v3552_v15  ;;  %v7929_v15 = vld [vmem:[%s13402_s11 + $0x2e0] sm:$0xf0] }
 0x33f   : > { %v7943_v62 = vld [vmem:[%s13402_s11 + $0x2f0] sm:$0xf] }
 0x340   : > { %v3797_v18 = vmax.f32 %v3795_v12, 0.0  ;;  %v9177_v12 = vld [vmem:[%s13402_s11 + $0x1f4] sm:$0xf] }
 0x341   : > { %v3536_v35 = vpop.f32.mrf.mxu2 }
 0x342   : > { %v9211_v35 = vld [vmem:[%s13402_s11 + $0x2fc] sm:$0xf0] }
 0x34b   : > { %v3743_v10 = vpop.f32.mrf.mxu1 }
 0x34c   : > { %v3769_v29 = vpop.f32.mrf.mxu0 }
 0x352   : > { %v3756_v14 = vpop.f32.mrf.mxu3 }
 0x353   : > { %v3757_v38 = vadd.f32 %v3756_v14, %v3743_v10  ;;  %v3782_v63 = vpop.f32.mrf.mxu2  ;;  %v3745_v61 = vpop.f32.mrf.mxu1  ;;  %v7944_v10 = vor.u32 %v9211_v35, %v7943_v62  ;;  %v9181_v14 = vld [vmem:[%s13402_s11 + $0x214] sm:$0xf] }
 0x354   : > { %v3783_v52 = vadd.f32 %v3782_v63, %v3769_v29  ;;  %v3771_v41 = vpop.f32.mrf.mxu0  ;;  %v7849_v29 = vld [vmem:[%s13402_s11 + $0x240] sm:$0xf0]  ;;  %v7892_v63 = vor.u32 %v9194_v58, %v7889_v59  ;;  %v7836_v61 = vor.u32 %v9181_v14, %v7833_v50  ;;  %v9169_v35 = vld [vmem:[%s13402_s11 + $0x1b4] sm:$0xf]  ;;  %v9178_v59 = vld [vmem:[%s13402_s11 + $0x1fc] sm:$0xf] }
 0x355   : > { %v3786_v2 = vadd.f32 %v3757_v38, %v3310_v37  ;;  %v7911_v37 = vld [vmem:[%s13402_s11 + $0x2b0] sm:$0xf]  ;;  %v9203_v38 = vld [vmem:[%s13402_s11 + $0x2bc] sm:$0xf0]  ;;  %v7764_v41 = vld [vmem:[%s13402_s11 + $0x318] sm:$0xff]  ;;  %v7788_v39 = vor.u32 %v9169_v35, %v7785_v30 }
 0x356   : > { %v3787_v13 = vadd.f32 %v3783_v52, %v3311_v49  ;;  %v7873_v49 = vld [vmem:[%s13402_s11 + $0x268] sm:$0xf0]  ;;  %v7932_v52 = vor.u32 %v9205_v5, %v7929_v15  ;;  %v7912_v11 = vor.u32 %v9203_v38, %v7911_v37  ;;  %v4153_v16 = vunpack.c.l.b16 %v7764_v41  ;;  %4350 = vmatpush.bf16.msrb.mxu3 %v7892_v63  ;;  %v7823_v14 = vld [vmem:[%s13402_s11 + $0x1f8] sm:$0xf]  ;;  %v9180_v50 = vld [vmem:[%s13402_s11 + $0x204] sm:$0xf0] }
 0x357   : > { %v3798_v19 = vadd.f32 %v3790_v28, %v3786_v2  ;;  %v7852_v28 = vor.u32 %v9185_v57, %v7849_v29  ;;  %v7913_v2 = vld [vmem:[%s13402_s11 + $0x2c0] sm:$0xf0]  ;;  %v7953_v15 = vld [vmem:[%s13402_s11 + $0x308] sm:$0xf0]  ;;  %v7824_v37 = vor.u32 %v9180_v50, %v7823_v14  ;;  %v9212_v38 = vld [vmem:[%s13402_s11 + $0x304] sm:$0xf0] }
 0x358   : > { %v3799_v20 = vadd.f32 %v3791_v22, %v3787_v13  ;;  %v7928_v22 = vor.u32 %v9207_v40, %v7927_v31  ;;  %v7817_v13 = vld [vmem:[%s13402_s11 + $0x200] sm:$0xf0]  ;;  %v9184_v40 = vld [vmem:[%s13402_s11 + $0x224] sm:$0xf0]  ;;  %v9174_v63 = vld [vmem:[%s13402_s11 + $0x1dc] sm:$0xf] }
 0x359   : > { %v3800_v48 = vmax.f32 %v3798_v19, 0.0  ;;  %v7895_v19 = vld [vmem:[%s13402_s11 + $0x290] sm:$0xf]  ;;  %v7769_v57 = vld [vmem:[%s13402_s11 + $0x1a0] sm:$0xf0]  ;;  %v7840_v58 = vor.u32 %v9184_v40, %v7839_v32 }
 0x35a   : > { %v3801_v34 = vmax.f32 %v3799_v20, 0.0  ;;  %v3758_v23 = vpop.f32.mrf.mxu3  ;;  %v7887_v20 = vld [vmem:[%s13402_s11 + $0x278] sm:$0xf]  ;;  %v7896_v24 = vor.u32 %v9199_v51, %v7895_v19  ;;  %v9170_v51 = vld [vmem:[%s13402_s11 + $0x1bc] sm:$0xf] }
 0x35b   : > { %v3802_v3 = vmax.f32 %v3796_v21, %v3800_v48  ;;  %v3784_v27 = vpop.f32.mrf.mxu2  ;;  %v7876_v21 = vor.u32 %v9190_v36, %v7873_v49  ;;  %v9196_v48 = vld [vmem:[%s13402_s11 + $0x284] sm:$0xf0]  ;;  %v9197_v23 = vld [vmem:[%s13402_s11 + $0x294] sm:$0xf]  ;;  %v7809_v36 = vld [vmem:[%s13402_s11 + $0x1e8] sm:$0xf0]  ;;  %v7952_v49 = vor.u32 %v9212_v38, %v7951_v33 }
 0x35c   : > { %v3803_v9 = vmax.f32 %v3797_v18, %v3801_v34  ;;  %v7916_v18 = vor.u32 %v9201_v55, %v7913_v2  ;;  %v7820_v34 = vor.u32 %v9177_v12, %v7817_v13  ;;  %v4205_v27 = vpack.c.b16 %v4153_v16, %v4153_v16  ;;  %v7937_v55 = vld [vmem:[%s13402_s11 + $0x2e8] sm:$0xf0]  ;;  %v7935_v12 = vld [vmem:[%s13402_s11 + $0x2d8] sm:$0xf]  ;;  %v9208_v16 = vld [vmem:[%s13402_s11 + $0x2e4] sm:$0xf0] }
 0x35d   : > { %3824 = vmatpush.msra.mxu0 %v3802_v3  ;;  %3868 = vmatpush.msra.mxu2 %v3802_v3  ;;  %v7801_v3 = vld [vmem:[%s13402_s11 + $0x1e0] sm:$0xf0]  ;;  %v7900_v60 = vor.u32 %v9197_v23, %v7897_v17  ;;  %v7936_v19 = vor.u32 %v9208_v16, %v7935_v12  ;;  %v7919_v23 = vld [vmem:[%s13402_s11 + $0x2b8] sm:$0xf]  ;;  %v9200_v35 = vld [vmem:[%s13402_s11 + $0x2a4] sm:$0xf0] }
 0x35e   : > { %3844 = vmatpush.msra.mxu1 %v3803_v9  ;;  %7711 = vmatmul.msk.f32.vlgmr.msra.gmra.mxu0 %vm3805_vm7, %v3804_v43  ;;  %v7804_v62 = vor.u32 %v9173_v53, %v7801_v3  ;;  %v9166_v3 = vld [vmem:[%s13402_s11 + $0x19c] sm:$0xf]  ;;  %v9161_v14 = vld [vmem:[%s13402_s11 + $0x164] sm:$0xf]  ;;  %v8141_v50 = vld [vmem:[%s13402_s11 + $0x170] sm:$0xf0] }
 0x35f   : > { %7713 = vmatmul.msk.f32.vlgmr.msra.gmra.mxu2 %vm3805_vm7, %v3849_v42  ;;  %3888 = vmatpush.msrb.mxu0 %v3803_v9  ;;  %v7860_v9 = vor.u32 %v9186_v26, %v7857_v54  ;;  %v7921_v26 = vld [vmem:[%s13402_s11 + $0x2c8] sm:$0xf0]  ;;  %v8125_v12 = vld [vmem:[%s13402_s11 + $0x150] sm:$0xf0] }
 0x360   : > { %7712 = vmatmul.msk.f32.vlgmr.msra.gmra.mxu1 %vm3805_vm7, %v3804_v43  ;;  %4298 = vmatpush.bf16.msrb.mxu2 %v7884_v47  ;;  %v7888_v43 = vor.u32 %v9196_v48, %v7887_v20  ;;  %v9182_v47 = vld [vmem:[%s13402_s11 + $0x21c] sm:$0xf]  ;;  %v7793_v20 = vld [vmem:[%s13402_s11 + $0x1c8] sm:$0xf0] }
 0x361   : > { %4288 = vmatpush.bf16.msrb.mxu1 %v4261_v6  ;;  %4314 = vmatpush.bf16.msra.mxu0 %v4264_v7  ;;  %v4267_v6 = vsel %vm4259_vm8, %v4205_v27, 0  ;;  %v7844_v46 = vor.u32 %v9182_v47, %v7841_v56  ;;  %v4154_v7 = vunpack.c.h.b16 %v7764_v41  ;;  %v7807_v41 = vld [vmem:[%s13402_s11 + $0x1d8] sm:$0xf]  ;;  %v7796_v48 = vor.u32 %v9170_v51, %v7793_v20  ;;  %v7777_v27 = vld [vmem:[%s13402_s11 + $0x1a8] sm:$0xf0] }
 0x362   : > { %4351 = vmatpush.bf16.msrb.mxu3 %v7876_v21  ;;  %v9202_v21 = vld [vmem:[%s13402_s11 + $0x2bc] sm:$0xf]  ;;  %v7775_v47 = vld [vmem:[%s13402_s11 + $0x198] sm:$0xf]  ;;  %v9168_v56 = vld [vmem:[%s13402_s11 + $0x1a4] sm:$0xf0] }
 0x363   : > { %v4206_v31 = vpack.c.b16 %v4154_v7, %v4154_v7  ;;  %v7924_v54 = vor.u32 %v9202_v21, %v7921_v26  ;;  %v9139_v51 = vld [vmem:[%s13402_s11 + $0xac] sm:$0xf0]  ;;  %v8123_v20 = vld [vmem:[%s13402_s11 + $0x140] sm:$0xf] }
 0x364   : > { %4299 = vmatpush.bf16.msrb.mxu2 %v7868_v25  ;;  %v7855_v25 = vld [vmem:[%s13402_s11 + $0x238] sm:$0xf]  ;;  %v9159_v21 = vld [vmem:[%s13402_s11 + $0x14c] sm:$0xf0] }
 0x365   : > { %4289 = vmatpush.bf16.msrb.mxu1 %v7944_v10  ;;  %4315 = vmatpush.bf16.msra.mxu0 %v7948_v4  ;;  %v9165_v10 = vld [vmem:[%s13402_s11 + $0x194] sm:$0xf]  ;;  %v7856_v29 = vor.u32 %v9188_v8, %v7855_v25  ;;  %v4270_v1 = vsel %vm4259_vm8, %v4206_v31, 0  ;;  %v7825_v4 = vld [vmem:[%s13402_s11 + $0x208] sm:$0xf0] }
 0x366   : > { %7714 = vmatmul.msk.f32.vlgmr.msrb.gmra.mxu0 %vm3805_vm7, %v3849_v42  ;;  %v9192_v42 = vld [vmem:[%s13402_s11 + $0x264] sm:$0xf0]  ;;  %4352 = vmatpush.bf16.msrb.mxu3 %v7860_v9  ;;  %v7772_v0 = vor.u32 %v9165_v10, %v7769_v57  ;;  %v7828_v5 = vor.u32 %v9178_v59, %v7825_v4  ;;  %v7905_v9 = vld [vmem:[%s13402_s11 + $0x2a8] sm:$0xf0]  ;;  %v9145_v57 = vld [vmem:[%s13402_s11 + $0xe4] sm:$0xf] }
 0x367   : > { %v7872_v45 = vor.u32 %v9192_v42, %v7871_v44  ;;  %v7780_v44 = vor.u32 %v9166_v3, %v7777_v27  ;;  %v9135_v3 = vld [vmem:[%s13402_s11 + $0x8c] sm:$0xf0]  ;;  %v8107_v27 = vld [vmem:[%s13402_s11 + $0x120] sm:$0xf] }
 0x368   : > { %4300 = vmatpush.bf16.msrb.mxu2 %v7852_v28  ;;  %v9210_v28 = vld [vmem:[%s13402_s11 + $0x2fc] sm:$0xf] }
 0x369   : > { %4290 = vmatpush.bf16.msrb.mxu1 %v7928_v22  ;;  %4316 = vmatpush.bf16.msra.mxu0 %v7932_v52  ;;  %v7956_v22 = vor.u32 %v9210_v28, %v7953_v15  ;;  %v7812_v52 = vor.u32 %v9174_v63, %v7809_v36  ;;  %v9141_v28 = vld [vmem:[%s13402_s11 + $0xc4] sm:$0xf]  ;;  %v8059_v63 = vld [vmem:[%s13402_s11 + $0xc0] sm:$0xf]  ;;  %v9143_v36 = vld [vmem:[%s13402_s11 + $0xcc] sm:$0xf0] }
 0x36a   : > { %4353 = vmatpush.bf16.msrb.mxu3 %v7844_v46 }
 0x36c   : > { %4301 = vmatpush.bf16.msrb.mxu2 %v7836_v61  ;;  %v9206_v61 = vld [vmem:[%s13402_s11 + $0x2dc] sm:$0xf] }
 0x36d   : > { %4291 = vmatpush.bf16.msrb.mxu1 %v7912_v11  ;;  %4317 = vmatpush.bf16.msra.mxu0 %v7916_v18  ;;  %v7940_v2 = vor.u32 %v9206_v61, %v7937_v55  ;;  %v9176_v11 = vld [vmem:[%s13402_s11 + $0x1e4] sm:$0xf0]  ;;  %v7791_v18 = vld [vmem:[%s13402_s11 + $0x1b8] sm:$0xf]  ;;  %v8144_v55 = vor.u32 %v9161_v14, %v8141_v50  ;;  %v9127_v50 = vld [vmem:[%s13402_s11 + $0x4c] sm:$0xf0] }
 0x36e   : > { %4354 = vmatpush.bf16.msrb.mxu3 %v7828_v5  ;;  %v7808_v13 = vor.u32 %v9176_v11, %v7807_v41  ;;  %v8061_v5 = vld [vmem:[%s13402_s11 + $0xd0] sm:$0xf0]  ;;  %v9157_v11 = vld [vmem:[%s13402_s11 + $0x144] sm:$0xf] }
 0x36f   : > { %v8064_v61 = vor.u32 %v9141_v28, %v8061_v5  ;;  %v8045_v41 = vld [vmem:[%s13402_s11 + $0xb0] sm:$0xf0]  ;;  %v8128_v26 = vor.u32 %v9157_v11, %v8125_v12  ;;  %v7995_v5 = vld [vmem:[%s13402_s11 + $0x40] sm:$0xf] }
 0x370   : > { %4302 = vmatpush.bf16.msrb.mxu2 %v7820_v34  ;;  %v9172_v34 = vld [vmem:[%s13402_s11 + $0x1c4] sm:$0xf0]  ;;  %v7979_v11 = vld [vmem:[%s13402_s11 + $0x20] sm:$0xf] }
 0x371   : > { %4292 = vmatpush.bf16.msrb.mxu1 %v7896_v24  ;;  %4318 = vmatpush.bf16.msra.mxu0 %v7900_v60  ;;  %v7792_v17 = vor.u32 %v9172_v34, %v7791_v18  ;;  %v9204_v24 = vld [vmem:[%s13402_s11 + $0x2c4] sm:$0xf0]  ;;  %v7903_v60 = vld [vmem:[%s13402_s11 + $0x298] sm:$0xf]  ;;  %v8029_v18 = vld [vmem:[%s13402_s11 + $0x90] sm:$0xf0] }
 0x372   : > { %4355 = vmatpush.bf16.msrb.mxu3 %v7812_v52  ;;  %v7920_v53 = vor.u32 %v9204_v24, %v7919_v23  ;;  %v7904_v30 = vor.u32 %v9200_v35, %v7903_v60  ;;  %v9163_v52 = vld [vmem:[%s13402_s11 + $0x16c] sm:$0xf0]  ;;  %v9153_v34 = vld [vmem:[%s13402_s11 + $0x124] sm:$0xf]  ;;  %v8109_v23 = vld [vmem:[%s13402_s11 + $0x130] sm:$0xf0]  ;;  %v8124_v24 = vor.u32 %v9159_v21, %v8123_v20 }
 0x373   : > { %v8093_v60 = vld [vmem:[%s13402_s11 + $0x110] sm:$0xf0]  ;;  %v9117_v21 = vld [vmem:[%s13402_s11 + $0x4] sm:$0xf] }
 0x374   : > { %4303 = vmatpush.bf16.msrb.mxu2 %v7804_v62  ;;  %v7776_v62 = vor.u32 %v9168_v56, %v7775_v47  ;;  %v8013_v47 = vld [vmem:[%s13402_s11 + $0x70] sm:$0xf0]  ;;  %v9149_v56 = vld [vmem:[%s13402_s11 + $0x104] sm:$0xf] }
 0x375   : > { %4324 = vmatpush.bf16.msra.mxu1 %v7888_v43  ;;  %4340 = vmatpush.bf16.msrb.mxu0 %v4267_v6  ;;  %v9198_v43 = vld [vmem:[%s13402_s11 + $0x29c] sm:$0xf] }
 0x376   : > { %4356 = vmatpush.bf16.msrb.mxu3 %v7796_v48  ;;  %v7908_v42 = vor.u32 %v9198_v43, %v7905_v9  ;;  %v9155_v43 = vld [vmem:[%s13402_s11 + $0x12c] sm:$0xf0]  ;;  %v8112_v9 = vor.u32 %v9153_v34, %v8109_v23 }
 0x377   : > { %v8108_v35 = vor.u32 %v9155_v43, %v8107_v27  ;;  %v9136_v27 = vld [vmem:[%s13402_s11 + $0x94] sm:$0xf0] }
 0x378   : > { %4304 = vmatpush.bf16.msrb.mxu2 %v7788_v39 }
 0x379   : > { %4325 = vmatpush.bf16.msra.mxu1 %v7872_v45  ;;  %4341 = vmatpush.bf16.msrb.mxu0 %v7952_v49  ;;  %v3945_v45 = vld [vmem:[%s13402_s11 + $0x180] sm:$0xff] }
 0x37a   : > { %4357 = vmatpush.bf16.msrb.mxu3 %v7780_v44  ;;  %v4523_v46 = vunpack.c.h.b16 %v3945_v45  ;;  %v4522_v7 = vunpack.c.l.b16 %v3945_v45  ;;  %v8139_v49 = vld [vmem:[%s13402_s11 + $0x160] sm:$0xf] }
 0x37b   : > { %v8140_v16 = vor.u32 %v9163_v52, %v8139_v49  ;;  %v8011_v45 = vld [vmem:[%s13402_s11 + $0x60] sm:$0xf]  ;;  %v7981_v49 = vld [vmem:[%s13402_s11 + $0x30] sm:$0xf0]  ;;  %v9138_v52 = vld [vmem:[%s13402_s11 + $0xac] sm:$0xf] }
 0x37c   : > { %4305 = vmatpush.bf16.msrb.mxu2 %v7772_v0  ;;  %v4575_v31 = vpack.c.b16 %v4523_v46, %v4523_v46  ;;  %v4574_v40 = vpack.c.b16 %v4522_v7, %v4522_v7  ;;  %v8091_v46 = vld [vmem:[%s13402_s11 + $0x100] sm:$0xf]  ;;  %v9151_v7 = vld [vmem:[%s13402_s11 + $0x10c] sm:$0xf0] }
 0x37d   : > { %4326 = vmatpush.bf16.msra.mxu1 %v7856_v29  ;;  %4342 = vmatpush.bf16.msrb.mxu0 %v7936_v19  ;;  %v8077_v29 = vld [vmem:[%s13402_s11 + $0xf0] sm:$0xf0]  ;;  %v8043_v19 = vld [vmem:[%s13402_s11 + $0xa0] sm:$0xf] }
 0x37e   : > { %v8080_v4 = vor.u32 %v9145_v57, %v8077_v29  ;;  %v4629_v38 = vsel %vm4259_vm8, %v4574_v40, 0  ;;  %v9148_v57 = vld [vmem:[%s13402_s11 + $0xf4] sm:$0xf0]  ;;  %v8092_v40 = vor.u32 %v9151_v7, %v8091_v46  ;;  %v8147_v7 = vld [vmem:[%s13402_s11 + $0x168] sm:$0xf] }
 0x37f   : > { %v9132_v46 = vld [vmem:[%s13402_s11 + $0x74] sm:$0xf0] }
 0x380   : > { %4366 = vmatpush.bf16.msra.mxu2 %v4270_v1  ;;  %v8075_v1 = vld [vmem:[%s13402_s11 + $0xe0] sm:$0xf] }
 0x381   : > { %4327 = vmatpush.bf16.msra.mxu1 %v7840_v58  ;;  %4343 = vmatpush.bf16.msrb.mxu0 %v7920_v53  ;;  %v9147_v58 = vld [vmem:[%s13402_s11 + $0xec] sm:$0xf0]  ;;  %v8027_v53 = vld [vmem:[%s13402_s11 + $0x80] sm:$0xf] }
 0x384   : > { %4367 = vmatpush.bf16.msra.mxu2 %v7956_v22  ;;  %v4632_v22 = vsel %vm4259_vm8, %v4575_v31, 0  ;;  %v9125_v31 = vld [vmem:[%s13402_s11 + $0x44] sm:$0xf] }
 0x385   : > { %4328 = vmatpush.bf16.msra.mxu1 %v7824_v37  ;;  %4344 = vmatpush.bf16.msrb.mxu0 %v7904_v30  ;;  %v8076_v37 = vor.u32 %v9147_v58, %v8075_v1  ;;  %v9146_v30 = vld [vmem:[%s13402_s11 + $0xec] sm:$0xf]  ;;  %v8069_v58 = vld [vmem:[%s13402_s11 + $0xd8] sm:$0xf0] }
 0x386   : > { %v9142_v1 = vld [vmem:[%s13402_s11 + $0xcc] sm:$0xf] }
 0x388   : > { %4368 = vmatpush.bf16.msra.mxu2 %v7940_v2  ;;  %v9137_v2 = vld [vmem:[%s13402_s11 + $0xa4] sm:$0xf] }
 0x389   : > { %4329 = vmatpush.bf16.msra.mxu1 %v7808_v13  ;;  %v8060_v13 = vor.u32 %v9143_v36, %v8059_v63  ;;  %v8048_v48 = vor.u32 %v9137_v2, %v8045_v41  ;;  %v8072_v63 = vor.u32 %v9142_v1, %v8069_v58  ;;  %v9121_v36 = vld [vmem:[%s13402_s11 + $0x24] sm:$0xf]  ;;  %v7996_v2 = vor.u32 %v9127_v50, %v7995_v5  ;;  %v9128_v1 = vld [vmem:[%s13402_s11 + $0x54] sm:$0xf0]  ;;  %v8117_v50 = vld [vmem:[%s13402_s11 + $0x138] sm:$0xf0] }
 0x38a   : > { %v7984_v12 = vor.u32 %v9121_v36, %v7981_v49  ;;  %v8205_v5 = vld [vmem:[%s13402_s11 + $0x4a0] sm:$0xff]  ;;  %v7987_v49 = vld [vmem:[%s13402_s11 + $0x28] sm:$0xf] }
 0x38c   : > { %4369 = vmatpush.bf16.msra.mxu2 %v7924_v54  ;;  %v9133_v54 = vld [vmem:[%s13402_s11 + $0x84] sm:$0xf] }
 0x38d   : > { %4330 = vmatpush.bf16.msra.mxu1 %v7792_v17  ;;  %v8044_v17 = vor.u32 %v9139_v51, %v8043_v19  ;;  %v8032_v44 = vor.u32 %v9133_v54, %v8029_v18  ;;  %v9140_v19 = vld [vmem:[%s13402_s11 + $0xb4] sm:$0xf0]  ;;  %v8037_v54 = vld [vmem:[%s13402_s11 + $0x98] sm:$0xf0] }
 0x390   : > { %4370 = vmatpush.bf16.msra.mxu2 %v7908_v42  ;;  %v9129_v42 = vld [vmem:[%s13402_s11 + $0x64] sm:$0xf] }
 0x391   : > { %4331 = vmatpush.bf16.msra.mxu1 %v7776_v62  ;;  %v8028_v62 = vor.u32 %v9135_v3, %v8027_v53  ;;  %v9119_v53 = vld [vmem:[%s13402_s11 + $0xc] sm:$0xf0]  ;;  %v8035_v3 = vld [vmem:[%s13402_s11 + $0x88] sm:$0xf] }
 0x3db   : > { %v3826_v6 = vpop.f32.mrf.mxu0 }
 0x3dd   : > { %v3846_v25 = vpop.f32.mrf.mxu1 }
 0x3e2   : > { %v3870_v8 = vpop.f32.mrf.mxu2 }
 0x3e3   : > { %v3893_v39 = vmax.f32 %v3826_v6, %v3870_v8  ;;  %v3890_v10 = vpop.f32.mrf.mxu0  ;;  %v8085_v6 = vld [vmem:[%s13402_s11 + $0xf8] sm:$0xf0]  ;;  %v8096_v8 = vor.u32 %v9149_v56, %v8093_v60  ;;  %v8036_v60 = vor.u32 %v9136_v27, %v8035_v3 }
 0x3e4   : > { %v3894_v32 = vmax.f32 %v3846_v25, %v3890_v10  ;;  %v8016_v25 = vor.u32 %v9129_v42, %v8013_v47  ;;  %v8083_v10 = vld [vmem:[%s13402_s11 + $0xe8] sm:$0xf]  ;;  %v8088_v29 = vor.u32 %v9146_v30, %v8085_v6  ;;  %v9162_v42 = vld [vmem:[%s13402_s11 + $0x16c] sm:$0xf]  ;;  %v8149_v47 = vld [vmem:[%s13402_s11 + $0x178] sm:$0xf0] }
 0x3e5   : > { %v12266_v0 = vpack.c.bf16 %v3893_v39, %v3893_v39  ;;  %v9131_v39 = vld [vmem:[%s13402_s11 + $0x6c] sm:$0xf0]  ;;  %v8084_v28 = vor.u32 %v9148_v57, %v8083_v10  ;;  %v8019_v6 = vld [vmem:[%s13402_s11 + $0x68] sm:$0xf]  ;;  %v8133_v10 = vld [vmem:[%s13402_s11 + $0x158] sm:$0xf0] }
 0x3e6   : > { %v12274_v59 = vpack.c.bf16 %v3894_v32, %v3894_v32  ;;  %v7997_v32 = vld [vmem:[%s13402_s11 + $0x50] sm:$0xf0]  ;;  %v9126_v57 = vld [vmem:[%s13402_s11 + $0x4c] sm:$0xf] }
 0x3e7   : > { %v12283_v15 = vshrl.u32 %v12266_v0, 16  ;;  %v8000_v14 = vor.u32 %v9125_v31, %v7997_v32  ;;  %v8020_v31 = vor.u32 %v9132_v46, %v8019_v6  ;;  %v9239_v46 = vld [vmem:[%s13402_s11 + $0x3ec] sm:$0xf0] }
 0x3e8   : > { %v12293_v33 = vshrl.u32 %v12274_v59, 16 }
 0x3e9   : > { %4280 = vmatmul.bf16.vlgmr.msra.gmra.mxu3 %v12283_v15  ;;  %4306 = vmatmul.bf16.vlgmr.msrb.gmra.mxu2 %v12283_v15 }
 0x3ea   : > { %4666 = vmatpush.bf16.msrb.mxu2 %v8080_v4  ;;  %4682 = vmatpush.bf16.msra.mxu3 %v4632_v22  ;;  %v8012_v4 = vor.u32 %v9131_v39, %v8011_v45  ;;  %v3946_v22 = vld [vmem:[%s13402_s11 + $0x188] sm:$0xff]  ;;  %v8152_v45 = vor.u32 %v9162_v42, %v8149_v47 }
 0x3eb   : > { %7957 = vmatmul.msk.bf16.vlgmr.msrb.gmra.mxu1 %vm4255_vm9, %v12293_v33  ;;  %7958 = vmatmul.msk.bf16.vlgmr.msra.gmra.mxu0 %vm4255_vm9, %v12293_v33  ;;  %v4524_v51 = vunpack.c.l.b16 %v3946_v22  ;;  %v9158_v39 = vld [vmem:[%s13402_s11 + $0x14c] sm:$0xf] }
 0x3ec   : > { %4640 = vmatpush.bf16.msra.mxu0 %v8076_v37  ;;  %4656 = vmatpush.bf16.msrb.mxu1 %v4629_v38  ;;  %v8067_v37 = vld [vmem:[%s13402_s11 + $0xc8] sm:$0xf]  ;;  %v9144_v38 = vld [vmem:[%s13402_s11 + $0xd4] sm:$0xf0]  ;;  %v8136_v58 = vor.u32 %v9158_v39, %v8133_v10  ;;  %v9233_v10 = vld [vmem:[%s13402_s11 + $0x3c4] sm:$0xf] }
 0x3ed   : > { %v8068_v41 = vor.u32 %v9144_v38, %v8067_v37  ;;  %v4576_v43 = vpack.c.b16 %v4524_v51, %v4524_v51  ;;  %v9122_v37 = vld [vmem:[%s13402_s11 + $0x2c] sm:$0xf]  ;;  %v7989_v38 = vld [vmem:[%s13402_s11 + $0x38] sm:$0xf0] }
 0x3ee   : > { %4667 = vmatpush.bf16.msrb.mxu2 %v8064_v61  ;;  %4683 = vmatpush.bf16.msra.mxu3 %v8144_v55  ;;  %v8053_v61 = vld [vmem:[%s13402_s11 + $0xb8] sm:$0xf0]  ;;  %v4525_v55 = vunpack.c.h.b16 %v3946_v22 }
 0x3ef   : > { %v8056_v20 = vor.u32 %v9138_v52, %v8053_v61  ;;  %v4635_v30 = vsel %vm4259_vm8, %v4576_v43, 0  ;;  %v4947_v52 = vunpack.c.h.b16 %v8205_v5  ;;  %v7973_v51 = vld [vmem:[%s13402_s11 + $0x18] sm:$0xf0]  ;;  %v8321_v43 = vld [vmem:[%s13402_s11 + $0x400] sm:$0xf] }
 0x3f0   : > { %4641 = vmatpush.bf16.msra.mxu0 %v8060_v13  ;;  %4657 = vmatpush.bf16.msrb.mxu1 %v8140_v16  ;;  %v9123_v13 = vld [vmem:[%s13402_s11 + $0x2c] sm:$0xf0]  ;;  %v8051_v16 = vld [vmem:[%s13402_s11 + $0xa8] sm:$0xf]  ;;  %v4577_v18 = vpack.c.b16 %v4525_v55, %v4525_v55  ;;  %v9124_v55 = vld [vmem:[%s13402_s11 + $0x34] sm:$0xf0] }
 0x3f1   : > { %v7980_v34 = vor.u32 %v9123_v13, %v7979_v11  ;;  %v8052_v23 = vor.u32 %v9140_v19, %v8051_v16  ;;  %v7992_v11 = vor.u32 %v9122_v37, %v7989_v38  ;;  %v9150_v13 = vld [vmem:[%s13402_s11 + $0x10c] sm:$0xf]  ;;  %v8101_v16 = vld [vmem:[%s13402_s11 + $0x118] sm:$0xf0]  ;;  %v4946_v19 = vunpack.c.l.b16 %v8205_v5  ;;  %v9249_v37 = vld [vmem:[%s13402_s11 + $0x444] sm:$0xf] }
 0x3f2   : > { %4668 = vmatpush.bf16.msrb.mxu2 %v8048_v48  ;;  %4684 = vmatpush.bf16.msra.mxu3 %v8128_v26  ;;  %v7965_v48 = vld [vmem:[%s13402_s11 + $0x10] sm:$0xf0]  ;;  %v9134_v26 = vld [vmem:[%s13402_s11 + $0x8c] sm:$0xf] }
 0x3f3   : > { %v4998_v27 = vpack.c.b16 %v4946_v19, %v4946_v19  ;;  %v8355_v38 = vld [vmem:[%s13402_s11 + $0x450] sm:$0xf0] }
 0x3f4   : > { %4642 = vmatpush.bf16.msra.mxu0 %v8044_v17  ;;  %4658 = vmatpush.bf16.msrb.mxu1 %v8124_v24  ;;  %v7963_v17 = vld [vmem:[%s13402_s11] sm:$0xf]  ;;  %v7968_v24 = vor.u32 %v9117_v21, %v7965_v48  ;;  %v8323_v21 = vld [vmem:[%s13402_s11 + $0x410] sm:$0xf0]  ;;  %v7988_v48 = vor.u32 %v9124_v55, %v7987_v49  ;;  %v9251_v55 = vld [vmem:[%s13402_s11 + $0x44c] sm:$0xf0] }
 0x3f5   : > { %v7964_v56 = vor.u32 %v9119_v53, %v7963_v17  ;;  %v8099_v17 = vld [vmem:[%s13402_s11 + $0x108] sm:$0xf]  ;;  %v5054_v6 = vsel %vm4259_vm8, %v4998_v27, 0  ;;  %v8273_v49 = vld [vmem:[%s13402_s11 + $0x3a0] sm:$0xf] }
 0x3f6   : > { %4669 = vmatpush.bf16.msrb.mxu2 %v8032_v44  ;;  %4685 = vmatpush.bf16.msra.mxu3 %v8112_v9  ;;  %v8040_v44 = vor.u32 %v9134_v26, %v8037_v54  ;;  %v4638_v9 = vsel %vm4259_vm8, %v4577_v18, 0  ;;  %v4999_v54 = vpack.c.b16 %v4947_v52, %v4947_v52  ;;  %v7971_v18 = vld [vmem:[%s13402_s11 + $0x8] sm:$0xf]  ;;  %v9231_v52 = vld [vmem:[%s13402_s11 + $0x3ac] sm:$0xf0] }
 0x3f7   : > { %v8274_v19 = vor.u32 %v9231_v52, %v8273_v49  ;;  %v8243_v27 = vld [vmem:[%s13402_s11 + $0x370] sm:$0xf0]  ;;  %v8281_v52 = vld [vmem:[%s13402_s11 + $0x3a8] sm:$0xf] }
 0x3f8   : > { %4643 = vmatpush.bf16.msra.mxu0 %v8028_v62  ;;  %4659 = vmatpush.bf16.msrb.mxu1 %v8108_v35  ;;  %v9130_v62 = vld [vmem:[%s13402_s11 + $0x6c] sm:$0xf]  ;;  %v8021_v35 = vld [vmem:[%s13402_s11 + $0x78] sm:$0xf0] }
 0x3f9   : > { %4358 = vmatmul.bf16.vlgmr.msrb.gmra.mxu3 %v12283_v15  ;;  %7960 = vmatmul.msk.bf16.vlgmr.msra.gmra.mxu2 %vm4255_vm9, %v12293_v33 }
 0x3fa   : > { %4670 = vmatpush.bf16.msrb.mxu2 %v8016_v25  ;;  %4686 = vmatpush.bf16.msra.mxu3 %v8096_v8  ;;  %v9164_v25 = vld [vmem:[%s13402_s11 + $0x174] sm:$0xf0]  ;;  %v8024_v8 = vor.u32 %v9130_v62, %v8021_v35  ;;  %v9257_v62 = vld [vmem:[%s13402_s11 + $0x484] sm:$0xf]  ;;  %v8387_v35 = vld [vmem:[%s13402_s11 + $0x490] sm:$0xf0] }
 0x3fb   : > { %4332 = vmatmul.bf16.vlgmr.msra.gmra.mxu1 %v12283_v15  ;;  %7959 = vmatmul.msk.bf16.vlgmr.msrb.gmra.mxu0 %vm4255_vm9, %v12293_v33  ;;  %v8148_v32 = vor.u32 %v9164_v25, %v8147_v7  ;;  %v8385_v7 = vld [vmem:[%s13402_s11 + $0x480] sm:$0xf]  ;;  %v9259_v25 = vld [vmem:[%s13402_s11 + $0x48c] sm:$0xf0]  ;;  %v8390_v39 = vor.u32 %v9257_v62, %v8387_v35  ;;  %v8206_v62 = vld [vmem:[%s13402_s11 + $0x4a8] sm:$0xff] }
 0x3fc   : > { %4660 = vmatpush.bf16.msrb.mxu1 %v8092_v40  ;;  %4644 = vmatpush.bf16.msra.mxu0 %v8012_v4  ;;  %v8003_v40 = vld [vmem:[%s13402_s11 + $0x48] sm:$0xf] }
 0x3fd   : > { %v8131_v4 = vld [vmem:[%s13402_s11 + $0x148] sm:$0xf] }
 0x3fe   : > { %4718 = vmatpush.bf16.msrb.mxu3 %v8088_v29  ;;  %4671 = vmatpush.bf16.msrb.mxu2 %v8000_v14  ;;  %v8005_v29 = vld [vmem:[%s13402_s11 + $0x58] sm:$0xf0]  ;;  %v9154_v14 = vld [vmem:[%s13402_s11 + $0x12c] sm:$0xf] }
 0x3ff   : > { %v8008_v22 = vor.u32 %v9126_v57, %v8005_v29  ;;  %v8120_v61 = vor.u32 %v9154_v14, %v8117_v50  ;;  %v8291_v57 = vld [vmem:[%s13402_s11 + $0x3d0] sm:$0xf0]  ;;  %v9253_v29 = vld [vmem:[%s13402_s11 + $0x464] sm:$0xf] }
 0x400   : > { %4692 = vmatpush.bf16.msra.mxu1 %v8084_v28  ;;  %4645 = vmatpush.bf16.msra.mxu0 %v7996_v2  ;;  %v9160_v28 = vld [vmem:[%s13402_s11 + $0x154] sm:$0xf0]  ;;  %v8115_v2 = vld [vmem:[%s13402_s11 + $0x128] sm:$0xf]  ;;  %v8294_v5 = vor.u32 %v9233_v10, %v8291_v57  ;;  %v9229_v14 = vld [vmem:[%s13402_s11 + $0x3a4] sm:$0xf]  ;;  %v4949_v10 = vunpack.c.h.b16 %v8206_v62 }
 0x401   : > { %v8132_v36 = vor.u32 %v9160_v28, %v8131_v4  ;;  %v8369_v4 = vld [vmem:[%s13402_s11 + $0x460] sm:$0xf]  ;;  %v9255_v28 = vld [vmem:[%s13402_s11 + $0x46c] sm:$0xf0]  ;;  %v8275_v50 = vld [vmem:[%s13402_s11 + $0x3b0] sm:$0xf0] }
 0x402   : > { %4719 = vmatpush.bf16.msrb.mxu3 %v8072_v63  ;;  %4672 = vmatpush.bf16.msrb.mxu2 %v7984_v12  ;;  %v8004_v63 = vor.u32 %v9128_v1, %v8003_v40  ;;  %v9118_v12 = vld [vmem:[%s13402_s11 + $0xc] sm:$0xf]  ;;  %v8386_v40 = vor.u32 %v9259_v25, %v8385_v7  ;;  %v8289_v1 = vld [vmem:[%s13402_s11 + $0x3c0] sm:$0xf]  ;;  %v9217_v7 = vld [vmem:[%s13402_s11 + $0x344] sm:$0xf] }
 0x403   : > { %v7976_v53 = vor.u32 %v9118_v12, %v7973_v51  ;;  %v8259_v12 = vld [vmem:[%s13402_s11 + $0x390] sm:$0xf0] }
 0x404   : > { %4693 = vmatpush.bf16.msra.mxu1 %v8068_v41  ;;  %4646 = vmatpush.bf16.msra.mxu0 %v7980_v34  ;;  %v9156_v41 = vld [vmem:[%s13402_s11 + $0x134] sm:$0xf0]  ;;  %v8104_v34 = vor.u32 %v9150_v13, %v8101_v16  ;;  %v9245_v13 = vld [vmem:[%s13402_s11 + $0x424] sm:$0xf]  ;;  %v8339_v16 = vld [vmem:[%s13402_s11 + $0x430] sm:$0xf0] }
 0x405   : > { %v8116_v26 = vor.u32 %v9156_v41, %v8115_v2  ;;  %v8278_v2 = vor.u32 %v9229_v14, %v8275_v50  ;;  %v8358_v41 = vor.u32 %v9249_v37, %v8355_v38  ;;  %v8227_v25 = vld [vmem:[%s13402_s11 + $0x350] sm:$0xf0]  ;;  %v9230_v14 = vld [vmem:[%s13402_s11 + $0x3ac] sm:$0xf]  ;;  %v8283_v50 = vld [vmem:[%s13402_s11 + $0x3b8] sm:$0xf0]  ;;  %v5001_v37 = vpack.c.b16 %v4949_v10, %v4949_v10 }
 0x406   : > { %4720 = vmatpush.bf16.msrb.mxu3 %v8056_v20  ;;  %4673 = vmatpush.bf16.msrb.mxu2 %v7968_v24  ;;  %v9241_v20 = vld [vmem:[%s13402_s11 + $0x404] sm:$0xf]  ;;  %v9152_v24 = vld [vmem:[%s13402_s11 + $0x114] sm:$0xf0]  ;;  %v8361_v10 = vld [vmem:[%s13402_s11 + $0x448] sm:$0xf] }
 0x407   : > { %v8326_v3 = vor.u32 %v9241_v20, %v8323_v21  ;;  %v8100_v47 = vor.u32 %v9152_v24, %v8099_v17  ;;  %v9242_v20 = vld [vmem:[%s13402_s11 + $0x40c] sm:$0xf]  ;;  %v8331_v21 = vld [vmem:[%s13402_s11 + $0x418] sm:$0xf0]  ;;  %v8329_v17 = vld [vmem:[%s13402_s11 + $0x408] sm:$0xf] }
 0x408   : > { %4694 = vmatpush.bf16.msra.mxu1 %v8052_v23  ;;  %4647 = vmatpush.bf16.msra.mxu0 %v7964_v56  ;;  %v9120_v23 = vld [vmem:[%s13402_s11 + $0x14] sm:$0xf0]  ;;  %v9237_v56 = vld [vmem:[%s13402_s11 + $0x3e4] sm:$0xf] }
 0x409   : > { %4674 = vmatmul.bf16.vlgmr.msrb.gmra.mxu2 %v12266_v0  ;;  %8154 = vmatmul.msk.bf16.vlgmr.msra.gmra.mxu3 %vm4255_vm9, %v12274_v59  ;;  %v7972_v42 = vor.u32 %v9120_v23, %v7971_v18  ;;  %v9247_v18 = vld [vmem:[%s13402_s11 + $0x42c] sm:$0xf0]  ;;  %v8342_v23 = vor.u32 %v9245_v13, %v8339_v16  ;;  %v9244_v24 = vld [vmem:[%s13402_s11 + $0x414] sm:$0xf0]  ;;  %v8267_v13 = vld [vmem:[%s13402_s11 + $0x398] sm:$0xf0] }
 0x40a   : > { %4721 = vmatpush.bf16.msrb.mxu3 %v8040_v44  ;;  %4734 = vmatpush.bf16.msra.mxu2 %v4638_v9  ;;  %v9243_v44 = vld [vmem:[%s13402_s11 + $0x40c] sm:$0xf0]  ;;  %v5057_v9 = vsel %vm4259_vm8, %v4999_v54, 0  ;;  %v8337_v54 = vld [vmem:[%s13402_s11 + $0x420] sm:$0xf] }
 0x40b   : > { %4648 = vmatmul.bf16.vlgmr.msra.gmra.mxu0 %v12266_v0  ;;  %8153 = vmatmul.msk.bf16.vlgmr.msrb.gmra.mxu1 %vm4255_vm9, %v12274_v59 }
 0x40c   : > { %4695 = vmatpush.bf16.msra.mxu1 %v8036_v60  ;;  %4708 = vmatpush.bf16.msrb.mxu0 %v4635_v30  ;;  %v8307_v60 = vld [vmem:[%s13402_s11 + $0x3f0] sm:$0xf0]  ;;  %v8322_v30 = vor.u32 %v9243_v44, %v8321_v43  ;;  %v8338_v44 = vor.u32 %v9247_v18, %v8337_v54  ;;  %v8393_v18 = vld [vmem:[%s13402_s11 + $0x488] sm:$0xf] }
 0x40e   : > { %4735 = vmatpush.bf16.msra.mxu2 %v8152_v45  ;;  %4722 = vmatpush.bf16.msrb.mxu3 %v8024_v8  ;;  %v8305_v45 = vld [vmem:[%s13402_s11 + $0x3e0] sm:$0xf]  ;;  %v8310_v8 = vor.u32 %v9237_v56, %v8307_v60  ;;  %v9223_v60 = vld [vmem:[%s13402_s11 + $0x36c] sm:$0xf0] }
 0x40f   : > { %v8241_v56 = vld [vmem:[%s13402_s11 + $0x360] sm:$0xf] }
 0x410   : > { %4696 = vmatpush.bf16.msra.mxu1 %v8020_v31  ;;  %4709 = vmatpush.bf16.msrb.mxu0 %v8148_v32  ;;  %v8371_v31 = vld [vmem:[%s13402_s11 + $0x470] sm:$0xf0]  ;;  %v8306_v32 = vor.u32 %v9239_v46, %v8305_v45  ;;  %v12742_v45 = vrot.slane %v12274_v59, 1 }
 0x412   : > { %4736 = vmatpush.bf16.msra.mxu2 %v8136_v58  ;;  %4723 = vmatpush.bf16.msrb.mxu3 %v8008_v22  ;;  %v9235_v58 = vld [vmem:[%s13402_s11 + $0x3cc] sm:$0xf0]  ;;  %v8374_v22 = vor.u32 %v9253_v29, %v8371_v31  ;;  %v8225_v29 = vld [vmem:[%s13402_s11 + $0x340] sm:$0xf] }
 0x413   : > { %v9219_v31 = vld [vmem:[%s13402_s11 + $0x34c] sm:$0xf0] }
 0x414   : > { %4697 = vmatpush.bf16.msra.mxu1 %v8004_v63  ;;  %4710 = vmatpush.bf16.msrb.mxu0 %v8132_v36  ;;  %v8290_v63 = vor.u32 %v9235_v58, %v8289_v1  ;;  %v8370_v36 = vor.u32 %v9255_v28, %v8369_v4  ;;  %v9236_v1 = vld [vmem:[%s13402_s11 + $0x3d4] sm:$0xf0]  ;;  %v9213_v4 = vld [vmem:[%s13402_s11 + $0x324] sm:$0xf]  ;;  %v8211_v28 = vld [vmem:[%s13402_s11 + $0x330] sm:$0xf0] }
 0x415   : > { %v8214_v49 = vor.u32 %v9213_v4, %v8211_v28  ;;  %v8347_v4 = vld [vmem:[%s13402_s11 + $0x438] sm:$0xf0]  ;;  %v9289_v28 = vld [vmem:[%s13402_s11 + $0x594] sm:$0xf] }
 0x416   : > { %4737 = vmatpush.bf16.msra.mxu2 %v8120_v61  ;;  %4724 = vmatpush.bf16.msrb.mxu3 %v7992_v11  ;;  %v8353_v61 = vld [vmem:[%s13402_s11 + $0x440] sm:$0xf]  ;;  %v9225_v11 = vld [vmem:[%s13402_s11 + $0x384] sm:$0xf] }
 0x417   : > { %v8354_v51 = vor.u32 %v9251_v55, %v8353_v61  ;;  %v9232_v61 = vld [vmem:[%s13402_s11 + $0x3b4] sm:$0xf0]  ;;  %v8286_v55 = vor.u32 %v9230_v14, %v8283_v50  ;;  %v8569_v14 = vld [vmem:[%s13402_s11 + $0x5a0] sm:$0xf0]  ;;  %v8217_v50 = vld [vmem:[%s13402_s11 + $0x328] sm:$0xf] }
 0x418   : > { %4698 = vmatpush.bf16.msra.mxu1 %v7988_v48  ;;  %4711 = vmatpush.bf16.msrb.mxu0 %v8116_v26  ;;  %v8257_v48 = vld [vmem:[%s13402_s11 + $0x380] sm:$0xf]  ;;  %v9227_v26 = vld [vmem:[%s13402_s11 + $0x38c] sm:$0xf0]  ;;  %v8282_v16 = vor.u32 %v9232_v61, %v8281_v52 }
 0x419   : > { %v8258_v43 = vor.u32 %v9227_v26, %v8257_v48  ;;  %v12816_v48 = vrot.slane %v12266_v0, 1  ;;  %v8567_v61 = vld [vmem:[%s13402_s11 + $0x590] sm:$0xf] }
 0x41a   : > { %4738 = vmatpush.bf16.msra.mxu2 %v8104_v34  ;;  %4725 = vmatpush.bf16.msrb.mxu3 %v7976_v53  ;;  %v8262_v34 = vor.u32 %v9225_v11, %v8259_v12  ;;  %v8334_v53 = vor.u32 %v9242_v20, %v8331_v21  ;;  %v9226_v12 = vld [vmem:[%s13402_s11 + $0x38c] sm:$0xf]  ;;  %v8265_v20 = vld [vmem:[%s13402_s11 + $0x388] sm:$0xf]  ;;  %v9228_v21 = vld [vmem:[%s13402_s11 + $0x394] sm:$0xf0] }
 0x41b   : > { %v8270_v54 = vor.u32 %v9226_v12, %v8267_v13  ;;  %v9305_v12 = vld [vmem:[%s13402_s11 + $0x614] sm:$0xf]  ;;  %v8633_v13 = vld [vmem:[%s13402_s11 + $0x620] sm:$0xf0] }
 0x41c   : > { %4699 = vmatpush.bf16.msra.mxu1 %v7972_v42  ;;  %4712 = vmatpush.bf16.msrb.mxu0 %v8100_v47  ;;  %v8315_v42 = vld [vmem:[%s13402_s11 + $0x3f8] sm:$0xf0]  ;;  %v8330_v47 = vor.u32 %v9244_v24, %v8329_v17  ;;  %v9222_v17 = vld [vmem:[%s13402_s11 + $0x36c] sm:$0xf]  ;;  %v8266_v24 = vor.u32 %v9228_v21, %v8265_v20  ;;  %v9285_v20 = vld [vmem:[%s13402_s11 + $0x574] sm:$0xf] }
 0x41d   : > { %4726 = vmatmul.bf16.vlgmr.msrb.gmra.mxu3 %v12266_v0  ;;  %8156 = vmatmul.msk.bf16.vlgmr.msra.gmra.mxu2 %vm4255_vm9, %v12274_v59  ;;  %v8553_v21 = vld [vmem:[%s13402_s11 + $0x580] sm:$0xf0] }
 0x41e   : > { %5091 = vmatpush.bf16.msrb.mxu2 %v8326_v3  ;;  %5107 = vmatpush.bf16.msra.mxu3 %v5057_v9  ;;  %v9221_v3 = vld [vmem:[%s13402_s11 + $0x364] sm:$0xf]  ;;  %v9238_v9 = vld [vmem:[%s13402_s11 + $0x3ec] sm:$0xf] }
 0x41f   : > { %4700 = vmatmul.bf16.vlgmr.msra.gmra.mxu1 %v12266_v0  ;;  %8155 = vmatmul.msk.bf16.vlgmr.msrb.gmra.mxu0 %vm4255_vm9, %v12274_v59  ;;  %v8246_v35 = vor.u32 %v9221_v3, %v8243_v27  ;;  %v8318_v46 = vor.u32 %v9238_v9, %v8315_v42  ;;  %v8299_v59 = vld [vmem:[%s13402_s11 + $0x3d8] sm:$0xf0]  ;;  %v8451_v9 = vld [vmem:[%s13402_s11 + $0x630] sm:$0xff] }
 0x420   : > { %5065 = vmatpush.bf16.msra.mxu0 %v8322_v30  ;;  %5081 = vmatpush.bf16.msrb.mxu1 %v5054_v6  ;;  %v8313_v30 = vld [vmem:[%s13402_s11 + $0x3e8] sm:$0xf]  ;;  %v9240_v6 = vld [vmem:[%s13402_s11 + $0x3f4] sm:$0xf0]  ;;  %v8251_v0 = vld [vmem:[%s13402_s11 + $0x378] sm:$0xf0] }
 0x421   : > { %v8314_v57 = vor.u32 %v9240_v6, %v8313_v30  ;;  %v8379_v3 = vld [vmem:[%s13402_s11 + $0x478] sm:$0xf0]  ;;  %v8254_v42 = vor.u32 %v9222_v17, %v8251_v0  ;;  %v9250_v6 = vld [vmem:[%s13402_s11 + $0x44c] sm:$0xf]  ;;  %v9301_v17 = vld [vmem:[%s13402_s11 + $0x5f4] sm:$0xf] }
 0x422   : > { %5092 = vmatpush.bf16.msrb.mxu2 %v8310_v8  ;;  %5108 = vmatpush.bf16.msra.mxu3 %v8390_v39  ;;  %v8242_v8 = vor.u32 %v9223_v60, %v8241_v56  ;;  %v9234_v39 = vld [vmem:[%s13402_s11 + $0x3cc] sm:$0xf]  ;;  %v9256_v56 = vld [vmem:[%s13402_s11 + $0x474] sm:$0xf0]  ;;  %v8617_v0 = vld [vmem:[%s13402_s11 + $0x600] sm:$0xf0] }
 0x423   : > { %v8302_v58 = vor.u32 %v9234_v39, %v8299_v59  ;;  %v9220_v39 = vld [vmem:[%s13402_s11 + $0x354] sm:$0xf0] }
 0x424   : > { %5066 = vmatpush.bf16.msra.mxu0 %v8306_v32  ;;  %5082 = vmatpush.bf16.msrb.mxu1 %v8386_v40  ;;  %v8230_v32 = vor.u32 %v9217_v7, %v8227_v25  ;;  %v8297_v40 = vld [vmem:[%s13402_s11 + $0x3c8] sm:$0xf]  ;;  %v5374_v7 = vunpack.c.h.b16 %v8451_v9 }
 0x425   : > { %v8298_v38 = vor.u32 %v9236_v1, %v8297_v40  ;;  %v8219_v40 = vld [vmem:[%s13402_s11 + $0x338] sm:$0xf0] }
 0x426   : > { %5093 = vmatpush.bf16.msrb.mxu2 %v8294_v5  ;;  %5109 = vmatpush.bf16.msra.mxu3 %v8374_v22  ;;  %v4948_v5 = vunpack.c.l.b16 %v8206_v62  ;;  %v8226_v22 = vor.u32 %v9219_v31, %v8225_v29  ;;  %v9218_v62 = vld [vmem:[%s13402_s11 + $0x34c] sm:$0xf]  ;;  %v5373_v29 = vunpack.c.l.b16 %v8451_v9  ;;  %v8535_v9 = vld [vmem:[%s13402_s11 + $0x550] sm:$0xf] }
 0x428   : > { %5067 = vmatpush.bf16.msra.mxu0 %v8290_v63  ;;  %5083 = vmatpush.bf16.msrb.mxu1 %v8370_v36  ;;  %v8209_v63 = vld [vmem:[%s13402_s11 + $0x320] sm:$0xf]  ;;  %v9215_v36 = vld [vmem:[%s13402_s11 + $0x32c] sm:$0xf0] }
 0x429   : > { %v8210_v11 = vor.u32 %v9215_v36, %v8209_v63  ;;  %v8345_v63 = vld [vmem:[%s13402_s11 + $0x428] sm:$0xf]  ;;  %v9248_v36 = vld [vmem:[%s13402_s11 + $0x434] sm:$0xf0] }
 0x42a   : > { %5094 = vmatpush.bf16.msrb.mxu2 %v8278_v2  ;;  %5110 = vmatpush.bf16.msra.mxu3 %v8358_v41  ;;  %v5000_v2 = vpack.c.b16 %v4948_v5, %v4948_v5  ;;  %v5063_v41 = vsel %vm4259_vm8, %v5001_v37, 0  ;;  %v5426_v5 = vpack.c.b16 %v5374_v7, %v5374_v7  ;;  %v9216_v37 = vld [vmem:[%s13402_s11 + $0x334] sm:$0xf0]  ;;  %v8519_v7 = vld [vmem:[%s13402_s11 + $0x530] sm:$0xf] }
 0x42c   : > { %5068 = vmatpush.bf16.msra.mxu0 %v8274_v19  ;;  %5084 = vmatpush.bf16.msrb.mxu1 %v8354_v51  ;;  %v9258_v19 = vld [vmem:[%s13402_s11 + $0x48c] sm:$0xf]  ;;  %v8395_v51 = vld [vmem:[%s13402_s11 + $0x498] sm:$0xf0]  ;;  %v5060_v26 = vsel %vm4259_vm8, %v5000_v2, 0  ;;  %v8572_v2 = vor.u32 %v9289_v28, %v8569_v14 }
 0x42d   : > { %v8503_v28 = vld [vmem:[%s13402_s11 + $0x510] sm:$0xf] }
 0x42e   : > { %5095 = vmatpush.bf16.msrb.mxu2 %v8262_v34  ;;  %5111 = vmatpush.bf16.msra.mxu3 %v8342_v23  ;;  %v9260_v34 = vld [vmem:[%s13402_s11 + $0x494] sm:$0xf0]  ;;  %v8398_v23 = vor.u32 %v9258_v19, %v8395_v51  ;;  %v8583_v14 = vld [vmem:[%s13402_s11 + $0x5b0] sm:$0xf] }
 0x42f   : > { %v8394_v27 = vor.u32 %v9260_v34, %v8393_v18  ;;  %v9287_v18 = vld [vmem:[%s13402_s11 + $0x57c] sm:$0xf0]  ;;  %v8631_v34 = vld [vmem:[%s13402_s11 + $0x610] sm:$0xf] }
 0x430   : > { %5069 = vmatpush.bf16.msra.mxu0 %v8258_v43  ;;  %5085 = vmatpush.bf16.msrb.mxu1 %v8338_v44  ;;  %v8249_v43 = vld [vmem:[%s13402_s11 + $0x368] sm:$0xf]  ;;  %v9224_v44 = vld [vmem:[%s13402_s11 + $0x374] sm:$0xf0] }
 0x431   : > { %8400 = vmatmul.msk.bf16.vlgmr.msra.gmra.mxu3 %vm4255_vm9, %v12742_v45  ;;  %v8250_v30 = vor.u32 %v9224_v44, %v8249_v43  ;;  %v8620_v44 = vor.u32 %v9301_v17, %v8617_v0  ;;  %v9267_v17 = vld [vmem:[%s13402_s11 + $0x4dc] sm:$0xf0] }
 0x432   : > { %5143 = vmatpush.bf16.msrb.mxu3 %v8334_v53  ;;  %5096 = vmatpush.bf16.msrb.mxu2 %v8246_v35  ;;  %v9254_v53 = vld [vmem:[%s13402_s11 + $0x46c] sm:$0xf]  ;;  %v8235_v35 = vld [vmem:[%s13402_s11 + $0x358] sm:$0xf0] }
 0x433   : > { %8399 = vmatmul.msk.bf16.vlgmr.msrb.gmra.mxu1 %vm4255_vm9, %v12742_v45  ;;  %v8382_v60 = vor.u32 %v9254_v53, %v8379_v3  ;;  %v8238_v59 = vor.u32 %v9218_v62, %v8235_v35  ;;  %v9281_v3 = vld [vmem:[%s13402_s11 + $0x554] sm:$0xf]  ;;  %v8601_v62 = vld [vmem:[%s13402_s11 + $0x5e0] sm:$0xf0] }
 0x434   : > { %5117 = vmatpush.bf16.msra.mxu1 %v8330_v47  ;;  %5070 = vmatpush.bf16.msra.mxu0 %v8242_v8  ;;  %v8377_v47 = vld [vmem:[%s13402_s11 + $0x468] sm:$0xf] }
 0x435   : > { %v8378_v25 = vor.u32 %v9256_v56, %v8377_v47  ;;  %v8233_v8 = vld [vmem:[%s13402_s11 + $0x348] sm:$0xf]  ;;  %v8615_v47 = vld [vmem:[%s13402_s11 + $0x5f0] sm:$0xf]  ;;  %v9303_v56 = vld [vmem:[%s13402_s11 + $0x5fc] sm:$0xf0] }
 0x436   : > { %5144 = vmatpush.bf16.msrb.mxu3 %v8318_v46  ;;  %5097 = vmatpush.bf16.msrb.mxu2 %v8230_v32  ;;  %v8363_v46 = vld [vmem:[%s13402_s11 + $0x458] sm:$0xf0]  ;;  %v9214_v32 = vld [vmem:[%s13402_s11 + $0x32c] sm:$0xf]  ;;  %v8234_v1 = vor.u32 %v9220_v39, %v8233_v8  ;;  %v8599_v8 = vld [vmem:[%s13402_s11 + $0x5d0] sm:$0xf] }
 0x437   : > { %v8366_v31 = vor.u32 %v9250_v6, %v8363_v46  ;;  %v8616_v6 = vor.u32 %v9303_v56, %v8615_v47  ;;  %v9299_v39 = vld [vmem:[%s13402_s11 + $0x5dc] sm:$0xf0]  ;;  %v9261_v56 = vld [vmem:[%s13402_s11 + $0x4b4] sm:$0xf] }
 0x438   : > { %5118 = vmatpush.bf16.msra.mxu1 %v8314_v57  ;;  %5071 = vmatpush.bf16.msra.mxu0 %v8226_v22  ;;  %v9252_v57 = vld [vmem:[%s13402_s11 + $0x454] sm:$0xf0] }
 0x439   : > { %v8362_v22 = vor.u32 %v9252_v57, %v8361_v10  ;;  %v8585_v10 = vld [vmem:[%s13402_s11 + $0x5c0] sm:$0xf0] }
 0x43a   : > { %5145 = vmatpush.bf16.msrb.mxu3 %v8302_v58  ;;  %5098 = vmatpush.bf16.msrb.mxu2 %v8214_v49  ;;  %v9246_v58 = vld [vmem:[%s13402_s11 + $0x42c] sm:$0xf]  ;;  %v5425_v49 = vpack.c.b16 %v5373_v29, %v5373_v29  ;;  %v9290_v29 = vld [vmem:[%s13402_s11 + $0x59c] sm:$0xf] }
 0x43b   : > { %v8350_v52 = vor.u32 %v9246_v58, %v8347_v4  ;;  %v8600_v58 = vor.u32 %v9299_v39, %v8599_v8  ;;  %v9274_v39 = vld [vmem:[%s13402_s11 + $0x51c] sm:$0xf] }
 0x43c   : > { %5119 = vmatpush.bf16.msra.mxu1 %v8298_v38  ;;  %5072 = vmatpush.bf16.msra.mxu0 %v8210_v11  ;;  %v8222_v38 = vor.u32 %v9214_v32, %v8219_v40  ;;  %v8218_v11 = vor.u32 %v9216_v37, %v8217_v50  ;;  %v5481_v51 = vsel %vm4259_vm8, %v5425_v49, 0  ;;  %v9273_v40 = vld [vmem:[%s13402_s11 + $0x514] sm:$0xf]  ;;  %v9295_v50 = vld [vmem:[%s13402_s11 + $0x5bc] sm:$0xf0] }
 0x43d   : > { %5099 = vmatmul.bf16.vlgmr.msrb.gmra.mxu2 %v12816_v48  ;;  %v8575_v37 = vld [vmem:[%s13402_s11 + $0x598] sm:$0xf]  ;;  %v8561_v49 = vld [vmem:[%s13402_s11 + $0x588] sm:$0xf0] }
 0x43e   : > { %5146 = vmatpush.bf16.msrb.mxu3 %v8286_v55  ;;  %5159 = vmatpush.bf16.msra.mxu2 %v5063_v41  ;;  %v9291_v55 = vld [vmem:[%s13402_s11 + $0x59c] sm:$0xf0]  ;;  %v5484_v41 = vsel %vm4259_vm8, %v5426_v5, 0 }
 0x43f   : > { %5073 = vmatmul.bf16.vlgmr.msra.gmra.mxu0 %v12816_v48  ;;  %v8568_v19 = vor.u32 %v9291_v55, %v8567_v61  ;;  %v9275_v5 = vld [vmem:[%s13402_s11 + $0x51c] sm:$0xf0]  ;;  %v9269_v61 = vld [vmem:[%s13402_s11 + $0x4f4] sm:$0xf]  ;;  %v8489_v55 = vld [vmem:[%s13402_s11 + $0x500] sm:$0xf0] }
 0x440   : > { %5120 = vmatpush.bf16.msra.mxu1 %v8282_v16  ;;  %5133 = vmatpush.bf16.msrb.mxu0 %v5060_v26  ;;  %v8346_v16 = vor.u32 %v9248_v36, %v8345_v63  ;;  %v8636_v26 = vor.u32 %v9305_v12, %v8633_v13  ;;  %v9292_v63 = vld [vmem:[%s13402_s11 + $0x5a4] sm:$0xf0]  ;;  %v9286_v36 = vld [vmem:[%s13402_s11 + $0x57c] sm:$0xf]  ;;  %v13049_v12 = vrot.slane %v12293_v33, 1 }
 0x441   : > { %v8576_v13 = vor.u32 %v9292_v63, %v8575_v37  ;;  %v9282_v33 = vld [vmem:[%s13402_s11 + $0x55c] sm:$0xf] }
 0x442   : > { %5147 = vmatpush.bf16.msrb.mxu3 %v8270_v54  ;;  %5160 = vmatpush.bf16.msra.mxu2 %v8398_v23  ;;  %v8551_v54 = vld [vmem:[%s13402_s11 + $0x570] sm:$0xf]  ;;  %v9307_v23 = vld [vmem:[%s13402_s11 + $0x61c] sm:$0xf0] }
 0x443   : > { %v8552_v53 = vor.u32 %v9287_v18, %v8551_v54  ;;  %v8632_v43 = vor.u32 %v9307_v23, %v8631_v34  ;;  %v9265_v18 = vld [vmem:[%s13402_s11 + $0x4d4] sm:$0xf]  ;;  %v8473_v34 = vld [vmem:[%s13402_s11 + $0x4e0] sm:$0xf0]  ;;  %v8471_v23 = vld [vmem:[%s13402_s11 + $0x4d0] sm:$0xf] }
 0x444   : > { %5121 = vmatpush.bf16.msra.mxu1 %v8266_v24  ;;  %5134 = vmatpush.bf16.msrb.mxu0 %v8394_v27  ;;  %v8556_v24 = vor.u32 %v9285_v20, %v8553_v21  ;;  %v8537_v27 = vld [vmem:[%s13402_s11 + $0x560] sm:$0xf0]  ;;  %v8492_v20 = vor.u32 %v9269_v61, %v8489_v55  ;;  %v9288_v21 = vld [vmem:[%s13402_s11 + $0x584] sm:$0xf0]  ;;  %v8472_v47 = vor.u32 %v9267_v17, %v8471_v23 }
 0x445   : > { %v8540_v35 = vor.u32 %v9281_v3, %v8537_v27  ;;  %v8543_v3 = vld [vmem:[%s13402_s11 + $0x558] sm:$0xf]  ;;  %v9304_v61 = vld [vmem:[%s13402_s11 + $0x604] sm:$0xf0] }
 0x446   : > { %5148 = vmatpush.bf16.msrb.mxu3 %v8254_v42  ;;  %5161 = vmatpush.bf16.msra.mxu2 %v8382_v60  ;;  %v9283_v42 = vld [vmem:[%s13402_s11 + $0x55c] sm:$0xf0]  ;;  %v9297_v60 = vld [vmem:[%s13402_s11 + $0x5d4] sm:$0xf]  ;;  %v9300_v23 = vld [vmem:[%s13402_s11 + $0x5e4] sm:$0xf0] }
 0x447   : > { %v8604_v46 = vor.u32 %v9297_v60, %v8601_v62  ;;  %v8457_v60 = vld [vmem:[%s13402_s11 + $0x4c0] sm:$0xf0] }
 0x448   : > { %5122 = vmatpush.bf16.msra.mxu1 %v8250_v30  ;;  %5135 = vmatpush.bf16.msrb.mxu0 %v8378_v25  ;;  %v8536_v30 = vor.u32 %v9283_v42, %v8535_v9  ;;  %v9279_v25 = vld [vmem:[%s13402_s11 + $0x53c] sm:$0xf0]  ;;  %v9278_v9 = vld [vmem:[%s13402_s11 + $0x53c] sm:$0xf]  ;;  %v8529_v42 = vld [vmem:[%s13402_s11 + $0x548] sm:$0xf0] }
 0x449   : > { %v8520_v32 = vor.u32 %v9279_v25, %v8519_v7  ;;  %v8527_v7 = vld [vmem:[%s13402_s11 + $0x538] sm:$0xf]  ;;  %v9280_v25 = vld [vmem:[%s13402_s11 + $0x544] sm:$0xf0] }
 0x44a   : > { %5149 = vmatpush.bf16.msrb.mxu3 %v8238_v59  ;;  %5162 = vmatpush.bf16.msra.mxu2 %v8366_v31  ;;  %v9293_v59 = vld [vmem:[%s13402_s11 + $0x5b4] sm:$0xf]  ;;  %v8577_v31 = vld [vmem:[%s13402_s11 + $0x5a8] sm:$0xf0] }
 0x44b   : > { %v8588_v4 = vor.u32 %v9293_v59, %v8585_v10  ;;  %v8513_v59 = vld [vmem:[%s13402_s11 + $0x528] sm:$0xf0] }
 0x44c   : > { %5123 = vmatpush.bf16.msra.mxu1 %v8234_v1  ;;  %5136 = vmatpush.bf16.msrb.mxu0 %v8362_v22  ;;  %v8505_v1 = vld [vmem:[%s13402_s11 + $0x520] sm:$0xf0]  ;;  %v8580_v22 = vor.u32 %v9290_v29, %v8577_v31  ;;  %v8641_v29 = vld [vmem:[%s13402_s11 + $0x628] sm:$0xf0]  ;;  %v8528_v31 = vor.u32 %v9280_v25, %v8527_v7 }
 0x44e   : > { %5150 = vmatpush.bf16.msrb.mxu3 %v8222_v38  ;;  %5163 = vmatpush.bf16.msra.mxu2 %v8350_v52  ;;  %v8508_v38 = vor.u32 %v9273_v40, %v8505_v1  ;;  %v8504_v52 = vor.u32 %v9275_v5, %v8503_v28  ;;  %v8639_v40 = vld [vmem:[%s13402_s11 + $0x618] sm:$0xf]  ;;  %v9308_v1 = vld [vmem:[%s13402_s11 + $0x624] sm:$0xf0]  ;;  %v13139_v5 = vrot.slane %v12283_v15, 1 }
 0x44f   : > { %v9276_v28 = vld [vmem:[%s13402_s11 + $0x524] sm:$0xf0]  ;;  %v8640_v63 = vor.u32 %v9308_v1, %v8639_v40  ;;  %v8625_v15 = vld [vmem:[%s13402_s11 + $0x608] sm:$0xf0] }
 0x450   : > { %5124 = vmatpush.bf16.msra.mxu1 %v8218_v11  ;;  %5137 = vmatpush.bf16.msrb.mxu0 %v8346_v16  ;;  %v9271_v11 = vld [vmem:[%s13402_s11 + $0x4fc] sm:$0xf0]  ;;  %v8564_v16 = vor.u32 %v9286_v36, %v8561_v49  ;;  %v9302_v36 = vld [vmem:[%s13402_s11 + $0x5fc] sm:$0xf] }
 0x451   : > { %5151 = vmatmul.bf16.vlgmr.msrb.gmra.mxu3 %v12816_v48  ;;  %8402 = vmatmul.msk.bf16.vlgmr.msra.gmra.mxu2 %vm4255_vm9, %v12742_v45 }
 0x452   : > { %5534 = vmatpush.bf16.msra.mxu3 %v5484_v41  ;;  %5518 = vmatpush.bf16.msrb.mxu2 %v8572_v2  ;;  %v8584_v2 = vor.u32 %v9295_v50, %v8583_v14  ;;  %v8487_v41 = vld [vmem:[%s13402_s11 + $0x4f0] sm:$0xf]  ;;  %v9270_v14 = vld [vmem:[%s13402_s11 + $0x4fc] sm:$0xf]  ;;  %v8497_v50 = vld [vmem:[%s13402_s11 + $0x508] sm:$0xf0] }
 0x453   : > { %5125 = vmatmul.bf16.vlgmr.msra.gmra.mxu1 %v12816_v48  ;;  %8401 = vmatmul.msk.bf16.vlgmr.msrb.gmra.mxu0 %vm4255_vm9, %v12742_v45  ;;  %v9277_v45 = vld [vmem:[%s13402_s11 + $0x534] sm:$0xf]  ;;  %v8521_v48 = vld [vmem:[%s13402_s11 + $0x540] sm:$0xf0]  ;;  %v8488_v54 = vor.u32 %v9271_v11, %v8487_v41  ;;  %v8500_v55 = vor.u32 %v9270_v14, %v8497_v50  ;;  %v9272_v41 = vld [vmem:[%s13402_s11 + $0x504] sm:$0xf0]  ;;  %v8628_v11 = vor.u32 %v9302_v36, %v8625_v15 }
 0x454   : > { %5492 = vmatpush.bf16.msra.mxu0 %v8568_v19  ;;  %5508 = vmatpush.bf16.msrb.mxu1 %v5481_v51  ;;  %v8524_v57 = vor.u32 %v9277_v45, %v8521_v48  ;;  %v8559_v19 = vld [vmem:[%s13402_s11 + $0x578] sm:$0xf]  ;;  %v8532_v48 = vor.u32 %v9278_v9, %v8529_v42  ;;  %v9294_v42 = vld [vmem:[%s13402_s11 + $0x5bc] sm:$0xf] }
 0x455   : > { %v8452_v51 = vld [vmem:[%s13402_s11 + $0x638] sm:$0xff] }
 0x456   : > { %5535 = vmatpush.bf16.msra.mxu3 %v8636_v26  ;;  %5519 = vmatpush.bf16.msrb.mxu2 %v8556_v24  ;;  %v8545_v26 = vld [vmem:[%s13402_s11 + $0x568] sm:$0xf0]  ;;  %v5376_v0 = vunpack.c.h.b16 %v8452_v51  ;;  %v8560_v24 = vor.u32 %v9288_v21, %v8559_v19  ;;  %v5375_v27 = vunpack.c.l.b16 %v8452_v51  ;;  %v9298_v21 = vld [vmem:[%s13402_s11 + $0x5dc] sm:$0xf] }
 0x458   : > { %5493 = vmatpush.bf16.msra.mxu0 %v8552_v53  ;;  %5509 = vmatpush.bf16.msrb.mxu1 %v8632_v43  ;;  %v8548_v53 = vor.u32 %v9282_v33, %v8545_v26  ;;  %v8476_v43 = vor.u32 %v9265_v18, %v8473_v34  ;;  %v5428_v62 = vpack.c.b16 %v5376_v0, %v5376_v0  ;;  %v8609_v33 = vld [vmem:[%s13402_s11 + $0x5e8] sm:$0xf0]  ;;  %v8607_v34 = vld [vmem:[%s13402_s11 + $0x5d8] sm:$0xf] }
 0x459   : > { %v8479_v0 = vld [vmem:[%s13402_s11 + $0x4d8] sm:$0xf]  ;;  %v8608_v9 = vor.u32 %v9300_v23, %v8607_v34 }
 0x45a   : > { %5536 = vmatpush.bf16.msra.mxu3 %v8620_v44  ;;  %5520 = vmatpush.bf16.msrb.mxu2 %v8540_v35  ;;  %v9284_v44 = vld [vmem:[%s13402_s11 + $0x564] sm:$0xf0]  ;;  %v8455_v35 = vld [vmem:[%s13402_s11 + $0x4b0] sm:$0xf]  ;;  %v5490_v10 = vsel %vm4259_vm8, %v5428_v62, 0 }
 0x45b   : > { %v8544_v45 = vor.u32 %v9284_v44, %v8543_v3  ;;  %v9262_v3 = vld [vmem:[%s13402_s11 + $0x4bc] sm:$0xf]  ;;  %v9296_v62 = vld [vmem:[%s13402_s11 + $0x5c4] sm:$0xf0] }
 0x45c   : > { %5494 = vmatpush.bf16.msra.mxu0 %v8536_v30  ;;  %5510 = vmatpush.bf16.msrb.mxu1 %v8616_v6  ;;  %v9263_v30 = vld [vmem:[%s13402_s11 + $0x4bc] sm:$0xf0]  ;;  %v5427_v6 = vpack.c.b16 %v5375_v27, %v5375_v27  ;;  %v8465_v27 = vld [vmem:[%s13402_s11 + $0x4c8] sm:$0xf0] }
 0x45d   : > { %v8456_v8 = vor.u32 %v9263_v30, %v8455_v35  ;;  %v8468_v35 = vor.u32 %v9262_v3, %v8465_v27  ;;  %v8463_v30 = vld [vmem:[%s13402_s11 + $0x4b8] sm:$0xf]  ;;  %v9322_v3 = vld [vmem:[%s13404_s13 + $0x68] sm:$0xff] }
 0x45e   : > { %5537 = vmatpush.bf16.msra.mxu3 %v8604_v46  ;;  %5521 = vmatpush.bf16.msrb.mxu2 %v8524_v57  ;;  %v8460_v46 = vor.u32 %v9261_v56, %v8457_v60  ;;  %v9306_v57 = vld [vmem:[%s13402_s11 + $0x61c] sm:$0xf]  ;;  %v8591_v60 = vld [vmem:[%s13402_s11 + $0x5b8] sm:$0xf] }
 0x45f   : > { %v8592_v7 = vor.u32 %v9296_v62, %v8591_v60  ;;  %v9311_v60 = vld [vmem:[%s13404_s13 + $0x10] sm:$0xff]  ;;  %v9320_v62 = vld [vmem:[%s13404_s13 + $0x58] sm:$0xff] }
 0x460   : > { %5495 = vmatpush.bf16.msra.mxu0 %v8520_v32  ;;  %5511 = vmatpush.bf16.msrb.mxu1 %v8600_v58  ;;  %v5487_v32 = vsel %vm4259_vm8, %v5427_v6, 0  ;;  %v8516_v58 = vor.u32 %v9274_v39, %v8513_v59 }
 0x462   : > { %5538 = vmatpush.bf16.msra.mxu3 %v8588_v4  ;;  %5522 = vmatpush.bf16.msrb.mxu2 %v8508_v38  ;;  %v8511_v4 = vld [vmem:[%s13402_s11 + $0x518] sm:$0xf] }
 0x463   : > { %v8512_v49 = vor.u32 %v9276_v28, %v8511_v4 }
 0x464   : > { %5496 = vmatpush.bf16.msra.mxu0 %v8504_v52  ;;  %5512 = vmatpush.bf16.msrb.mxu1 %v8584_v2  ;;  %v8623_v52 = vld [vmem:[%s13402_s11 + $0x5f8] sm:$0xf] }
 0x465   : > { %8646 = vmatmul.msk.bf16.vlgmr.msra.gmra.mxu3 %vm4255_vm9, %v13049_v12  ;;  %v8495_v2 = vld [vmem:[%s13402_s11 + $0x4f8] sm:$0xf] }
 0x466   : > { %5570 = vmatpush.bf16.msrb.mxu3 %v8580_v22  ;;  %5523 = vmatpush.bf16.msrb.mxu2 %v8492_v20  ;;  %v8644_v22 = vor.u32 %v9306_v57, %v8641_v29  ;;  %v8624_v20 = vor.u32 %v9304_v61, %v8623_v52  ;;  %v8496_v18 = vor.u32 %v9272_v41, %v8495_v2 }
 0x467   : > { %8645 = vmatmul.msk.bf16.vlgmr.msrb.gmra.mxu1 %vm4255_vm9, %v13049_v12 }
 0x468   : > { %5544 = vmatpush.bf16.msra.mxu1 %v8576_v13  ;;  %5497 = vmatpush.bf16.msra.mxu0 %v8488_v54  ;;  %v4294_v37 = vpop.f32.mrf.mxu1  ;;  %v4320_v38 = vpop.f32.mrf.mxu0  ;;  %v9266_v13 = vld [vmem:[%s13402_s11 + $0x4dc] sm:$0xf] }
 0x46a   : > { %5571 = vmatpush.bf16.msrb.mxu3 %v8564_v16  ;;  %5524 = vmatpush.bf16.msrb.mxu2 %v8476_v43  ;;  %v8481_v16 = vld [vmem:[%s13402_s11 + $0x4e8] sm:$0xf0] }
 0x46b   : > { %v8484_v17 = vor.u32 %v9266_v13, %v8481_v16 }
 0x46c   : > { %5545 = vmatpush.bf16.msra.mxu1 %v8560_v24  ;;  %5498 = vmatpush.bf16.msra.mxu0 %v8472_v47  ;;  %v4281_v19 = vpop.f32.mrf.mxu3  ;;  %v4307_v51 = vpop.f32.mrf.mxu2  ;;  %v9268_v24 = vld [vmem:[%s13402_s11 + $0x4e4] sm:$0xf0]  ;;  %v8593_v47 = vld [vmem:[%s13402_s11 + $0x5c8] sm:$0xf0] }
 0x46d   : > { %v4295_v26 = vadd.f32 %v4294_v37, %v4281_v19  ;;  %v4321_v54 = vadd.f32 %v4320_v38, %v4307_v51  ;;  %v8480_v56 = vor.u32 %v9268_v24, %v8479_v0  ;;  %v9323_v0 = vld [vmem:[%s13404_s13 + $0x70] sm:$0xff] }
 0x46e   : > { %5572 = vmatpush.bf16.msrb.mxu3 %v8548_v53  ;;  %5525 = vmatpush.bf16.msrb.mxu2 %v8460_v46  ;;  %v8612_v53 = vor.u32 %v9298_v21, %v8609_v33  ;;  %v9316_v33 = vld [vmem:[%s13404_s13 + $0x38] sm:$0xff] }
 0x470   : > { %5546 = vmatpush.bf16.msra.mxu1 %v8544_v45  ;;  %5499 = vmatpush.bf16.msra.mxu0 %v8456_v8  ;;  %v4296_v43 = vpop.f32.mrf.mxu1  ;;  %v4322_v44 = vpop.f32.mrf.mxu0  ;;  %v9264_v45 = vld [vmem:[%s13402_s11 + $0x4c4] sm:$0xf0] }
 0x471   : > { %5526 = vmatmul.bf16.vlgmr.msrb.gmra.mxu2 %v13139_v5  ;;  %v8464_v25 = vor.u32 %v9264_v45, %v8463_v30  ;;  %v9312_v43 = vld [vmem:[%s13404_s13 + $0x18] sm:$0xff]  ;;  %v9321_v44 = vld [vmem:[%s13404_s13 + $0x60] sm:$0xff]  ;;  %v9331_v30 = vld [vmem:[%s13404_s13 + $0xb0] sm:$0xff] }
 0x472   : > { %5573 = vmatpush.bf16.msrb.mxu3 %v8532_v48  ;;  %5586 = vmatpush.bf16.msra.mxu2 %v5490_v10  ;;  %v8596_v48 = vor.u32 %v9294_v42, %v8593_v47  ;;  %v5684_v42 = vld [vmem:[%s13404_s13 + $0xf8] sm:$0x3] }
 0x473   : > { %5500 = vmatmul.bf16.vlgmr.msra.gmra.mxu0 %v13139_v5 }
 0x474   : > { %5560 = vmatpush.bf16.msrb.mxu0 %v5487_v32  ;;  %5547 = vmatpush.bf16.msra.mxu1 %v8528_v31  ;;  %v4283_v6 = vpop.f32.mrf.mxu3  ;;  %v4309_v46 = vpop.f32.mrf.mxu2 }
 0x475   : > { %v9310_v46 = vld [vmem:[%s13404_s13 + $0x8] sm:$0xff] }
 0x476   : > { %5574 = vmatpush.bf16.msrb.mxu3 %v8516_v58  ;;  %5587 = vmatpush.bf16.msra.mxu2 %v8644_v22 }
 0x478   : > { %5561 = vmatpush.bf16.msrb.mxu0 %v8640_v63  ;;  %5548 = vmatpush.bf16.msra.mxu1 %v8512_v49  ;;  %v4333_v8 = vpop.f32.mrf.mxu1  ;;  %v4346_v39 = vpop.f32.mrf.mxu0 }
 0x479   : > { %v4347_v59 = vadd.f32 %v4346_v39, %v4333_v8  ;;  %v9339_v8 = vld [vmem:[%s13404_s13 + $0xf0] sm:$0xff] }
 0x47a   : > { %5575 = vmatpush.bf16.msrb.mxu3 %v8500_v55  ;;  %5588 = vmatpush.bf16.msra.mxu2 %v8628_v11 }
 0x47c   : > { %5562 = vmatpush.bf16.msrb.mxu0 %v8624_v20  ;;  %5549 = vmatpush.bf16.msra.mxu1 %v8496_v18  ;;  %v4359_v10 = vpop.f32.mrf.mxu3  ;;  %v4372_v57 = vpop.f32.mrf.mxu2  ;;  %v9324_v18 = vld [vmem:[%s13404_s13 + $0x78] sm:$0xff] }
 0x47d   : > { %v4373_v29 = vadd.f32 %v4372_v57, %v4359_v10  ;;  %v9309_v10 = vld [vmem:[%s13404_s13] sm:$0xff]  ;;  %v9318_v57 = vld [vmem:[%s13404_s13 + $0x48] sm:$0xff] }
 0x47e   : > { %5576 = vmatpush.bf16.msrb.mxu3 %v8484_v17  ;;  %5589 = vmatpush.bf16.msra.mxu2 %v8612_v53  ;;  %v9314_v17 = vld [vmem:[%s13404_s13 + $0x28] sm:$0xff]  ;;  %v9313_v53 = vld [vmem:[%s13404_s13 + $0x20] sm:$0xff] }
 0x480   : > { %5563 = vmatpush.bf16.msrb.mxu0 %v8608_v9  ;;  %5550 = vmatpush.bf16.msra.mxu1 %v8480_v56  ;;  %v4335_v31 = vpop.f32.mrf.mxu1  ;;  %v4348_v32 = vpop.f32.mrf.mxu0  ;;  %v9332_v9 = vld [vmem:[%s13404_s13 + $0xb8] sm:$0xff]  ;;  %v5811_v56 = vunpack.c.l.b16 %v5684_v42 }
 0x481   : > { %v9338_v31 = vld [vmem:[%s13404_s13 + $0xe8] sm:$0xff] }
 0x482   : > { %5577 = vmatpush.bf16.msrb.mxu3 %v8468_v35  ;;  %5590 = vmatpush.bf16.msra.mxu2 %v8596_v48  ;;  %v5843_v35 = vpack.c.b16 %v5811_v56, %v5811_v56 }
 0x484   : > { %5564 = vmatpush.bf16.msrb.mxu0 %v8592_v7  ;;  %5551 = vmatpush.bf16.msra.mxu1 %v8464_v25  ;;  %v4361_v40 = vpop.f32.mrf.mxu3  ;;  %v4374_v1 = vpop.f32.mrf.mxu2  ;;  %v5881_v45 = vsel %vm5879_vm10, %v5843_v35, 0  ;;  %v9319_v7 = vld [vmem:[%s13404_s13 + $0x50] sm:$0xff]  ;;  %v9330_v25 = vld [vmem:[%s13404_s13 + $0xa8] sm:$0xff] }
 0x485   : > { %5578 = vmatmul.bf16.vlgmr.msrb.gmra.mxu3 %v13139_v5  ;;  %8648 = vmatmul.msk.bf16.vlgmr.msra.gmra.mxu2 %vm4255_vm9, %v13049_v12  ;;  %v9317_v1 = vld [vmem:[%s13404_s13 + $0x40] sm:$0xff] }
 0x486   : > { %5909 = vmatpush.bf16.msrb.mxu2 %v9332_v9  ;;  %5922 = vmatpush.bf16.msra.mxu3 %v5881_v45 }
 0x487   : > { %8647 = vmatmul.msk.bf16.vlgmr.msrb.gmra.mxu0 %vm4255_vm9, %v13049_v12  ;;  %5552 = vmatmul.bf16.vlgmr.msra.gmra.mxu1 %v13139_v5 }
 0x488   : > { %v4649_v58 = vpop.f32.mrf.mxu0  ;;  %v4662_v28 = vpop.f32.mrf.mxu1  ;;  %5883 = vmatpush.bf16.msra.mxu0 %v9316_v33  ;;  %5896 = vmatpush.bf16.msrb.mxu1 %v9324_v18 }
 0x489   : > { %v4650_v4 = vadd.f32 %v4649_v58, %v4295_v26  ;;  %v9328_v58 = vld [vmem:[%s13404_s13 + $0x98] sm:$0xff] }
 0x48a   : > { %5910 = vmatpush.bf16.msrb.mxu2 %v9331_v30  ;;  %5923 = vmatpush.bf16.msra.mxu3 %v9339_v8 }
 0x48b   : > { %v13221_v22 = vadd.f32 %v4662_v28, %v4650_v4  ;;  %v9337_v4 = vld [vmem:[%s13404_s13 + $0xe0] sm:$0xff] }
 0x48c   : > { %v4675_v14 = vpop.f32.mrf.mxu2  ;;  %v4688_v37 = vpop.f32.mrf.mxu3  ;;  %5897 = vmatpush.bf16.msrb.mxu1 %v9323_v0 }
 0x48d   : > { %v4676_v50 = vadd.f32 %v4675_v14, %v4321_v54  ;;  %v9315_v54 = vld [vmem:[%s13404_s13 + $0x30] sm:$0xff] }
 0x48e   : > { %5884 = vmatpush.bf16.msra.mxu0 %v9315_v54  ;;  %5911 = vmatpush.bf16.msrb.mxu2 %v9330_v25 }
 0x48f   : > { %v13223_v38 = vadd.f32 %v4688_v37, %v4676_v50  ;;  %5924 = vmatpush.bf16.msra.mxu3 %v9338_v31  ;;  %v9327_v50 = vld [vmem:[%s13404_s13 + $0x90] sm:$0xff]  ;;  %v9336_v37 = vld [vmem:[%s13404_s13 + $0xd8] sm:$0xff] }
 0x490   : > { %v4651_v12 = vpop.f32.mrf.mxu0  ;;  %v4664_v63 = vpop.f32.mrf.mxu1  ;;  %5898 = vmatpush.bf16.msrb.mxu1 %v9322_v3 }
 0x491   : > { %v9326_v12 = vld [vmem:[%s13404_s13 + $0x88] sm:$0xff]  ;;  %v9335_v63 = vld [vmem:[%s13404_s13 + $0xd0] sm:$0xff] }
 0x492   : > { %5885 = vmatpush.bf16.msra.mxu0 %v9314_v17 }
 0x493   : > { %5925 = vmatpush.bf16.msra.mxu3 %v9337_v4 }
 0x494   : > { %v4677_v5 = vpop.f32.mrf.mxu2  ;;  %v4690_v36 = vpop.f32.mrf.mxu3  ;;  %5899 = vmatpush.bf16.msrb.mxu1 %v9321_v44 }
 0x496   : > { %5886 = vmatpush.bf16.msra.mxu0 %v9313_v53 }
 0x497   : > { %5926 = vmatpush.bf16.msra.mxu3 %v9336_v37 }
 0x498   : > { %5900 = vmatpush.bf16.msrb.mxu1 %v9320_v62 }
 0x49a   : > { %5887 = vmatpush.bf16.msra.mxu0 %v9312_v43 }
 0x49b   : > { %5927 = vmatpush.bf16.msra.mxu3 %v9335_v63 }
 0x49c   : > { %v4701_v15 = vpop.f32.mrf.mxu1  ;;  %v4714_v49 = vpop.f32.mrf.mxu0  ;;  %5901 = vmatpush.bf16.msrb.mxu1 %v9319_v7 }
 0x49d   : > { %v4702_v52 = vadd.f32 %v4701_v15, %v4347_v59  ;;  %v9325_v15 = vld [vmem:[%s13404_s13 + $0x80] sm:$0xff] }
 0x49e   : > { %5888 = vmatpush.bf16.msra.mxu0 %v9311_v60 }
 0x49f   : > { %v13225_v61 = vadd.f32 %v4714_v49, %v4702_v52  ;;  %v9334_v49 = vld [vmem:[%s13404_s13 + $0xc8] sm:$0xff]  ;;  %v9333_v52 = vld [vmem:[%s13404_s13 + $0xc0] sm:$0xff] }
 0x4a0   : > { %v4727_v55 = vpop.f32.mrf.mxu3  ;;  %v4740_v2 = vpop.f32.mrf.mxu2  ;;  %5902 = vmatpush.bf16.msrb.mxu1 %v9318_v57  ;;  %5928 = vmatpush.bf16.msra.mxu3 %v9334_v49 }
 0x4a1   : > { %v4728_v41 = vadd.f32 %v4727_v55, %v4373_v29  ;;  %v9329_v29 = vld [vmem:[%s13404_s13 + $0xa0] sm:$0xff] }
 0x4a2   : > { %5889 = vmatpush.bf16.msra.mxu0 %v9310_v46  ;;  %5912 = vmatpush.bf16.msrb.mxu2 %v9329_v29 }
 0x4a3   : > { %v13227_v11 = vadd.f32 %v4740_v2, %v4728_v41  ;;  %v5600_v41 = vld [vmem:[%s13403_s12] sm:$0xf] }
 0x4a4   : > { %v4703_v13 = vpop.f32.mrf.mxu1  ;;  %v4716_v16 = vpop.f32.mrf.mxu0  ;;  %5903 = vmatpush.bf16.msrb.mxu1 %v9317_v1  ;;  %5929 = vmatpush.bf16.msra.mxu3 %v9333_v52  ;;  %v5602_v33 = vperm.slane %v5600_v41, 0  ;;  %v5603_v17 = vperm.slane %v5600_v41, 1  ;;  %v5604_v60 = vperm.slane %v5600_v41, 2  ;;  %v5605_v25 = vperm.slane %v5600_v41, 3 }
 0x4a6   : > { %5890 = vmatpush.bf16.msra.mxu0 %v9309_v10  ;;  %5913 = vmatpush.bf16.msrb.mxu2 %v9328_v58  ;;  %v5685_v58 = vld [vmem:[%s13405_s14] sm:$0x1] }
 0x4a8   : > { %v4729_v19 = vpop.f32.mrf.mxu3  ;;  %v4742_v51 = vpop.f32.mrf.mxu2 }
 0x4aa   : > { %5914 = vmatpush.bf16.msrb.mxu2 %v9327_v50 }
 0x4ae   : > { %5915 = vmatpush.bf16.msrb.mxu2 %v9326_v12 }
 0x4b0   : > { %v13229_v20 = vpop.f32.mrf.mxu1 }
 0x4b2   : > { %5916 = vmatpush.bf16.msrb.mxu2 %v9325_v15 }
 0x4b4   : > { %v13231_v21 = vpop.f32.mrf.mxu3 }
 0x4b8   : > { %v5089_v26 = vpop.f32.mrf.mxu1 }
 0x4bc   : > { %v13242_v34 = vpop.f32.mrf.mxu0  ;;  %v5115_v23 = vpop.f32.mrf.mxu3 }
 0x4bd   : > { %v5088_v55 = vadd.f32 %v13229_v20, %v13242_v34 }
 0x4bf   : > { %v5169_v19 = vadd.f32 %v5088_v55, %v13221_v22 }
 0x4c0   : > { %v13250_v24 = vpop.f32.mrf.mxu2 }
 0x4c1   : > { %v5114_v26 = vadd.f32 %v13231_v21, %v13250_v24 }
 0x4c3   : > { %v5170_v20 = vadd.f32 %v5114_v26, %v13223_v38 }
 0x4c4   : > { %v5076_v27 = vpop.f32.mrf.mxu0 }
 0x4c8   : > { %v5102_v47 = vpop.f32.mrf.mxu2 }
 0x4d0   : > { %v13279_v48 = vpop.f32.mrf.mxu1  ;;  %v13281_v6 = vpop.f32.mrf.mxu0 }
 0x4d1   : > { %v5140_v42 = vadd.f32 %v13281_v6, %v13279_v48 }
 0x4d3   : > { %v5171_v47 = vadd.f32 %v5140_v42, %v13225_v61 }
 0x4d4   : > { %v13295_v39 = vpop.f32.mrf.mxu3  ;;  %v13297_v59 = vpop.f32.mrf.mxu2 }
 0x4d5   : > { %v5166_v38 = vadd.f32 %v13297_v59, %v13295_v39 }
 0x4d7   : > { %v5172_v45 = vadd.f32 %v5166_v38, %v13227_v11 }
 0x4d8   : > { %v5128_v32 = vpop.f32.mrf.mxu1  ;;  %v5141_v40 = vpop.f32.mrf.mxu0 }
 0x4dc   : > { %v5154_v28 = vpop.f32.mrf.mxu3  ;;  %v5167_v14 = vpop.f32.mrf.mxu2 }
 0x4e4   : > { %v5514_v5 = vpop.f32.mrf.mxu1 }
 0x4e8   : > { %v5540_v36 = vpop.f32.mrf.mxu3 }
 0x4ec   : > { %v5516_v2 = vpop.f32.mrf.mxu1 }
 0x4f0   : > { %v5542_v13 = vpop.f32.mrf.mxu3  ;;  %v5501_v16 = vpop.f32.mrf.mxu0 }
 0x4f1   : > { %v5515_v51 = vadd.f32 %v5514_v5, %v5501_v16 }
 0x4f3   : > { %v5596_v54 = vadd.f32 %v5515_v51, %v5169_v19 }
 0x4f4   : > { %v5527_v23 = vpop.f32.mrf.mxu2 }
 0x4f5   : > { %v5610_v18 = vadd.f32 %v5602_v33, %v5596_v54  ;;  %v5541_v34 = vadd.f32 %v5540_v36, %v5527_v23 }
 0x4f7   : > { %v5614_v0 = vmax.f32 %v5610_v18, 0.0  ;;  %v5597_v53 = vadd.f32 %v5541_v34, %v5170_v20 }
 0x4f8   : > { %v5503_v3 = vpop.f32.mrf.mxu0 }
 0x4f9   : > { %v5618_v27 = vpack.c.bf16 %v5614_v0, %v5614_v0  ;;  %v5611_v43 = vadd.f32 %v5603_v17, %v5597_v53 }
 0x4fb   : > { %5891 = vmatmul.bf16.vlgmr.msra.gmra.mxu0 %v5618_v27  ;;  %v5615_v44 = vmax.f32 %v5611_v43, 0.0 }
 0x4fc   : > { %v5529_v22 = vpop.f32.mrf.mxu2 }
 0x4fd   : > { %v5619_v9 = vpack.c.bf16 %v5615_v44, %v5615_v44 }
 0x4ff   : > { %5904 = vmatmul.bf16.vlgmr.msrb.gmra.mxu1 %v5619_v9 }
 0x504   : > { %v5566_v21 = vpop.f32.mrf.mxu0  ;;  %v5553_v24 = vpop.f32.mrf.mxu1 }
 0x505   : > { %v5567_v56 = vadd.f32 %v5566_v21, %v5553_v24 }
 0x507   : > { %v5598_v62 = vadd.f32 %v5567_v56, %v5171_v47 }
 0x508   : > { %v5579_v35 = vpop.f32.mrf.mxu3  ;;  %v5592_v30 = vpop.f32.mrf.mxu2 }
 0x509   : > { %v5612_v46 = vadd.f32 %v5604_v60, %v5598_v62  ;;  %v5593_v7 = vadd.f32 %v5592_v30, %v5579_v35 }
 0x50b   : > { %v5616_v8 = vmax.f32 %v5612_v46, 0.0  ;;  %v5599_v48 = vadd.f32 %v5593_v7, %v5172_v45 }
 0x50c   : > { %v5568_v6 = vpop.f32.mrf.mxu0  ;;  %v5555_v10 = vpop.f32.mrf.mxu1 }
 0x50d   : > { %v5620_v57 = vpack.c.bf16 %v5616_v8, %v5616_v8  ;;  %v5613_v61 = vadd.f32 %v5605_v25, %v5599_v48 }
 0x50f   : > { %v5617_v29 = vmax.f32 %v5613_v61, 0.0  ;;  %5917 = vmatmul.bf16.vlgmr.msrb.gmra.mxu2 %v5620_v57 }
 0x510   : > { %v5581_v39 = vpop.f32.mrf.mxu3  ;;  %v5594_v59 = vpop.f32.mrf.mxu2 }
 0x511   : > { %v5621_v31 = vpack.c.bf16 %v5617_v29, %v5617_v29 }
 0x513   : > { %8773 = vmatmul.msk.bf16.vlgmr.msra.gmra.mxu3 %vm5875_vm11, %v5621_v31 }
 0x578   : > { %v5892_v32 = vpop.f32.mrf.mxu0 }
 0x579   : > { %v5893_v4 = vadd.f32 %v5892_v32, %v5685_v58 }
 0x57c   : > { %v5905_v11 = vpop.f32.mrf.mxu1 }
 0x57d   : > { %v5906_v14 = vadd.f32 %v5905_v11, %v5893_v4 }
 0x580   : > { %v5894_v40 = vpop.f32.mrf.mxu0 }
 0x584   : > { %v5907_v1 = vpop.f32.mrf.mxu1 }
 0x592   : > { %v5918_v28 = vpop.f32.mrf.mxu2 }
 0x593   : > { %v5919_v50 = vadd.f32 %v5918_v28, %v5906_v14 }
 0x596   : > { %v5931_v37 = vpop.f32.mrf.mxu3 }
 0x597   : > { %v5932_v12 = vadd.f32 %v5931_v37, %v5919_v50 }
 0x599   : > { %5936 = vst.msk [vmem:[%s486_s27] sm:$0x1] %vm5935_vm12, %v5932_v12 }
 0x59a   : > { %v5920_v63 = vpop.f32.mrf.mxu2 }
 0x59b   : > { %9406 = shalt.err (!%p9403_p3)
}
 0x59c   : > { %9340 = dma.vmem_to_hbm [thread:$0]  (%p9561_p5), %s5949_s24, 16, %s5951_s26, %s5938_s30  }
 0x59e   : > { %v5933_v5 = vpop.f32.mrf.mxu3 }
 0x59f PF: > { %s13423_s23 = sld [smem:[#allocation7_spill]] }
 0x5a0   : > { %s13424_s20 = sld [smem:[#allocation5_spill]] }
 0x5a5   : > { %p9346_p4 = scmp.ge.s32.totalorder %s13423_s23, 2 }
 0x5a6   : > { %s5962_s0 = sand.u32 1, %s13424_s20  }
 0x5a7   : > { %p9343_p7 = pnand %p9346_p4, %p9565_p6  ;;  %s5963_s22 = scalar_lea.sflag [#allocation3], %s5962_s0 }
 0x5a9   : > { %p9344_p8 = pneg %p9343_p7 }
 0x5ab   : > { %9424 = dma.done.wait (%p9344_p8), %s5963_s22, 16  }
 0x5ac   : > { %9426 = vsyncadd (%p9344_p8), %s5963_s22, 4294967280  ;;  %s13426_s21 = sld [smem:[#allocation8_spill]]  ;;  %s13429_s18 = smov %s9433_s19 }
 0x5ad   : > { %s13427_s16 = sld [smem:[#allocation6_spill]] }
 0x5ae   : > { %s13428_s20 = sld [smem:[#allocation9_spill]] }
 0x5b2   : > { %p25_p9 = scmp.ge.s32.totalorder %s13426_s21, 4  }
 0x5b3   : > { %s13430_s19 = smov %s13427_s16 }
 0x5b4   :  { %27 = sbr.rel (!%p25_p9) target bundleno = 5 (0x5), region = 134 }
 0x5b9   :  { %5968 = vsyncpa [#allocation3], 1 }
 0x5ba   :  { %5970 = vsyncpa [#allocation3 + $0x1], 1 }

</bundles_post_ra>
